<compile_context>
chip_gen: v6e
topology: v6e:2x2x1
jax: 0.10.0
libtpu: 0.0.40
codegen_flags: <defaults>
</compile_context>

<pallas_src>
import jax
import jax.numpy as jnp
import numpy as np
from jax.experimental import pallas as pl
from jax.experimental.pallas import tpu as pltpu

LANES = 128                      # channel lane padding (vreg lane width)
VMEM_LIMIT = 16 * 1024 * 1024    # resident blocks ~2.1 MiB (x2 buffers) + scratch


# ----------------------------------------------------------------------------
# Constant 0/1 gather matrices: fold spatial padding + stride + the k*k tap
# offsets of a conv into a single (k*k*M_out, H_in*W_in) selection matrix.
# Out-of-bounds (padding) taps simply get an all-zero row -> contribute 0.
# ----------------------------------------------------------------------------
def _conv_gather_matrix(h_in, w_in, k, stride, pad):
    h_out = (h_in + 2 * pad - k) // stride + 1
    w_out = (w_in + 2 * pad - k) // stride + 1
    m = h_out * w_out
    g = np.zeros((k * k, m, h_in * w_in), np.float32)
    for dy in range(k):
        for dx in range(k):
            t = dy * k + dx
            for oi in range(h_out):
                ii = oi * stride + dy - pad
                if ii < 0 or ii >= h_in:
                    continue
                for oj in range(w_out):
                    jj = oj * stride + dx - pad
                    if jj < 0 or jj >= w_in:
                        continue
                    g[t, oi * w_out + oj, ii * w_in + jj] = 1.0
    return jnp.asarray(g.reshape(k * k * m, h_in * w_in)), h_out, w_out


# ----------------------------------------------------------------------------
# Parameter prep: PyTorch layouts -> tap-major, lane-padded kernel layouts.
# ----------------------------------------------------------------------------
def _prep_conv_weight(w_oihw, cin_pad):
    """(Co,Ci,kh,kw) -> (kh*kw, cin_pad, 128) f32, tap index t = dy*kw + dx."""
    co, ci, kh, kw = w_oihw.shape
    w = jnp.transpose(w_oihw, (2, 3, 1, 0)).reshape(kh * kw, ci, co)
    w = jnp.pad(w, ((0, 0), (0, cin_pad - ci), (0, LANES - co)))
    return w.astype(jnp.float32)


def _pad_bias(b):
    return jnp.pad(b.astype(jnp.float32), (0, LANES - b.shape[0]))


# ----------------------------------------------------------------------------
# The fused kernel: head -> layer1 -> layer2 -> tail -> mean-pool -> classifier
# for one image per grid step.  Only full / statically-sliced VALUE ops inside
# (no strided ref reads), so it lowers cleanly on Mosaic and interprets cleanly.
# ----------------------------------------------------------------------------
def _encoder_kernel(x_ref, gh_ref, g1_ref, g2_ref,
                    wh_ref, w1_ref, w2_ref, wt_ref, wc_ref, b_ref, o_ref):
    f32 = jnp.float32

    # Load everything once; all further work is on values (vregs / VMEM).
    x0 = x_ref[...][0]                    # (H*W, Cin) raw image, flat spatial
    g_head, g_l1, g_l2 = gh_ref[...], g1_ref[...], g2_ref[...]
    w_head, w_l1, w_l2 = wh_ref[...], w1_ref[...], w2_ref[...]
    w_tail, w_cls = wt_ref[...], wc_ref[...]
    biases = b_ref[...]                   # (5, 128)

    def conv_relu(xflat, g_all, w_all, bias_row):
        # xflat : (P_in, Cin)        g_all : (k2*M_out, P_in)
        # w_all : (k2, Cin, 128)     bias  : (1, 128)
        k2 = w_all.shape[0]
        m_out = g_all.shape[0] // k2
        # One stacked gather GEMM for all taps (spatial pad + stride folded in).
        patches = jnp.dot(g_all, xflat, preferred_element_type=f32)
        acc = jnp.zeros((m_out, LANES), f32)
        for t in range(k2):               # static, fully unrolled
            acc = acc + jnp.dot(patches[t * m_out:(t + 1) * m_out, :],
                                w_all[t], preferred_element_type=f32)
        return jnp.maximum(acc + bias_row, 0.0)

    a = conv_relu(x0, g_head, w_head, biases[0:1])   # head   -> (64, 128)  8x8
    a = conv_relu(a, g_l1, w_l1, biases[1:2])        # layer1 -> (64, 128)  8x8
    a = conv_relu(a, g_l2, w_l2, biases[2:3])        # layer2 -> (16, 128)  4x4
    # tail: 1x1 conv == per-position linear + ReLU
    a = jnp.maximum(jnp.dot(a, w_tail, preferred_element_type=f32)
                    + biases[3:4], 0.0)              # (16, 128)
    # classifier: global mean pool ('mean') + dropout(p=0, identity) + Linear
    pooled = jnp.mean(a, axis=0, keepdims=True)      # (1, 128)
    logits = jnp.dot(pooled, w_cls, preferred_element_type=f32) + biases[4:5]
    o_ref[...] = logits.reshape(1, 1, LANES)


# ----------------------------------------------------------------------------
# BaseEncoder.forward:  head -> body -> tail -> classifier   (single launch)
# ----------------------------------------------------------------------------
def base_encoder_forward(params, x_nchw):
    B, C, H, W = x_nchw.shape
    n_classes = params["classifier"]["w"].shape[1]

    # NCHW -> NHWC -> flat spatial rows; channels kept at real width (no pad copy).
    x = jnp.transpose(x_nchw, (0, 2, 3, 1)).reshape(B, H * W, C).astype(jnp.float32)

    # Constant conv gather matrices (trace-time numpy).
    gh, h1, w1s = _conv_gather_matrix(H, W, 3, 2, 1)      # 16x16 -> 8x8
    g1, h2, w2s = _conv_gather_matrix(h1, w1s, 3, 1, 1)   #  8x8  -> 8x8
    g2, h3, w3s = _conv_gather_matrix(h2, w2s, 3, 2, 1)   #  8x8  -> 4x4

    wh = _prep_conv_weight(params["head"]["w"], cin_pad=C)        # (9,   4, 128)
    w1 = _prep_conv_weight(params["layer1"]["w"], cin_pad=LANES)  # (9, 128, 128)
    w2 = _prep_conv_weight(params["layer2"]["w"], cin_pad=LANES)  # (9, 128, 128)
    wt = _prep_conv_weight(params["tail"]["w"], cin_pad=LANES)[0]  # (128, 128)
    wc = jnp.pad(params["classifier"]["w"].astype(jnp.float32),
                 ((0, LANES - params["classifier"]["w"].shape[0]),
                  (0, LANES - n_classes)))                         # (128, 128)
    b_all = jnp.stack([_pad_bias(params["head"]["b"]),
                       _pad_bias(params["layer1"]["b"]),
                       _pad_bias(params["layer2"]["b"]),
                       _pad_bias(params["tail"]["b"]),
                       _pad_bias(params["classifier"]["b"])])      # (5, 128)

    m_h, m_1, m_2 = h1 * w1s, h2 * w2s, h3 * w3s                   # 64, 64, 16

    def dflops(m, k, n):
        return 2 * m * k * n
    flops = B * (dflops(gh.shape[0], gh.shape[1], C) + 9 * dflops(m_h, C, LANES)
                 + dflops(g1.shape[0], g1.shape[1], LANES) + 9 * dflops(m_1, LANES, LANES)
                 + dflops(g2.shape[0], g2.shape[1], LANES) + 9 * dflops(m_2, LANES, LANES)
                 + dflops(m_2, LANES, LANES) + dflops(1, LANES, LANES))
    param_bytes = 4 * sum(int(a.size) for a in (gh, g1, g2, wh, w1, w2, wt, wc, b_all))
    bytes_accessed = param_bytes + x.size * 4 + B * LANES * 4

    out = pl.pallas_call(
        _encoder_kernel,
        out_shape=jax.ShapeDtypeStruct((B, 1, LANES), jnp.float32),
        grid=(B,),
        in_specs=[
            pl.BlockSpec((1, H * W, C), lambda b: (b, 0, 0)),   # image (per grid step)
            pl.BlockSpec(gh.shape, lambda b: (0, 0)),           # gather: head
            pl.BlockSpec(g1.shape, lambda b: (0, 0)),           # gather: layer1
            pl.BlockSpec(g2.shape, lambda b: (0, 0)),           # gather: layer2
            pl.BlockSpec(wh.shape, lambda b: (0, 0, 0)),        # weights: head
            pl.BlockSpec(w1.shape, lambda b: (0, 0, 0)),        # weights: layer1
            pl.BlockSpec(w2.shape, lambda b: (0, 0, 0)),        # weights: layer2
            pl.BlockSpec(wt.shape, lambda b: (0, 0)),           # weights: tail 1x1
            pl.BlockSpec(wc.shape, lambda b: (0, 0)),           # weights: classifier
            pl.BlockSpec(b_all.shape, lambda b: (0, 0)),        # all biases
        ],
        out_specs=pl.BlockSpec((1, 1, LANES), lambda b: (b, 0, 0)),
        compiler_params=pltpu.CompilerParams(
            dimension_semantics=("parallel",),                  # megacore on v7x
            vmem_limit_bytes=VMEM_LIMIT),
        cost_estimate=pl.CostEstimate(flops=flops, transcendentals=0,
                                      bytes_accessed=bytes_accessed),
    )(x, gh, g1, g2, wh, w1, w2, wt, wc, b_all)

    return out.reshape(B, LANES)[:, :n_classes]


# ----------------------------------------------------------------------------
# Deterministic parameter construction (kaiming_normal conv / normal linear)
# ----------------------------------------------------------------------------
def make_params(key, n_classes=10):
    ks = jax.random.split(key, 6)

    def conv_w(k, cout, cin, kh, kw):
        fan_in = cin * kh * kw
        std = float(np.sqrt(2.0 / fan_in))                    # kaiming_normal
        return jax.random.normal(k, (cout, cin, kh, kw), jnp.float32) * std

    return {
        "head":   {"w": conv_w(ks[0], 8, 4, 3, 3),   "b": jnp.zeros((8,),  jnp.float32)},
        "layer1": {"w": conv_w(ks[1], 16, 8, 3, 3),  "b": jnp.zeros((16,), jnp.float32)},
        "layer2": {"w": conv_w(ks[2], 32, 16, 3, 3), "b": jnp.zeros((32,), jnp.float32)},
        "tail":   {"w": conv_w(ks[3], 32, 32, 1, 1), "b": jnp.zeros((32,), jnp.float32)},
        "classifier": {
            # linear_init='normal', linear_init_std_dev=0.01
            "w": jax.random.normal(ks[4], (32, n_classes), jnp.float32) * 0.01,
            "b": jnp.zeros((n_classes,), jnp.float32),
        },
    }


# ----------------------------------------------------------------------------
# Pure-JAX reference (for correctness check)
# ----------------------------------------------------------------------------
def reference_forward(params, x_nchw):
    x = jnp.transpose(x_nchw, (0, 2, 3, 1))

    def conv(x, w, b, stride, pad):
        w_hwio = jnp.transpose(w, (2, 3, 1, 0))
        y = jax.lax.conv_general_dilated(
            x, w_hwio, (stride, stride), ((pad, pad), (pad, pad)),
            dimension_numbers=("NHWC", "HWIO", "NHWC"))
        return jnp.maximum(y + b, 0.0)

    x = conv(x, params["head"]["w"],   params["head"]["b"],   2, 1)
    x = conv(x, params["layer1"]["w"], params["layer1"]["b"], 1, 1)
    x = conv(x, params["layer2"]["w"], params["layer2"]["b"], 2, 1)
    x = conv(x, params["tail"]["w"],   params["tail"]["b"],   1, 0)
    pooled = jnp.mean(x, axis=(1, 2))
    return pooled @ params["classifier"]["w"] + params["classifier"]["b"]


if __name__ == "__main__":
    key = jax.random.PRNGKey(0)
    k_x, k_p = jax.random.split(key)
    x = jax.random.normal(k_x, (2, 4, 16, 16), jnp.float32)   # NCHW like PyTorch
    params = make_params(k_p, n_classes=10)

    fwd = jax.jit(base_encoder_forward)
    out = jax.block_until_ready(fwd(params, x))
    ref = jax.block_until_ready(reference_forward(params, x))

    assert out.shape == (2, 10), out.shape
    # MXU default-precision matmuls vs XLA conv reference -> modest tolerance.
    np.testing.assert_allclose(np.asarray(out), np.asarray(ref), atol=1e-2, rtol=5e-2)
    print("KERNEL_OK")
</pallas_src>

<mosaic_0001>
module attributes {stable_mosaic.version = 11 : i64} {
  func.func @_encoder_kernel(%arg0: i32, %arg1: memref<1x256x4xf32, #tpu.memory_space<vmem>>, %arg2: memref<576x256xf32, #tpu.memory_space<vmem>>, %arg3: memref<576x64xf32, #tpu.memory_space<vmem>>, %arg4: memref<144x64xf32, #tpu.memory_space<vmem>>, %arg5: memref<9x4x128xf32, #tpu.memory_space<vmem>>, %arg6: memref<9x128x128xf32, #tpu.memory_space<vmem>>, %arg7: memref<9x128x128xf32, #tpu.memory_space<vmem>>, %arg8: memref<128x128xf32, #tpu.memory_space<vmem>>, %arg9: memref<128x128xf32, #tpu.memory_space<vmem>>, %arg10: memref<5x128xf32, #tpu.memory_space<vmem>>, %arg11: memref<1x1x128xf32, #tpu.memory_space<vmem>>) attributes {dimension_semantics = [#tpu.dimension_semantics<parallel>], iteration_bounds = array<i64: 2>, scalar_prefetch = 0 : i64, scratch_operands = 0 : i64, tpu.core_type = #tpu.core_type<tc>, window_params = [{transform_indices = @transform_0, window_bounds = array<i64: 1, 256, 4>}, {pipeline_mode = #tpu.pipeline_mode<synchronous>, transform_indices = @transform_1, window_bounds = array<i64: 576, 256>}, {pipeline_mode = #tpu.pipeline_mode<synchronous>, transform_indices = @transform_2, window_bounds = array<i64: 576, 64>}, {pipeline_mode = #tpu.pipeline_mode<synchronous>, transform_indices = @transform_3, window_bounds = array<i64: 144, 64>}, {pipeline_mode = #tpu.pipeline_mode<synchronous>, transform_indices = @transform_4, window_bounds = array<i64: 9, 4, 128>}, {pipeline_mode = #tpu.pipeline_mode<synchronous>, transform_indices = @transform_5, window_bounds = array<i64: 9, 128, 128>}, {pipeline_mode = #tpu.pipeline_mode<synchronous>, transform_indices = @transform_6, window_bounds = array<i64: 9, 128, 128>}, {pipeline_mode = #tpu.pipeline_mode<synchronous>, transform_indices = @transform_7, window_bounds = array<i64: 128, 128>}, {pipeline_mode = #tpu.pipeline_mode<synchronous>, transform_indices = @transform_8, window_bounds = array<i64: 128, 128>}, {pipeline_mode = #tpu.pipeline_mode<synchronous>, transform_indices = @transform_9, window_bounds = array<i64: 5, 128>}, {transform_indices = @transform_10, window_bounds = array<i64: 1, 1, 128>}]} {
    %c0 = arith.constant 0 : index
    %c0_0 = arith.constant 0 : index
    %c0_1 = arith.constant 0 : index
    %0 = vector.load %arg1[%c0, %c0_0, %c0_1] : memref<1x256x4xf32, #tpu.memory_space<vmem>>, vector<1x256x4xf32>
    %1 = vector.shape_cast %0 : vector<1x256x4xf32> to vector<256x4xf32>
    %c0_2 = arith.constant 0 : index
    %c0_3 = arith.constant 0 : index
    %2 = vector.load %arg2[%c0_2, %c0_3] : memref<576x256xf32, #tpu.memory_space<vmem>>, vector<576x256xf32>
    %c0_4 = arith.constant 0 : index
    %c0_5 = arith.constant 0 : index
    %3 = vector.load %arg3[%c0_4, %c0_5] : memref<576x64xf32, #tpu.memory_space<vmem>>, vector<576x64xf32>
    %c0_6 = arith.constant 0 : index
    %c0_7 = arith.constant 0 : index
    %4 = vector.load %arg4[%c0_6, %c0_7] : memref<144x64xf32, #tpu.memory_space<vmem>>, vector<144x64xf32>
    %c0_8 = arith.constant 0 : index
    %c0_9 = arith.constant 0 : index
    %c0_10 = arith.constant 0 : index
    %5 = vector.load %arg5[%c0_8, %c0_9, %c0_10] : memref<9x4x128xf32, #tpu.memory_space<vmem>>, vector<9x4x128xf32>
    %c0_11 = arith.constant 0 : index
    %c0_12 = arith.constant 0 : index
    %c0_13 = arith.constant 0 : index
    %6 = vector.load %arg6[%c0_11, %c0_12, %c0_13] : memref<9x128x128xf32, #tpu.memory_space<vmem>>, vector<9x128x128xf32>
    %c0_14 = arith.constant 0 : index
    %c0_15 = arith.constant 0 : index
    %c0_16 = arith.constant 0 : index
    %7 = vector.load %arg7[%c0_14, %c0_15, %c0_16] : memref<9x128x128xf32, #tpu.memory_space<vmem>>, vector<9x128x128xf32>
    %c0_17 = arith.constant 0 : index
    %c0_18 = arith.constant 0 : index
    %8 = vector.load %arg8[%c0_17, %c0_18] : memref<128x128xf32, #tpu.memory_space<vmem>>, vector<128x128xf32>
    %c0_19 = arith.constant 0 : index
    %c0_20 = arith.constant 0 : index
    %9 = vector.load %arg9[%c0_19, %c0_20] : memref<128x128xf32, #tpu.memory_space<vmem>>, vector<128x128xf32>
    %c0_21 = arith.constant 0 : index
    %c0_22 = arith.constant 0 : index
    %10 = vector.load %arg10[%c0_21, %c0_22] : memref<5x128xf32, #tpu.memory_space<vmem>>, vector<5x128xf32>
    %11 = vector.extract_strided_slice %10 {offsets = [0, 0], sizes = [1, 128], strides = [1, 1]} : vector<5x128xf32> to vector<1x128xf32>
    %cst = arith.constant dense<0.000000e+00> : vector<576x4xf32>
    %12 = tpu.matmul %2, %1, %cst {dimension_numbers = #tpu.dot_dimension_numbers<[1], [0], [0], [1], [0, 0, 1, 1], [], []>} : vector<576x256xf32>, vector<256x4xf32>, vector<576x4xf32> -> vector<576x4xf32>
    %cst_23 = arith.constant 0.000000e+00 : f32
    %13 = vector.broadcast %cst_23 : f32 to vector<64x128xf32>
    %14 = vector.extract_strided_slice %12 {offsets = [0, 0], sizes = [64, 4], strides = [1, 1]} : vector<576x4xf32> to vector<64x4xf32>
    %15 = vector.extract_strided_slice %5 {offsets = [0, 0, 0], sizes = [1, 4, 128], strides = [1, 1, 1]} : vector<9x4x128xf32> to vector<1x4x128xf32>
    %16 = vector.shape_cast %15 : vector<1x4x128xf32> to vector<4x128xf32>
    %cst_24 = arith.constant dense<0.000000e+00> : vector<64x128xf32>
    %17 = tpu.matmul %14, %16, %cst_24 {dimension_numbers = #tpu.dot_dimension_numbers<[1], [0], [0], [1], [0, 0, 1, 1], [], []>} : vector<64x4xf32>, vector<4x128xf32>, vector<64x128xf32> -> vector<64x128xf32>
    %18 = arith.addf %13, %17 : vector<64x128xf32>
    %19 = vector.extract_strided_slice %12 {offsets = [64, 0], sizes = [64, 4], strides = [1, 1]} : vector<576x4xf32> to vector<64x4xf32>
    %20 = vector.extract_strided_slice %5 {offsets = [1, 0, 0], sizes = [1, 4, 128], strides = [1, 1, 1]} : vector<9x4x128xf32> to vector<1x4x128xf32>
    %21 = vector.shape_cast %20 : vector<1x4x128xf32> to vector<4x128xf32>
    %cst_25 = arith.constant dense<0.000000e+00> : vector<64x128xf32>
    %22 = tpu.matmul %19, %21, %cst_25 {dimension_numbers = #tpu.dot_dimension_numbers<[1], [0], [0], [1], [0, 0, 1, 1], [], []>} : vector<64x4xf32>, vector<4x128xf32>, vector<64x128xf32> -> vector<64x128xf32>
    %23 = arith.addf %18, %22 : vector<64x128xf32>
    %24 = vector.extract_strided_slice %12 {offsets = [128, 0], sizes = [64, 4], strides = [1, 1]} : vector<576x4xf32> to vector<64x4xf32>
    %25 = vector.extract_strided_slice %5 {offsets = [2, 0, 0], sizes = [1, 4, 128], strides = [1, 1, 1]} : vector<9x4x128xf32> to vector<1x4x128xf32>
    %26 = vector.shape_cast %25 : vector<1x4x128xf32> to vector<4x128xf32>
    %cst_26 = arith.constant dense<0.000000e+00> : vector<64x128xf32>
    %27 = tpu.matmul %24, %26, %cst_26 {dimension_numbers = #tpu.dot_dimension_numbers<[1], [0], [0], [1], [0, 0, 1, 1], [], []>} : vector<64x4xf32>, vector<4x128xf32>, vector<64x128xf32> -> vector<64x128xf32>
    %28 = arith.addf %23, %27 : vector<64x128xf32>
    %29 = vector.extract_strided_slice %12 {offsets = [192, 0], sizes = [64, 4], strides = [1, 1]} : vector<576x4xf32> to vector<64x4xf32>
    %30 = vector.extract_strided_slice %5 {offsets = [3, 0, 0], sizes = [1, 4, 128], strides = [1, 1, 1]} : vector<9x4x128xf32> to vector<1x4x128xf32>
    %31 = vector.shape_cast %30 : vector<1x4x128xf32> to vector<4x128xf32>
    %cst_27 = arith.constant dense<0.000000e+00> : vector<64x128xf32>
    %32 = tpu.matmul %29, %31, %cst_27 {dimension_numbers = #tpu.dot_dimension_numbers<[1], [0], [0], [1], [0, 0, 1, 1], [], []>} : vector<64x4xf32>, vector<4x128xf32>, vector<64x128xf32> -> vector<64x128xf32>
    %33 = arith.addf %28, %32 : vector<64x128xf32>
    %34 = vector.extract_strided_slice %12 {offsets = [256, 0], sizes = [64, 4], strides = [1, 1]} : vector<576x4xf32> to vector<64x4xf32>
    %35 = vector.extract_strided_slice %5 {offsets = [4, 0, 0], sizes = [1, 4, 128], strides = [1, 1, 1]} : vector<9x4x128xf32> to vector<1x4x128xf32>
    %36 = vector.shape_cast %35 : vector<1x4x128xf32> to vector<4x128xf32>
    %cst_28 = arith.constant dense<0.000000e+00> : vector<64x128xf32>
    %37 = tpu.matmul %34, %36, %cst_28 {dimension_numbers = #tpu.dot_dimension_numbers<[1], [0], [0], [1], [0, 0, 1, 1], [], []>} : vector<64x4xf32>, vector<4x128xf32>, vector<64x128xf32> -> vector<64x128xf32>
    %38 = arith.addf %33, %37 : vector<64x128xf32>
    %39 = vector.extract_strided_slice %12 {offsets = [320, 0], sizes = [64, 4], strides = [1, 1]} : vector<576x4xf32> to vector<64x4xf32>
    %40 = vector.extract_strided_slice %5 {offsets = [5, 0, 0], sizes = [1, 4, 128], strides = [1, 1, 1]} : vector<9x4x128xf32> to vector<1x4x128xf32>
    %41 = vector.shape_cast %40 : vector<1x4x128xf32> to vector<4x128xf32>
    %cst_29 = arith.constant dense<0.000000e+00> : vector<64x128xf32>
    %42 = tpu.matmul %39, %41, %cst_29 {dimension_numbers = #tpu.dot_dimension_numbers<[1], [0], [0], [1], [0, 0, 1, 1], [], []>} : vector<64x4xf32>, vector<4x128xf32>, vector<64x128xf32> -> vector<64x128xf32>
    %43 = arith.addf %38, %42 : vector<64x128xf32>
    %44 = vector.extract_strided_slice %12 {offsets = [384, 0], sizes = [64, 4], strides = [1, 1]} : vector<576x4xf32> to vector<64x4xf32>
    %45 = vector.extract_strided_slice %5 {offsets = [6, 0, 0], sizes = [1, 4, 128], strides = [1, 1, 1]} : vector<9x4x128xf32> to vector<1x4x128xf32>
    %46 = vector.shape_cast %45 : vector<1x4x128xf32> to vector<4x128xf32>
    %cst_30 = arith.constant dense<0.000000e+00> : vector<64x128xf32>
    %47 = tpu.matmul %44, %46, %cst_30 {dimension_numbers = #tpu.dot_dimension_numbers<[1], [0], [0], [1], [0, 0, 1, 1], [], []>} : vector<64x4xf32>, vector<4x128xf32>, vector<64x128xf32> -> vector<64x128xf32>
    %48 = arith.addf %43, %47 : vector<64x128xf32>
    %49 = vector.extract_strided_slice %12 {offsets = [448, 0], sizes = [64, 4], strides = [1, 1]} : vector<576x4xf32> to vector<64x4xf32>
    %50 = vector.extract_strided_slice %5 {offsets = [7, 0, 0], sizes = [1, 4, 128], strides = [1, 1, 1]} : vector<9x4x128xf32> to vector<1x4x128xf32>
    %51 = vector.shape_cast %50 : vector<1x4x128xf32> to vector<4x128xf32>
    %cst_31 = arith.constant dense<0.000000e+00> : vector<64x128xf32>
    %52 = tpu.matmul %49, %51, %cst_31 {dimension_numbers = #tpu.dot_dimension_numbers<[1], [0], [0], [1], [0, 0, 1, 1], [], []>} : vector<64x4xf32>, vector<4x128xf32>, vector<64x128xf32> -> vector<64x128xf32>
    %53 = arith.addf %48, %52 : vector<64x128xf32>
    %54 = vector.extract_strided_slice %12 {offsets = [512, 0], sizes = [64, 4], strides = [1, 1]} : vector<576x4xf32> to vector<64x4xf32>
    %55 = vector.extract_strided_slice %5 {offsets = [8, 0, 0], sizes = [1, 4, 128], strides = [1, 1, 1]} : vector<9x4x128xf32> to vector<1x4x128xf32>
    %56 = vector.shape_cast %55 : vector<1x4x128xf32> to vector<4x128xf32>
    %cst_32 = arith.constant dense<0.000000e+00> : vector<64x128xf32>
    %57 = tpu.matmul %54, %56, %cst_32 {dimension_numbers = #tpu.dot_dimension_numbers<[1], [0], [0], [1], [0, 0, 1, 1], [], []>} : vector<64x4xf32>, vector<4x128xf32>, vector<64x128xf32> -> vector<64x128xf32>
    %58 = arith.addf %53, %57 : vector<64x128xf32>
    %59 = vector.broadcast %11 : vector<1x128xf32> to vector<64x128xf32>
    %60 = arith.addf %58, %59 : vector<64x128xf32>
    %cst_33 = arith.constant 0.000000e+00 : f32
    %61 = vector.broadcast %cst_33 : f32 to vector<64x128xf32>
    %62 = arith.maximumf %60, %61 : vector<64x128xf32>
    %63 = vector.extract_strided_slice %10 {offsets = [1, 0], sizes = [1, 128], strides = [1, 1]} : vector<5x128xf32> to vector<1x128xf32>
    %cst_34 = arith.constant dense<0.000000e+00> : vector<576x128xf32>
    %64 = tpu.matmul %3, %62, %cst_34 {dimension_numbers = #tpu.dot_dimension_numbers<[1], [0], [0], [1], [0, 0, 1, 1], [], []>} : vector<576x64xf32>, vector<64x128xf32>, vector<576x128xf32> -> vector<576x128xf32>
    %cst_35 = arith.constant 0.000000e+00 : f32
    %65 = vector.broadcast %cst_35 : f32 to vector<64x128xf32>
    %66 = vector.extract_strided_slice %64 {offsets = [0, 0], sizes = [64, 128], strides = [1, 1]} : vector<576x128xf32> to vector<64x128xf32>
    %67 = vector.extract_strided_slice %6 {offsets = [0, 0, 0], sizes = [1, 128, 128], strides = [1, 1, 1]} : vector<9x128x128xf32> to vector<1x128x128xf32>
    %68 = vector.shape_cast %67 : vector<1x128x128xf32> to vector<128x128xf32>
    %cst_36 = arith.constant dense<0.000000e+00> : vector<64x128xf32>
    %69 = tpu.matmul %66, %68, %cst_36 {dimension_numbers = #tpu.dot_dimension_numbers<[1], [0], [0], [1], [0, 0, 1, 1], [], []>} : vector<64x128xf32>, vector<128x128xf32>, vector<64x128xf32> -> vector<64x128xf32>
    %70 = arith.addf %65, %69 : vector<64x128xf32>
    %71 = vector.extract_strided_slice %64 {offsets = [64, 0], sizes = [64, 128], strides = [1, 1]} : vector<576x128xf32> to vector<64x128xf32>
    %72 = vector.extract_strided_slice %6 {offsets = [1, 0, 0], sizes = [1, 128, 128], strides = [1, 1, 1]} : vector<9x128x128xf32> to vector<1x128x128xf32>
    %73 = vector.shape_cast %72 : vector<1x128x128xf32> to vector<128x128xf32>
    %cst_37 = arith.constant dense<0.000000e+00> : vector<64x128xf32>
    %74 = tpu.matmul %71, %73, %cst_37 {dimension_numbers = #tpu.dot_dimension_numbers<[1], [0], [0], [1], [0, 0, 1, 1], [], []>} : vector<64x128xf32>, vector<128x128xf32>, vector<64x128xf32> -> vector<64x128xf32>
    %75 = arith.addf %70, %74 : vector<64x128xf32>
    %76 = vector.extract_strided_slice %64 {offsets = [128, 0], sizes = [64, 128], strides = [1, 1]} : vector<576x128xf32> to vector<64x128xf32>
    %77 = vector.extract_strided_slice %6 {offsets = [2, 0, 0], sizes = [1, 128, 128], strides = [1, 1, 1]} : vector<9x128x128xf32> to vector<1x128x128xf32>
    %78 = vector.shape_cast %77 : vector<1x128x128xf32> to vector<128x128xf32>
    %cst_38 = arith.constant dense<0.000000e+00> : vector<64x128xf32>
    %79 = tpu.matmul %76, %78, %cst_38 {dimension_numbers = #tpu.dot_dimension_numbers<[1], [0], [0], [1], [0, 0, 1, 1], [], []>} : vector<64x128xf32>, vector<128x128xf32>, vector<64x128xf32> -> vector<64x128xf32>
    %80 = arith.addf %75, %79 : vector<64x128xf32>
    %81 = vector.extract_strided_slice %64 {offsets = [192, 0], sizes = [64, 128], strides = [1, 1]} : vector<576x128xf32> to vector<64x128xf32>
    %82 = vector.extract_strided_slice %6 {offsets = [3, 0, 0], sizes = [1, 128, 128], strides = [1, 1, 1]} : vector<9x128x128xf32> to vector<1x128x128xf32>
    %83 = vector.shape_cast %82 : vector<1x128x128xf32> to vector<128x128xf32>
    %cst_39 = arith.constant dense<0.000000e+00> : vector<64x128xf32>
    %84 = tpu.matmul %81, %83, %cst_39 {dimension_numbers = #tpu.dot_dimension_numbers<[1], [0], [0], [1], [0, 0, 1, 1], [], []>} : vector<64x128xf32>, vector<128x128xf32>, vector<64x128xf32> -> vector<64x128xf32>
    %85 = arith.addf %80, %84 : vector<64x128xf32>
    %86 = vector.extract_strided_slice %64 {offsets = [256, 0], sizes = [64, 128], strides = [1, 1]} : vector<576x128xf32> to vector<64x128xf32>
    %87 = vector.extract_strided_slice %6 {offsets = [4, 0, 0], sizes = [1, 128, 128], strides = [1, 1, 1]} : vector<9x128x128xf32> to vector<1x128x128xf32>
    %88 = vector.shape_cast %87 : vector<1x128x128xf32> to vector<128x128xf32>
    %cst_40 = arith.constant dense<0.000000e+00> : vector<64x128xf32>
    %89 = tpu.matmul %86, %88, %cst_40 {dimension_numbers = #tpu.dot_dimension_numbers<[1], [0], [0], [1], [0, 0, 1, 1], [], []>} : vector<64x128xf32>, vector<128x128xf32>, vector<64x128xf32> -> vector<64x128xf32>
    %90 = arith.addf %85, %89 : vector<64x128xf32>
    %91 = vector.extract_strided_slice %64 {offsets = [320, 0], sizes = [64, 128], strides = [1, 1]} : vector<576x128xf32> to vector<64x128xf32>
    %92 = vector.extract_strided_slice %6 {offsets = [5, 0, 0], sizes = [1, 128, 128], strides = [1, 1, 1]} : vector<9x128x128xf32> to vector<1x128x128xf32>
    %93 = vector.shape_cast %92 : vector<1x128x128xf32> to vector<128x128xf32>
    %cst_41 = arith.constant dense<0.000000e+00> : vector<64x128xf32>
    %94 = tpu.matmul %91, %93, %cst_41 {dimension_numbers = #tpu.dot_dimension_numbers<[1], [0], [0], [1], [0, 0, 1, 1], [], []>} : vector<64x128xf32>, vector<128x128xf32>, vector<64x128xf32> -> vector<64x128xf32>
    %95 = arith.addf %90, %94 : vector<64x128xf32>
    %96 = vector.extract_strided_slice %64 {offsets = [384, 0], sizes = [64, 128], strides = [1, 1]} : vector<576x128xf32> to vector<64x128xf32>
    %97 = vector.extract_strided_slice %6 {offsets = [6, 0, 0], sizes = [1, 128, 128], strides = [1, 1, 1]} : vector<9x128x128xf32> to vector<1x128x128xf32>
    %98 = vector.shape_cast %97 : vector<1x128x128xf32> to vector<128x128xf32>
    %cst_42 = arith.constant dense<0.000000e+00> : vector<64x128xf32>
    %99 = tpu.matmul %96, %98, %cst_42 {dimension_numbers = #tpu.dot_dimension_numbers<[1], [0], [0], [1], [0, 0, 1, 1], [], []>} : vector<64x128xf32>, vector<128x128xf32>, vector<64x128xf32> -> vector<64x128xf32>
    %100 = arith.addf %95, %99 : vector<64x128xf32>
    %101 = vector.extract_strided_slice %64 {offsets = [448, 0], sizes = [64, 128], strides = [1, 1]} : vector<576x128xf32> to vector<64x128xf32>
    %102 = vector.extract_strided_slice %6 {offsets = [7, 0, 0], sizes = [1, 128, 128], strides = [1, 1, 1]} : vector<9x128x128xf32> to vector<1x128x128xf32>
    %103 = vector.shape_cast %102 : vector<1x128x128xf32> to vector<128x128xf32>
    %cst_43 = arith.constant dense<0.000000e+00> : vector<64x128xf32>
    %104 = tpu.matmul %101, %103, %cst_43 {dimension_numbers = #tpu.dot_dimension_numbers<[1], [0], [0], [1], [0, 0, 1, 1], [], []>} : vector<64x128xf32>, vector<128x128xf32>, vector<64x128xf32> -> vector<64x128xf32>
    %105 = arith.addf %100, %104 : vector<64x128xf32>
    %106 = vector.extract_strided_slice %64 {offsets = [512, 0], sizes = [64, 128], strides = [1, 1]} : vector<576x128xf32> to vector<64x128xf32>
    %107 = vector.extract_strided_slice %6 {offsets = [8, 0, 0], sizes = [1, 128, 128], strides = [1, 1, 1]} : vector<9x128x128xf32> to vector<1x128x128xf32>
    %108 = vector.shape_cast %107 : vector<1x128x128xf32> to vector<128x128xf32>
    %cst_44 = arith.constant dense<0.000000e+00> : vector<64x128xf32>
    %109 = tpu.matmul %106, %108, %cst_44 {dimension_numbers = #tpu.dot_dimension_numbers<[1], [0], [0], [1], [0, 0, 1, 1], [], []>} : vector<64x128xf32>, vector<128x128xf32>, vector<64x128xf32> -> vector<64x128xf32>
    %110 = arith.addf %105, %109 : vector<64x128xf32>
    %111 = vector.broadcast %63 : vector<1x128xf32> to vector<64x128xf32>
    %112 = arith.addf %110, %111 : vector<64x128xf32>
    %cst_45 = arith.constant 0.000000e+00 : f32
    %113 = vector.broadcast %cst_45 : f32 to vector<64x128xf32>
    %114 = arith.maximumf %112, %113 : vector<64x128xf32>
    %115 = vector.extract_strided_slice %10 {offsets = [2, 0], sizes = [1, 128], strides = [1, 1]} : vector<5x128xf32> to vector<1x128xf32>
    %cst_46 = arith.constant dense<0.000000e+00> : vector<144x128xf32>
    %116 = tpu.matmul %4, %114, %cst_46 {dimension_numbers = #tpu.dot_dimension_numbers<[1], [0], [0], [1], [0, 0, 1, 1], [], []>} : vector<144x64xf32>, vector<64x128xf32>, vector<144x128xf32> -> vector<144x128xf32>
    %cst_47 = arith.constant 0.000000e+00 : f32
    %117 = vector.broadcast %cst_47 : f32 to vector<16x128xf32>
    %118 = vector.extract_strided_slice %116 {offsets = [0, 0], sizes = [16, 128], strides = [1, 1]} : vector<144x128xf32> to vector<16x128xf32>
    %119 = vector.extract_strided_slice %7 {offsets = [0, 0, 0], sizes = [1, 128, 128], strides = [1, 1, 1]} : vector<9x128x128xf32> to vector<1x128x128xf32>
    %120 = vector.shape_cast %119 : vector<1x128x128xf32> to vector<128x128xf32>
    %cst_48 = arith.constant dense<0.000000e+00> : vector<16x128xf32>
    %121 = tpu.matmul %118, %120, %cst_48 {dimension_numbers = #tpu.dot_dimension_numbers<[1], [0], [0], [1], [0, 0, 1, 1], [], []>} : vector<16x128xf32>, vector<128x128xf32>, vector<16x128xf32> -> vector<16x128xf32>
    %122 = arith.addf %117, %121 : vector<16x128xf32>
    %123 = vector.extract_strided_slice %116 {offsets = [16, 0], sizes = [16, 128], strides = [1, 1]} : vector<144x128xf32> to vector<16x128xf32>
    %124 = vector.extract_strided_slice %7 {offsets = [1, 0, 0], sizes = [1, 128, 128], strides = [1, 1, 1]} : vector<9x128x128xf32> to vector<1x128x128xf32>
    %125 = vector.shape_cast %124 : vector<1x128x128xf32> to vector<128x128xf32>
    %cst_49 = arith.constant dense<0.000000e+00> : vector<16x128xf32>
    %126 = tpu.matmul %123, %125, %cst_49 {dimension_numbers = #tpu.dot_dimension_numbers<[1], [0], [0], [1], [0, 0, 1, 1], [], []>} : vector<16x128xf32>, vector<128x128xf32>, vector<16x128xf32> -> vector<16x128xf32>
    %127 = arith.addf %122, %126 : vector<16x128xf32>
    %128 = vector.extract_strided_slice %116 {offsets = [32, 0], sizes = [16, 128], strides = [1, 1]} : vector<144x128xf32> to vector<16x128xf32>
    %129 = vector.extract_strided_slice %7 {offsets = [2, 0, 0], sizes = [1, 128, 128], strides = [1, 1, 1]} : vector<9x128x128xf32> to vector<1x128x128xf32>
    %130 = vector.shape_cast %129 : vector<1x128x128xf32> to vector<128x128xf32>
    %cst_50 = arith.constant dense<0.000000e+00> : vector<16x128xf32>
    %131 = tpu.matmul %128, %130, %cst_50 {dimension_numbers = #tpu.dot_dimension_numbers<[1], [0], [0], [1], [0, 0, 1, 1], [], []>} : vector<16x128xf32>, vector<128x128xf32>, vector<16x128xf32> -> vector<16x128xf32>
    %132 = arith.addf %127, %131 : vector<16x128xf32>
    %133 = vector.extract_strided_slice %116 {offsets = [48, 0], sizes = [16, 128], strides = [1, 1]} : vector<144x128xf32> to vector<16x128xf32>
    %134 = vector.extract_strided_slice %7 {offsets = [3, 0, 0], sizes = [1, 128, 128], strides = [1, 1, 1]} : vector<9x128x128xf32> to vector<1x128x128xf32>
    %135 = vector.shape_cast %134 : vector<1x128x128xf32> to vector<128x128xf32>
    %cst_51 = arith.constant dense<0.000000e+00> : vector<16x128xf32>
    %136 = tpu.matmul %133, %135, %cst_51 {dimension_numbers = #tpu.dot_dimension_numbers<[1], [0], [0], [1], [0, 0, 1, 1], [], []>} : vector<16x128xf32>, vector<128x128xf32>, vector<16x128xf32> -> vector<16x128xf32>
    %137 = arith.addf %132, %136 : vector<16x128xf32>
    %138 = vector.extract_strided_slice %116 {offsets = [64, 0], sizes = [16, 128], strides = [1, 1]} : vector<144x128xf32> to vector<16x128xf32>
    %139 = vector.extract_strided_slice %7 {offsets = [4, 0, 0], sizes = [1, 128, 128], strides = [1, 1, 1]} : vector<9x128x128xf32> to vector<1x128x128xf32>
    %140 = vector.shape_cast %139 : vector<1x128x128xf32> to vector<128x128xf32>
    %cst_52 = arith.constant dense<0.000000e+00> : vector<16x128xf32>
    %141 = tpu.matmul %138, %140, %cst_52 {dimension_numbers = #tpu.dot_dimension_numbers<[1], [0], [0], [1], [0, 0, 1, 1], [], []>} : vector<16x128xf32>, vector<128x128xf32>, vector<16x128xf32> -> vector<16x128xf32>
    %142 = arith.addf %137, %141 : vector<16x128xf32>
    %143 = vector.extract_strided_slice %116 {offsets = [80, 0], sizes = [16, 128], strides = [1, 1]} : vector<144x128xf32> to vector<16x128xf32>
    %144 = vector.extract_strided_slice %7 {offsets = [5, 0, 0], sizes = [1, 128, 128], strides = [1, 1, 1]} : vector<9x128x128xf32> to vector<1x128x128xf32>
    %145 = vector.shape_cast %144 : vector<1x128x128xf32> to vector<128x128xf32>
    %cst_53 = arith.constant dense<0.000000e+00> : vector<16x128xf32>
    %146 = tpu.matmul %143, %145, %cst_53 {dimension_numbers = #tpu.dot_dimension_numbers<[1], [0], [0], [1], [0, 0, 1, 1], [], []>} : vector<16x128xf32>, vector<128x128xf32>, vector<16x128xf32> -> vector<16x128xf32>
    %147 = arith.addf %142, %146 : vector<16x128xf32>
    %148 = vector.extract_strided_slice %116 {offsets = [96, 0], sizes = [16, 128], strides = [1, 1]} : vector<144x128xf32> to vector<16x128xf32>
    %149 = vector.extract_strided_slice %7 {offsets = [6, 0, 0], sizes = [1, 128, 128], strides = [1, 1, 1]} : vector<9x128x128xf32> to vector<1x128x128xf32>
    %150 = vector.shape_cast %149 : vector<1x128x128xf32> to vector<128x128xf32>
    %cst_54 = arith.constant dense<0.000000e+00> : vector<16x128xf32>
    %151 = tpu.matmul %148, %150, %cst_54 {dimension_numbers = #tpu.dot_dimension_numbers<[1], [0], [0], [1], [0, 0, 1, 1], [], []>} : vector<16x128xf32>, vector<128x128xf32>, vector<16x128xf32> -> vector<16x128xf32>
    %152 = arith.addf %147, %151 : vector<16x128xf32>
    %153 = vector.extract_strided_slice %116 {offsets = [112, 0], sizes = [16, 128], strides = [1, 1]} : vector<144x128xf32> to vector<16x128xf32>
    %154 = vector.extract_strided_slice %7 {offsets = [7, 0, 0], sizes = [1, 128, 128], strides = [1, 1, 1]} : vector<9x128x128xf32> to vector<1x128x128xf32>
    %155 = vector.shape_cast %154 : vector<1x128x128xf32> to vector<128x128xf32>
    %cst_55 = arith.constant dense<0.000000e+00> : vector<16x128xf32>
    %156 = tpu.matmul %153, %155, %cst_55 {dimension_numbers = #tpu.dot_dimension_numbers<[1], [0], [0], [1], [0, 0, 1, 1], [], []>} : vector<16x128xf32>, vector<128x128xf32>, vector<16x128xf32> -> vector<16x128xf32>
    %157 = arith.addf %152, %156 : vector<16x128xf32>
    %158 = vector.extract_strided_slice %116 {offsets = [128, 0], sizes = [16, 128], strides = [1, 1]} : vector<144x128xf32> to vector<16x128xf32>
    %159 = vector.extract_strided_slice %7 {offsets = [8, 0, 0], sizes = [1, 128, 128], strides = [1, 1, 1]} : vector<9x128x128xf32> to vector<1x128x128xf32>
    %160 = vector.shape_cast %159 : vector<1x128x128xf32> to vector<128x128xf32>
    %cst_56 = arith.constant dense<0.000000e+00> : vector<16x128xf32>
    %161 = tpu.matmul %158, %160, %cst_56 {dimension_numbers = #tpu.dot_dimension_numbers<[1], [0], [0], [1], [0, 0, 1, 1], [], []>} : vector<16x128xf32>, vector<128x128xf32>, vector<16x128xf32> -> vector<16x128xf32>
    %162 = arith.addf %157, %161 : vector<16x128xf32>
    %163 = vector.broadcast %115 : vector<1x128xf32> to vector<16x128xf32>
    %164 = arith.addf %162, %163 : vector<16x128xf32>
    %cst_57 = arith.constant 0.000000e+00 : f32
    %165 = vector.broadcast %cst_57 : f32 to vector<16x128xf32>
    %166 = arith.maximumf %164, %165 : vector<16x128xf32>
    %cst_58 = arith.constant dense<0.000000e+00> : vector<16x128xf32>
    %167 = tpu.matmul %166, %8, %cst_58 {dimension_numbers = #tpu.dot_dimension_numbers<[1], [0], [0], [1], [0, 0, 1, 1], [], []>} : vector<16x128xf32>, vector<128x128xf32>, vector<16x128xf32> -> vector<16x128xf32>
    %168 = vector.extract_strided_slice %10 {offsets = [3, 0], sizes = [1, 128], strides = [1, 1]} : vector<5x128xf32> to vector<1x128xf32>
    %169 = vector.broadcast %168 : vector<1x128xf32> to vector<16x128xf32>
    %170 = arith.addf %167, %169 : vector<16x128xf32>
    %cst_59 = arith.constant 0.000000e+00 : f32
    %171 = vector.broadcast %cst_59 : f32 to vector<16x128xf32>
    %172 = arith.maximumf %170, %171 : vector<16x128xf32>
    %cst_60 = arith.constant dense<0.000000e+00> : vector<128xf32>
    %173 = vector.multi_reduction <add>, %172, %cst_60 [0] : vector<16x128xf32> to vector<128xf32>
    %174 = vector.shape_cast %173 : vector<128xf32> to vector<1x128xf32>
    %cst_61 = arith.constant 1.600000e+01 : f32
    %175 = vector.broadcast %cst_61 : f32 to vector<1x128xf32>
    %176 = arith.divf %174, %175 : vector<1x128xf32>
    %cst_62 = arith.constant dense<0.000000e+00> : vector<1x128xf32>
    %177 = tpu.matmul %176, %9, %cst_62 {dimension_numbers = #tpu.dot_dimension_numbers<[1], [0], [0], [1], [0, 0, 1, 1], [], []>} : vector<1x128xf32>, vector<128x128xf32>, vector<1x128xf32> -> vector<1x128xf32>
    %178 = vector.extract_strided_slice %10 {offsets = [4, 0], sizes = [1, 128], strides = [1, 1]} : vector<5x128xf32> to vector<1x128xf32>
    %179 = arith.addf %177, %178 : vector<1x128xf32>
    %180 = vector.shape_cast %179 : vector<1x128xf32> to vector<1x1x128xf32>
    %c0_63 = arith.constant 0 : index
    %c0_64 = arith.constant 0 : index
    %c0_65 = arith.constant 0 : index
    %181 = vector.load %arg11[%c0_63, %c0_64, %c0_65] : memref<1x1x128xf32, #tpu.memory_space<vmem>>, vector<1x1x128xf32>
    tpu.vector_store %arg11[%c0_63, %c0_64, %c0_65], %180 {strides = array<i32>} : memref<1x1x128xf32, #tpu.memory_space<vmem>>, vector<1x1x128xf32>,
    return
  }
  func.func @transform_0(%arg0: i32) -> (i32, i32, i32) {
    %c0_i32 = arith.constant 0 : i32
    %c0_i32_0 = arith.constant 0 : i32
    %c0_i32_1 = arith.constant 0 : i32
    return %arg0, %c0_i32, %c0_i32_0 : i32, i32, i32
  }
  func.func @transform_1(%arg0: i32) -> (i32, i32) {
    %c0_i32 = arith.constant 0 : i32
    %c0_i32_0 = arith.constant 0 : i32
    %c0_i32_1 = arith.constant 0 : i32
    return %c0_i32, %c0_i32_0 : i32, i32
  }
  func.func @transform_2(%arg0: i32) -> (i32, i32) {
    %c0_i32 = arith.constant 0 : i32
    %c0_i32_0 = arith.constant 0 : i32
    %c0_i32_1 = arith.constant 0 : i32
    return %c0_i32, %c0_i32_0 : i32, i32
  }
  func.func @transform_3(%arg0: i32) -> (i32, i32) {
    %c0_i32 = arith.constant 0 : i32
    %c0_i32_0 = arith.constant 0 : i32
    %c0_i32_1 = arith.constant 0 : i32
    return %c0_i32, %c0_i32_0 : i32, i32
  }
  func.func @transform_4(%arg0: i32) -> (i32, i32, i32) {
    %c0_i32 = arith.constant 0 : i32
    %c0_i32_0 = arith.constant 0 : i32
    %c0_i32_1 = arith.constant 0 : i32
    %c0_i32_2 = arith.constant 0 : i32
    return %c0_i32, %c0_i32_0, %c0_i32_1 : i32, i32, i32
  }
  func.func @transform_5(%arg0: i32) -> (i32, i32, i32) {
    %c0_i32 = arith.constant 0 : i32
    %c0_i32_0 = arith.constant 0 : i32
    %c0_i32_1 = arith.constant 0 : i32
    %c0_i32_2 = arith.constant 0 : i32
    return %c0_i32, %c0_i32_0, %c0_i32_1 : i32, i32, i32
  }
  func.func @transform_6(%arg0: i32) -> (i32, i32, i32) {
    %c0_i32 = arith.constant 0 : i32
    %c0_i32_0 = arith.constant 0 : i32
    %c0_i32_1 = arith.constant 0 : i32
    %c0_i32_2 = arith.constant 0 : i32
    return %c0_i32, %c0_i32_0, %c0_i32_1 : i32, i32, i32
  }
  func.func @transform_7(%arg0: i32) -> (i32, i32) {
    %c0_i32 = arith.constant 0 : i32
    %c0_i32_0 = arith.constant 0 : i32
    %c0_i32_1 = arith.constant 0 : i32
    return %c0_i32, %c0_i32_0 : i32, i32
  }
  func.func @transform_8(%arg0: i32) -> (i32, i32) {
    %c0_i32 = arith.constant 0 : i32
    %c0_i32_0 = arith.constant 0 : i32
    %c0_i32_1 = arith.constant 0 : i32
    return %c0_i32, %c0_i32_0 : i32, i32
  }
  func.func @transform_9(%arg0: i32) -> (i32, i32) {
    %c0_i32 = arith.constant 0 : i32
    %c0_i32_0 = arith.constant 0 : i32
    %c0_i32_1 = arith.constant 0 : i32
    return %c0_i32, %c0_i32_0 : i32, i32
  }
  func.func @transform_10(%arg0: i32) -> (i32, i32, i32) {
    %c0_i32 = arith.constant 0 : i32
    %c0_i32_0 = arith.constant 0 : i32
    %c0_i32_1 = arith.constant 0 : i32
    return %arg0, %c0_i32, %c0_i32_0 : i32, i32, i32
  }
}

</mosaic_0001>

<bundles_post_ra>
// kernel: base_encoder_forward.1
= control target key start
LH: loop header
LB: loop body
LE: loop exit
PB: predicated region body
PF: predicated region fallthrough
CT: control target
= control target key end

     0   :  { %15 = vsyncpa [#allocation3], 0  ;;  %s9877_s0 = inlined_call_operand.vmem [shape: f32[2,256,4], index: 0, kind: input, shape index: {}]   ;;  %s9878_s1 = inlined_call_operand.vmem [shape: f32[576,256], index: 1, kind: input, shape index: {}]   ;;  %s9879_s2 = inlined_call_operand.vmem [shape: f32[576,64], index: 2, kind: input, shape index: {}]   ;;  %s9880_s3 = inlined_call_operand.vmem [shape: f32[144,64], index: 3, kind: input, shape index: {}]   ;;  %s9881_s4 = inlined_call_operand.vmem [shape: f32[9,4,128], index: 4, kind: input, shape index: {}]   ;;  %s9882_s5 = inlined_call_operand.vmem [shape: f32[9,128,128], index: 5, kind: input, shape index: {}]   ;;  %s9883_s6 = inlined_call_operand.vmem [shape: f32[9,128,128], index: 6, kind: input, shape index: {}]   ;;  %s9884_s7 = inlined_call_operand.vmem [shape: f32[128,128], index: 7, kind: input, shape index: {}]   ;;  %s9885_s8 = inlined_call_operand.vmem [shape: f32[128,128], index: 8, kind: input, shape index: {}]   ;;  %s9886_s9 = inlined_call_operand.vmem [shape: f32[5,128], index: 9, kind: input, shape index: {}]   ;;  %s9887_s10 = inlined_call_operand.hbm [shape: f32[2,1,128], index: 10, kind: output, shape index: {}]  }
   0x1   :  { %17 = vsyncpa [#allocation3 + $0x1], 0  ;;  %s7479_s13 = smov 0   ;;  %s7481_s14 = smov 0  }
   0x2   :  { %s7483_s15 = smov 0   ;;  %s7485_s16 = smov 0  }
   0x3 LB: > { %s7500_s17 = sadd.s32 4294967295, %s7419_s16   ;;  %s5445_s18 = sadd.s32 4294967294, %s7419_s16   ;;  %s7419_s16 = sphi %s7485_s16, %s9908_s16   ;;  %s7415_s15 = sphi %s7483_s15, %s9907_s15   ;;  %s7411_s14 = sphi %s7481_s14, %s9906_s14   ;;  %s7407_s13 = sphi %s7479_s13, %s9905_s13  }
   0x4   : > { %s7504_s19 = sadd.s32 1, %s7419_s16   ;;  %s245_s20 = sadd.s32 1, %s7415_s15 }
   0x5   : > { %s242_s21 = ssub.s32 %s7419_s16, %s7504_s19  ;;  %p255_p0 = scmp.ne.s32.totalorder %s7415_s15, %s7411_s14 }
   0x6   : > { %p243_p1 = scmp.eq.s32.totalorder %s242_s21, 0  ;;  %p256_p2 = scmp.eq.s32.totalorder %s7500_s17, 1 }
   0x7   : > { %p261_p3 = scmp.ne.s32.totalorder %s7411_s14, %s7407_s13  ;;  %p262_p4 = scmp.eq.s32.totalorder %s5445_s18, 1 }
   0x8   : > { %s7515_s22 = scalar_select %p243_p1, %s7415_s15, %s245_s20  }
   0x9   : > { %p7517_p5 = por %p256_p2, %p255_p0  ;;  %p7521_p6 = por %p262_p4, %p261_p3 }
   0xa   : > { %p5448_p7 = scmp.ge.s32.totalorder %s7419_s16, 1  ;;  %p315_p8 = scmp.lt.s32.totalorder %s7419_s16, 3 }
   0xc   : > { %p316_p9 = pnand %p5448_p7, %p315_p8 }
   0xe   : > { %319 = sbr.rel (%p316_p9) target bundleno = 2321 (0x911), region = 60 }
  0x13   : > { %p352_p10 = scmp.lt.s32.totalorder %s7500_s17, 1  ;;  %v390_v0 = vld [vmem:[%s9878_s1 + $0x8] sm:$0xff]  ;;  %v9888_v1 = vmov 0.0   ;;  %v389_v34 = vld [vmem:[%s9878_s1] sm:$0xff]  ;;  %v392_v35 = vld [vmem:[%s9878_s1 + $0x18] sm:$0xff]  ;;  %vm1403_vm0 = vcmask 1043456  }
  0x14   : > { %953 = vmatprep.subr.mxu0 %v9888_v1  ;;  %1017 = vmatprep.mubr.f32.mxu0 %v390_v0  ;;  %v391_v36 = vld [vmem:[%s9878_s1 + $0x10] sm:$0xff]  ;;  %v394_v37 = vld [vmem:[%s9878_s1 + $0x28] sm:$0xff]  ;;  %v393_v38 = vld [vmem:[%s9878_s1 + $0x20] sm:$0xff]  ;;  %vm1378_vm1 = vcmask 31744   ;;  %vm2644_vm2 = vcmask 523264   ;;  %vm7422_vm3 = vmmov 0  }
  0x15   : > { %s353_s27 = scalar_select %p352_p10, %s7500_s17, 1  ;;  %v396_v39 = vld [vmem:[%s9878_s1 + $0x38] sm:$0xff]  ;;  %v395_v40 = vld [vmem:[%s9878_s1 + $0x30] sm:$0xff]  ;;  %v398_v41 = vld [vmem:[%s9878_s1 + $0x48] sm:$0xff] }
  0x16   : > { %v397_v42 = vld [vmem:[%s9878_s1 + $0x40] sm:$0xff]  ;;  %v400_v43 = vld [vmem:[%s9878_s1 + $0x58] sm:$0xff]  ;;  %v399_v44 = vld [vmem:[%s9878_s1 + $0x50] sm:$0xff]  ;;  %s350_s29 = sand.u32 1, %s7411_s14   ;;  %s5622_s30 = sshll.u32 %s7500_s17, 4 }
  0x17   : > { %s5625_s28 = sshll.u32 %s353_s27, 8  ;;  %v402_v45 = vld [vmem:[%s9878_s1 + $0x68] sm:$0xff]  ;;  %v401_v46 = vld [vmem:[%s9878_s1 + $0x60] sm:$0xff]  ;;  %v404_v47 = vld [vmem:[%s9878_s1 + $0x78] sm:$0xff]  ;;  %s9842_s21 = scalar_lea.hbm %s9887_s10, %s5622_s30 }
  0x18   : > { %s7536_s11 = scalar_lea.vmem %s9877_s0, %s5625_s28  ;;  %v403_v48 = vld [vmem:[%s9878_s1 + $0x70] sm:$0xff]  ;;  %v406_v49 = vld [vmem:[%s9878_s1 + $0x88] sm:$0xff]  ;;  %v405_v50 = vld [vmem:[%s9878_s1 + $0x80] sm:$0xff]  ;;  %s5378_s25 = scalar_lea.sflag [#allocation3], %s350_s29 }
  0x19   : > { %v372_v2 = vld [vmem:[%s7536_s11 + $0x78] sm:$0xff]  ;;  %v371_v3 = vld [vmem:[%s7536_s11 + $0x70] sm:$0xff]  ;;  %v370_v4 = vld [vmem:[%s7536_s11 + $0x68] sm:$0xff]  ;;  %s7423_s27 = smov [#allocation2]  }
  0x1a   : > { %954 = vmatpush1.msra.mxu0 %v372_v2  ;;  %v369_v5 = vld [vmem:[%s7536_s11 + $0x60] sm:$0xff]  ;;  %v368_v6 = vld [vmem:[%s7536_s11 + $0x58] sm:$0xff]  ;;  %v367_v7 = vld [vmem:[%s7536_s11 + $0x50] sm:$0xff]  ;;  %s7363_s17 = sshll.u32 %s7423_s27, 4  ;;  %s7364_s17 = int_to_ptr.vmem [resolvable:$false] %s7363_s17 }
  0x1b   : > { %955 = vmatprep.subr.mxu0 %v9888_v1  ;;  %v366_v8 = vld [vmem:[%s7536_s11 + $0x48] sm:$0xff]  ;;  %v365_v9 = vld [vmem:[%s7536_s11 + $0x40] sm:$0xff]  ;;  %v364_v10 = vld [vmem:[%s7536_s11 + $0x38] sm:$0xff]  ;;  %s7365_s28 = scalar_lea.vmem %s7364_s17, 32 }
  0x1c   : > { %956 = vmatpush1.msra.mxu0 %v371_v3  ;;  %v363_v11 = vld [vmem:[%s7536_s11 + $0x30] sm:$0xff]  ;;  %v362_v12 = vld [vmem:[%s7536_s11 + $0x28] sm:$0xff]  ;;  %v361_v13 = vld [vmem:[%s7536_s11 + $0x20] sm:$0xff] }
  0x1d   : > { %957 = vmatprep.subr.mxu0 %v9888_v1  ;;  %v360_v14 = vld [vmem:[%s7536_s11 + $0x18] sm:$0xff]  ;;  %v359_v15 = vld [vmem:[%s7536_s11 + $0x10] sm:$0xff]  ;;  %v358_v16 = vld [vmem:[%s7536_s11 + $0x8] sm:$0xff] }
  0x1e   : > { %958 = vmatpush1.msra.mxu0 %v370_v4  ;;  %v357_v17 = vld [vmem:[%s7536_s11] sm:$0xff]  ;;  %v388_v18 = vld [vmem:[%s7536_s11 + $0xf8] sm:$0xff]  ;;  %v387_v19 = vld [vmem:[%s7536_s11 + $0xf0] sm:$0xff] }
  0x1f   : > { %959 = vmatprep.subr.mxu0 %v9888_v1  ;;  %v386_v20 = vld [vmem:[%s7536_s11 + $0xe8] sm:$0xff]  ;;  %v385_v21 = vld [vmem:[%s7536_s11 + $0xe0] sm:$0xff]  ;;  %v384_v22 = vld [vmem:[%s7536_s11 + $0xd8] sm:$0xff] }
  0x20   : > { %960 = vmatpush1.msra.mxu0 %v369_v5  ;;  %v383_v23 = vld [vmem:[%s7536_s11 + $0xd0] sm:$0xff]  ;;  %v382_v24 = vld [vmem:[%s7536_s11 + $0xc8] sm:$0xff]  ;;  %v381_v25 = vld [vmem:[%s7536_s11 + $0xc0] sm:$0xff] }
  0x21   : > { %961 = vmatprep.subr.mxu0 %v9888_v1  ;;  %v380_v26 = vld [vmem:[%s7536_s11 + $0xb8] sm:$0xff]  ;;  %v379_v27 = vld [vmem:[%s7536_s11 + $0xb0] sm:$0xff]  ;;  %v378_v28 = vld [vmem:[%s7536_s11 + $0xa8] sm:$0xff] }
  0x22   : > { %962 = vmatpush1.msra.mxu0 %v368_v6  ;;  %v377_v29 = vld [vmem:[%s7536_s11 + $0xa0] sm:$0xff]  ;;  %v376_v30 = vld [vmem:[%s7536_s11 + $0x98] sm:$0xff]  ;;  %v375_v31 = vld [vmem:[%s7536_s11 + $0x90] sm:$0xff] }
  0x23   : > { %963 = vmatprep.subr.mxu0 %v9888_v1  ;;  %v374_v32 = vld [vmem:[%s7536_s11 + $0x88] sm:$0xff]  ;;  %v373_v33 = vld [vmem:[%s7536_s11 + $0x80] sm:$0xff]  ;;  %v408_v51 = vld [vmem:[%s9878_s1 + $0x98] sm:$0xff]  ;;  %s351_s11 = scalar_lea.vmem [#allocation2], %s350_s29 }
  0x24   : > { %964 = vmatpush1.msra.mxu0 %v367_v7  ;;  %v407_v52 = vld [vmem:[%s9878_s1 + $0x90] sm:$0xff]  ;;  %v410_v53 = vld [vmem:[%s9878_s1 + $0xa8] sm:$0xff]  ;;  %v409_v54 = vld [vmem:[%s9878_s1 + $0xa0] sm:$0xff]  ;;  %s5390_s12 = sshll.u32 %s351_s11, 4  ;;  %s5391_s12 = int_to_ptr.vmem [resolvable:$true] %s5390_s12 }
  0x25   : > { %965 = vmatprep.subr.mxu0 %v9888_v1  ;;  %v412_v55 = vld [vmem:[%s9878_s1 + $0xb8] sm:$0xff]  ;;  %v411_v56 = vld [vmem:[%s9878_s1 + $0xb0] sm:$0xff]  ;;  %v414_v57 = vld [vmem:[%s9878_s1 + $0xc8] sm:$0xff]  ;;  %s7359_s26 = scalar_lea.vmem %s5391_s12, 16  ;;  %p7366_p0 = scmp.lt.s32.totalorder %s5391_s12, %s7364_s17 }
  0x26   : > { %966 = vmatpush1.msra.mxu0 %v366_v8  ;;  %v413_v58 = vld [vmem:[%s9878_s1 + $0xc0] sm:$0xff]  ;;  %v416_v59 = vld [vmem:[%s9878_s1 + $0xd8] sm:$0xff]  ;;  %v415_v60 = vld [vmem:[%s9878_s1 + $0xd0] sm:$0xff]  ;;  %p7360_p11 = scmp.ne.s32.totalorder %s5391_s12, %s7359_s26  ;;  %p7367_p1 = scmp.lt.s32.totalorder %s7365_s28, %s7359_s26 }
  0x27   : > { %967 = vmatprep.subr.mxu0 %v9888_v1  ;;  %v418_v61 = vld [vmem:[%s9878_s1 + $0xe8] sm:$0xff]  ;;  %v417_v62 = vld [vmem:[%s9878_s1 + $0xe0] sm:$0xff]  ;;  %v420_v63 = vld [vmem:[%s9878_s1 + $0xf8] sm:$0xff] }
  0x28   : > { %968 = vmatpush1.msra.mxu0 %v365_v9  ;;  %v419_v0 = vld [vmem:[%s9878_s1 + $0xf0] sm:$0xff]  ;;  %v422_v2 = vld [vmem:[%s9878_s1 + $0x108] sm:$0xff]  ;;  %v421_v3 = vld [vmem:[%s9878_s1 + $0x100] sm:$0xff]  ;;  %p7361_p12 = pnand %p7360_p11, %p7517_p5  ;;  %p7368_p2 = por %p7367_p1, %p7366_p0 }
  0x29   : > { %969 = vmatprep.subr.mxu0 %v9888_v1  ;;  %v424_v4 = vld [vmem:[%s9878_s1 + $0x118] sm:$0xff]  ;;  %v423_v5 = vld [vmem:[%s9878_s1 + $0x110] sm:$0xff]  ;;  %v426_v6 = vld [vmem:[%s9878_s1 + $0x128] sm:$0xff] }
  0x2a   : > { %970 = vmatpush1.msra.mxu0 %v364_v10  ;;  %v425_v7 = vld [vmem:[%s9878_s1 + $0x120] sm:$0xff]  ;;  %v428_v8 = vld [vmem:[%s9878_s1 + $0x138] sm:$0xff]  ;;  %v427_v9 = vld [vmem:[%s9878_s1 + $0x130] sm:$0xff]  ;;  %p7362_p13 = pneg %p7361_p12 }
  0x2b   : > { %971 = vmatprep.subr.mxu0 %v9888_v1  ;;  %v430_v10 = vld [vmem:[%s9878_s1 + $0x148] sm:$0xff] }
  0x2c   : > { %972 = vmatpush1.msra.mxu0 %v363_v11  ;;  %v429_v11 = vld [vmem:[%s9878_s1 + $0x140] sm:$0xff]  ;;  %p7369_p3 = pnand %p7368_p2, %p7362_p13 }
  0x2d   : > { %973 = vmatprep.subr.mxu0 %v9888_v1 }
  0x2e   : > { %974 = vmatpush1.msra.mxu0 %v362_v12  ;;  %v432_v12 = vld [vmem:[%s9878_s1 + $0x158] sm:$0xff] }
  0x2f   : > { %975 = vmatprep.subr.mxu0 %v9888_v1 }
  0x30   : > { %976 = vmatpush1.msra.mxu0 %v361_v13  ;;  %v431_v13 = vld [vmem:[%s9878_s1 + $0x150] sm:$0xff] }
  0x31   : > { %977 = vmatprep.subr.mxu0 %v9888_v1 }
  0x32   : > { %978 = vmatpush1.msra.mxu0 %v360_v14  ;;  %v434_v14 = vld [vmem:[%s9878_s1 + $0x168] sm:$0xff] }
  0x33   : > { %979 = vmatprep.subr.mxu0 %v9888_v1 }
  0x34   : > { %980 = vmatpush1.msra.mxu0 %v359_v15  ;;  %v433_v15 = vld [vmem:[%s9878_s1 + $0x160] sm:$0xff] }
  0x35   : > { %981 = vmatprep.subr.mxu0 %v9888_v1 }
  0x36   : > { %982 = vmatpush1.msra.mxu0 %v358_v16  ;;  %v436_v16 = vld [vmem:[%s9878_s1 + $0x178] sm:$0xff] }
  0x37   : > { %983 = vmatprep.subr.mxu0 %v9888_v1 }
  0x38   : > { %984 = vmatpush1.msra.mxu0 %v357_v17  ;;  %v435_v17 = vld [vmem:[%s9878_s1 + $0x170] sm:$0xff] }
  0x39   : > { %985 = vmatprep.subr.mxu0 %v9888_v1 }
  0x3a   : > { %986 = vmatpush2.msra.mxu0 %v388_v18  ;;  %v438_v18 = vld [vmem:[%s9878_s1 + $0x188] sm:$0xff] }
  0x3b   : > { %987 = vmatprep.subr.mxu0 %v9888_v1 }
  0x3c   : > { %988 = vmatpush2.msra.mxu0 %v387_v19  ;;  %v437_v19 = vld [vmem:[%s9878_s1 + $0x180] sm:$0xff] }
  0x3d   : > { %989 = vmatprep.subr.mxu0 %v9888_v1 }
  0x3e   : > { %990 = vmatpush2.msra.mxu0 %v386_v20  ;;  %v440_v20 = vld [vmem:[%s9878_s1 + $0x198] sm:$0xff] }
  0x3f   : > { %991 = vmatprep.subr.mxu0 %v9888_v1 }
  0x40   : > { %992 = vmatpush2.msra.mxu0 %v385_v21  ;;  %v439_v21 = vld [vmem:[%s9878_s1 + $0x190] sm:$0xff] }
  0x41   : > { %993 = vmatprep.subr.mxu0 %v9888_v1 }
  0x42   : > { %994 = vmatpush2.msra.mxu0 %v384_v22  ;;  %v442_v22 = vld [vmem:[%s9878_s1 + $0x1a8] sm:$0xff] }
  0x43   : > { %995 = vmatprep.subr.mxu0 %v9888_v1 }
  0x44   : > { %996 = vmatpush2.msra.mxu0 %v383_v23  ;;  %v624_v23 = vld [vmem:[%s9881_s4 + $0x4] sm:$0xf] }
  0x45   : > { %997 = vmatprep.subr.mxu0 %v9888_v1  ;;  %6226 = vmatprep.subr.msk.mxu1 %vm1403_vm0, %v624_v23 }
  0x46   : > { %998 = vmatpush2.msra.mxu0 %v382_v24  ;;  %6227 = vmatpush3.msk.msra.mxu1 %vm1403_vm0, %v624_v23  ;;  %v441_v24 = vld [vmem:[%s9878_s1 + $0x1a0] sm:$0xff]  ;;  %v496_v23 = vld [vmem:[%s9878_s1 + $0x358] sm:$0xff] }
  0x47   : > { %999 = vmatprep.subr.mxu0 %v9888_v1 }
  0x48   : > { %1000 = vmatpush2.msra.mxu0 %v381_v25  ;;  %v444_v25 = vld [vmem:[%s9878_s1 + $0x1b8] sm:$0xff] }
  0x49   : > { %1001 = vmatprep.subr.mxu0 %v9888_v1 }
  0x4a   : > { %1002 = vmatpush2.msra.mxu0 %v380_v26  ;;  %v443_v26 = vld [vmem:[%s9878_s1 + $0x1b0] sm:$0xff] }
  0x4b   : > { %1003 = vmatprep.subr.mxu0 %v9888_v1 }
  0x4c   : > { %1004 = vmatpush2.msra.mxu0 %v379_v27  ;;  %v446_v27 = vld [vmem:[%s9878_s1 + $0x1c8] sm:$0xff] }
  0x4d   : > { %1005 = vmatprep.subr.mxu0 %v9888_v1 }
  0x4e   : > { %1006 = vmatpush2.msra.mxu0 %v378_v28  ;;  %v445_v28 = vld [vmem:[%s9878_s1 + $0x1c0] sm:$0xff] }
  0x4f   : > { %1007 = vmatprep.subr.mxu0 %v9888_v1 }
  0x50   : > { %1008 = vmatpush2.msra.mxu0 %v377_v29  ;;  %v448_v29 = vld [vmem:[%s9878_s1 + $0x1d8] sm:$0xff] }
  0x51   : > { %1009 = vmatprep.subr.mxu0 %v9888_v1 }
  0x52   : > { %1010 = vmatpush2.msra.mxu0 %v376_v30  ;;  %v447_v30 = vld [vmem:[%s9878_s1 + $0x1d0] sm:$0xff] }
  0x53   : > { %1011 = vmatprep.subr.mxu0 %v9888_v1 }
  0x54   : > { %1012 = vmatpush2.msra.mxu0 %v375_v31  ;;  %v450_v31 = vld [vmem:[%s9878_s1 + $0x1e8] sm:$0xff] }
  0x55   : > { %1013 = vmatprep.subr.mxu0 %v9888_v1 }
  0x56   : > { %1014 = vmatpush2.msra.mxu0 %v374_v32  ;;  %v449_v32 = vld [vmem:[%s9878_s1 + $0x1e0] sm:$0xff] }
  0x57   : > { %1015 = vmatprep.subr.mxu0 %v9888_v1 }
  0x58   : > { %1016 = vmatpush2.msra.mxu0 %v373_v33  ;;  %v452_v33 = vld [vmem:[%s9878_s1 + $0x1f8] sm:$0xff] }
  0x59   : > { %1018 = vmatmul.mubr.f32.vlgmr.msra.gmra.mxu0 %v389_v34  ;;  %v451_v34 = vld [vmem:[%s9878_s1 + $0x1f0] sm:$0xff] }
  0x5a   : > { %1022 = vmatprep.mubr.f32.mxu0 %v392_v35  ;;  %v454_v35 = vld [vmem:[%s9878_s1 + $0x208] sm:$0xff] }
  0x5d   : > { %1023 = vmatmul.mubr.f32.gmra.mxu0 %v391_v36  ;;  %v453_v36 = vld [vmem:[%s9878_s1 + $0x200] sm:$0xff] }
  0x5e   : > { %1027 = vmatprep.mubr.f32.mxu0 %v394_v37  ;;  %v456_v37 = vld [vmem:[%s9878_s1 + $0x218] sm:$0xff] }
  0x61   : > { %1028 = vmatmul.mubr.f32.gmra.mxu0 %v393_v38  ;;  %v7807_v38 = vld [vmem:[%s9881_s4] sm:$0xf] }
  0x62   : > { %1032 = vmatprep.mubr.f32.mxu0 %v396_v39  ;;  %6240 = vmatprep.subr.msk.mxu1 %vm1403_vm0, %v7807_v38  ;;  %v455_v39 = vld [vmem:[%s9878_s1 + $0x210] sm:$0xff] }
  0x65   : > { %1033 = vmatmul.mubr.f32.gmra.mxu0 %v395_v40  ;;  %v458_v40 = vld [vmem:[%s9878_s1 + $0x228] sm:$0xff] }
  0x66   : > { %1037 = vmatprep.mubr.f32.mxu0 %v398_v41  ;;  %v457_v41 = vld [vmem:[%s9878_s1 + $0x220] sm:$0xff] }
  0x69   : > { %1038 = vmatmul.mubr.f32.gmra.mxu0 %v397_v42  ;;  %v460_v42 = vld [vmem:[%s9878_s1 + $0x238] sm:$0xff] }
  0x6a   : > { %1042 = vmatprep.mubr.f32.mxu0 %v400_v43  ;;  %v459_v43 = vld [vmem:[%s9878_s1 + $0x230] sm:$0xff] }
  0x6d   : > { %1043 = vmatmul.mubr.f32.gmra.mxu0 %v399_v44  ;;  %v462_v44 = vld [vmem:[%s9878_s1 + $0x248] sm:$0xff] }
  0x6e   : > { %1047 = vmatprep.mubr.f32.mxu0 %v402_v45  ;;  %v461_v45 = vld [vmem:[%s9878_s1 + $0x240] sm:$0xff] }
  0x71   : > { %1048 = vmatmul.mubr.f32.gmra.mxu0 %v401_v46  ;;  %v464_v46 = vld [vmem:[%s9878_s1 + $0x258] sm:$0xff] }
  0x72   : > { %1052 = vmatprep.mubr.f32.mxu0 %v404_v47  ;;  %v463_v47 = vld [vmem:[%s9878_s1 + $0x250] sm:$0xff] }
  0x75   : > { %1053 = vmatmul.mubr.f32.gmra.mxu0 %v403_v48  ;;  %v466_v48 = vld [vmem:[%s9878_s1 + $0x268] sm:$0xff] }
  0x76   : > { %1057 = vmatprep.mubr.f32.mxu0 %v406_v49  ;;  %v465_v49 = vld [vmem:[%s9878_s1 + $0x260] sm:$0xff] }
  0x79   : > { %1058 = vmatmul.mubr.f32.gmra.mxu0 %v405_v50  ;;  %v468_v50 = vld [vmem:[%s9878_s1 + $0x278] sm:$0xff] }
  0x7a   : > { %1062 = vmatprep.mubr.f32.mxu0 %v408_v51  ;;  %v467_v51 = vld [vmem:[%s9878_s1 + $0x270] sm:$0xff] }
  0x7d   : > { %1063 = vmatmul.mubr.f32.gmra.mxu0 %v407_v52  ;;  %v470_v52 = vld [vmem:[%s9878_s1 + $0x288] sm:$0xff] }
  0x7e   : > { %1067 = vmatprep.mubr.f32.mxu0 %v410_v53  ;;  %v469_v53 = vld [vmem:[%s9878_s1 + $0x280] sm:$0xff] }
  0x81   : > { %1068 = vmatmul.mubr.f32.gmra.mxu0 %v409_v54  ;;  %v472_v54 = vld [vmem:[%s9878_s1 + $0x298] sm:$0xff] }
  0x82   : > { %1072 = vmatprep.mubr.f32.mxu0 %v412_v55  ;;  %v471_v55 = vld [vmem:[%s9878_s1 + $0x290] sm:$0xff] }
  0x85   : > { %1073 = vmatmul.mubr.f32.gmra.mxu0 %v411_v56  ;;  %v474_v56 = vld [vmem:[%s9878_s1 + $0x2a8] sm:$0xff] }
  0x86   : > { %1077 = vmatprep.mubr.f32.mxu0 %v414_v57  ;;  %v473_v57 = vld [vmem:[%s9878_s1 + $0x2a0] sm:$0xff] }
  0x89   : > { %1078 = vmatmul.mubr.f32.gmra.mxu0 %v413_v58  ;;  %v476_v58 = vld [vmem:[%s9878_s1 + $0x2b8] sm:$0xff] }
  0x8a   : > { %1082 = vmatprep.mubr.f32.mxu0 %v416_v59  ;;  %v475_v59 = vld [vmem:[%s9878_s1 + $0x2b0] sm:$0xff] }
  0x8d   : > { %1083 = vmatmul.mubr.f32.gmra.mxu0 %v415_v60  ;;  %v478_v60 = vld [vmem:[%s9878_s1 + $0x2c8] sm:$0xff] }
  0x8e   : > { %1087 = vmatprep.mubr.f32.mxu0 %v418_v61  ;;  %v477_v61 = vld [vmem:[%s9878_s1 + $0x2c0] sm:$0xff] }
  0x91   : > { %1088 = vmatmul.mubr.f32.gmra.mxu0 %v417_v62  ;;  %v480_v62 = vld [vmem:[%s9878_s1 + $0x2d8] sm:$0xff] }
  0x92   : > { %1092 = vmatprep.mubr.f32.mxu0 %v420_v63  ;;  %v479_v63 = vld [vmem:[%s9878_s1 + $0x2d0] sm:$0xff] }
  0x95   : > { %1093 = vmatmul.mubr.f32.gmra.mxu0 %v419_v0  ;;  %v482_v0 = vld [vmem:[%s9878_s1 + $0x2e8] sm:$0xff] }
  0x96   : > { %1097 = vmatprep.mubr.f32.mxu0 %v422_v2  ;;  %v481_v2 = vld [vmem:[%s9878_s1 + $0x2e0] sm:$0xff] }
  0x99   : > { %1098 = vmatmul.mubr.f32.gmra.mxu0 %v421_v3  ;;  %v484_v3 = vld [vmem:[%s9878_s1 + $0x2f8] sm:$0xff] }
  0x9a   : > { %1102 = vmatprep.mubr.f32.mxu0 %v424_v4  ;;  %v483_v4 = vld [vmem:[%s9878_s1 + $0x2f0] sm:$0xff] }
  0x9d   : > { %1103 = vmatmul.mubr.f32.gmra.mxu0 %v423_v5  ;;  %v486_v5 = vld [vmem:[%s9878_s1 + $0x308] sm:$0xff] }
  0x9e   : > { %1107 = vmatprep.mubr.f32.mxu0 %v426_v6  ;;  %v485_v6 = vld [vmem:[%s9878_s1 + $0x300] sm:$0xff] }
  0xa1   : > { %1108 = vmatmul.mubr.f32.gmra.mxu0 %v425_v7  ;;  %v488_v7 = vld [vmem:[%s9878_s1 + $0x318] sm:$0xff] }
  0xa2   : > { %1112 = vmatprep.mubr.f32.mxu0 %v428_v8 }
  0xa5   : > { %1113 = vmatmul.mubr.f32.gmra.mxu0 %v427_v9  ;;  %v487_v9 = vld [vmem:[%s9878_s1 + $0x310] sm:$0xff] }
  0xa6   : > { %1117 = vmatprep.mubr.f32.mxu0 %v430_v10 }
  0xa9   : > { %1118 = vmatmul.mubr.f32.gmra.mxu0 %v429_v11  ;;  %v490_v11 = vld [vmem:[%s9878_s1 + $0x328] sm:$0xff] }
  0xaa   : > { %1122 = vmatprep.mubr.f32.mxu0 %v432_v12 }
  0xad   : > { %1123 = vmatmul.mubr.f32.gmra.mxu0 %v431_v13  ;;  %v489_v13 = vld [vmem:[%s9878_s1 + $0x320] sm:$0xff] }
  0xae   : > { %1127 = vmatprep.mubr.f32.mxu0 %v434_v14 }
  0xb1   : > { %1128 = vmatmul.mubr.f32.gmra.mxu0 %v433_v15  ;;  %v492_v15 = vld [vmem:[%s9878_s1 + $0x338] sm:$0xff] }
  0xb2   : > { %1132 = vmatprep.mubr.f32.mxu0 %v436_v16 }
  0xb5   : > { %1133 = vmatmul.mubr.f32.gmra.mxu0 %v435_v17  ;;  %v491_v17 = vld [vmem:[%s9878_s1 + $0x330] sm:$0xff] }
  0xb6   : > { %1137 = vmatprep.mubr.f32.mxu0 %v438_v18 }
  0xb9   : > { %1138 = vmatmul.mubr.f32.gmra.mxu0 %v437_v19  ;;  %v494_v19 = vld [vmem:[%s9878_s1 + $0x348] sm:$0xff] }
  0xba   : > { %1142 = vmatprep.mubr.f32.mxu0 %v440_v20 }
  0xbd   : > { %1143 = vmatmul.mubr.f32.gmra.mxu0 %v439_v21  ;;  %v493_v21 = vld [vmem:[%s9878_s1 + $0x340] sm:$0xff] }
  0xbe   : > { %1147 = vmatprep.mubr.f32.mxu0 %v442_v22 }
  0xc1   : > { %1148 = vmatmul.mubr.f32.gmra.mxu0 %v441_v24 }
  0xc2   : > { %1152 = vmatprep.mubr.f32.mxu0 %v444_v25  ;;  %v495_v25 = vld [vmem:[%s9878_s1 + $0x350] sm:$0xff] }
  0xc5   : > { %1153 = vmatmul.mubr.f32.gmra.mxu0 %v443_v26 }
  0xc6   : > { %1157 = vmatprep.mubr.f32.mxu0 %v446_v27  ;;  %v498_v27 = vld [vmem:[%s9878_s1 + $0x368] sm:$0xff] }
  0xc9   : > { %1158 = vmatmul.mubr.f32.gmra.mxu0 %v445_v28 }
  0xca   : > { %1162 = vmatprep.mubr.f32.mxu0 %v448_v29  ;;  %v497_v29 = vld [vmem:[%s9878_s1 + $0x360] sm:$0xff] }
  0xcd   : > { %1163 = vmatmul.mubr.f32.gmra.mxu0 %v447_v30 }
  0xce   : > { %1167 = vmatprep.mubr.f32.mxu0 %v450_v31  ;;  %v500_v31 = vld [vmem:[%s9878_s1 + $0x378] sm:$0xff] }
  0xd1   : > { %1168 = vmatmul.mubr.f32.gmra.mxu0 %v449_v32 }
  0xd2   : > { %1172 = vmatprep.mubr.f32.mxu0 %v452_v33  ;;  %v499_v33 = vld [vmem:[%s9878_s1 + $0x370] sm:$0xff] }
  0xd5   : > { %1173 = vmatmul.mubr.f32.gmra.mxu0 %v451_v34 }
  0xd6   : > { %1177 = vmatprep.mubr.f32.mxu0 %v454_v35  ;;  %v502_v35 = vld [vmem:[%s9878_s1 + $0x388] sm:$0xff] }
  0xd9   : > { %1178 = vmatmul.mubr.f32.gmra.mxu0 %v453_v36 }
  0xda   : > { %1182 = vmatprep.mubr.f32.mxu0 %v456_v37  ;;  %v501_v37 = vld [vmem:[%s9878_s1 + $0x380] sm:$0xff] }
  0xdd   : > { %1183 = vmatmul.mubr.f32.gmra.mxu0 %v455_v39 }
  0xde   : > { %1187 = vmatprep.mubr.f32.mxu0 %v458_v40  ;;  %v504_v40 = vld [vmem:[%s9878_s1 + $0x398] sm:$0xff] }
  0xe1   : > { %1188 = vmatmul.mubr.f32.gmra.mxu0 %v457_v41 }
  0xe2   : > { %1192 = vmatprep.mubr.f32.mxu0 %v460_v42  ;;  %v503_v42 = vld [vmem:[%s9878_s1 + $0x390] sm:$0xff] }
  0xe5   : > { %1193 = vmatmul.mubr.f32.gmra.mxu0 %v459_v43 }
  0xe6   : > { %1197 = vmatprep.mubr.f32.mxu0 %v462_v44  ;;  %v506_v44 = vld [vmem:[%s9878_s1 + $0x3a8] sm:$0xff] }
  0xe9   : > { %1198 = vmatmul.mubr.f32.gmra.mxu0 %v461_v45 }
  0xea   : > { %1202 = vmatprep.mubr.f32.mxu0 %v464_v46  ;;  %v625_v46 = vld [vmem:[%s9881_s4 + $0x8] sm:$0xf] }
  0xed   : > { %1203 = vmatmul.mubr.f32.gmra.mxu0 %v463_v47  ;;  %v505_v47 = vld [vmem:[%s9878_s1 + $0x3a0] sm:$0xff] }
  0xee   : > { %1207 = vmatprep.mubr.f32.mxu0 %v466_v48 }
  0xf1   : > { %1208 = vmatmul.mubr.f32.gmra.mxu0 %v465_v49  ;;  %v508_v49 = vld [vmem:[%s9878_s1 + $0x3b8] sm:$0xff] }
  0xf2   : > { %1212 = vmatprep.mubr.f32.mxu0 %v468_v50 }
  0xf5   : > { %1213 = vmatmul.mubr.f32.gmra.mxu0 %v467_v51  ;;  %v507_v51 = vld [vmem:[%s9878_s1 + $0x3b0] sm:$0xff] }
  0xf6   : > { %1217 = vmatprep.mubr.f32.mxu0 %v470_v52 }
  0xf9   : > { %1218 = vmatmul.mubr.f32.gmra.mxu0 %v469_v53  ;;  %v510_v53 = vld [vmem:[%s9878_s1 + $0x3c8] sm:$0xff] }
  0xfa   : > { %1222 = vmatprep.mubr.f32.mxu0 %v472_v54 }
  0xfd   : > { %1223 = vmatmul.mubr.f32.gmra.mxu0 %v471_v55 }
  0xfe   : > { %1227 = vmatprep.mubr.f32.mxu0 %v474_v56  ;;  %v512_v56 = vld [vmem:[%s9878_s1 + $0x3d8] sm:$0xff] }
 0x101   : > { %1228 = vmatmul.mubr.f32.gmra.mxu0 %v473_v57 }
 0x102   : > { %1232 = vmatprep.mubr.f32.mxu0 %v476_v58  ;;  %v511_v58 = vld [vmem:[%s9878_s1 + $0x3d0] sm:$0xff] }
 0x105   : > { %1233 = vmatmul.mubr.f32.gmra.mxu0 %v475_v59 }
 0x106   : > { %1237 = vmatprep.mubr.f32.mxu0 %v478_v60  ;;  %v514_v60 = vld [vmem:[%s9878_s1 + $0x3e8] sm:$0xff] }
 0x109   : > { %1238 = vmatmul.mubr.f32.gmra.mxu0 %v477_v61 }
 0x10a   : > { %1242 = vmatprep.mubr.f32.mxu0 %v480_v62  ;;  %v513_v62 = vld [vmem:[%s9878_s1 + $0x3e0] sm:$0xff] }
 0x10d   : > { %1243 = vmatmul.mubr.f32.gmra.mxu0 %v479_v63 }
 0x10e   : > { %1247 = vmatprep.mubr.f32.mxu0 %v482_v0  ;;  %v516_v0 = vld [vmem:[%s9878_s1 + $0x3f8] sm:$0xff] }
 0x111   : > { %1248 = vmatmul.mubr.f32.gmra.mxu0 %v481_v2 }
 0x112   : > { %1252 = vmatprep.mubr.f32.mxu0 %v484_v3  ;;  %v515_v3 = vld [vmem:[%s9878_s1 + $0x3f0] sm:$0xff] }
 0x115   : > { %1253 = vmatmul.mubr.f32.gmra.mxu0 %v483_v4 }
 0x116   : > { %1257 = vmatprep.mubr.f32.mxu0 %v486_v5  ;;  %v518_v5 = vld [vmem:[%s9878_s1 + $0x408] sm:$0xff] }
 0x119   : > { %v7907_v8 = vpop.f32.mrf.mxu0  ;;  %1258 = vmatmul.mubr.f32.gmra.mxu0 %v485_v6 }
 0x11a   : > { %1262 = vmatprep.mubr.f32.mxu0 %v488_v7  ;;  %v517_v7 = vld [vmem:[%s9878_s1 + $0x400] sm:$0xff] }
 0x11b   : > { %v1021_v10 = vpop.f32.mrf.mxu0 }
 0x11c   : > { %v520_v10 = vld [vmem:[%s9878_s1 + $0x418] sm:$0xff] }
 0x11d   : > { %v7915_v12 = vpop.f32.mrf.mxu0  ;;  %1263 = vmatmul.mubr.f32.gmra.mxu0 %v487_v9 }
 0x11e   : > { %1267 = vmatprep.mubr.f32.mxu0 %v490_v11 }
 0x11f   : > { %v1026_v14 = vpop.f32.mrf.mxu0 }
 0x120   : > { %v519_v14 = vld [vmem:[%s9878_s1 + $0x410] sm:$0xff] }
 0x121   : > { %v7923_v16 = vpop.f32.mrf.mxu0  ;;  %1268 = vmatmul.mubr.f32.gmra.mxu0 %v489_v13  ;;  %v626_v13 = vld [vmem:[%s9881_s4 + $0xc] sm:$0xf] }
 0x122   : > { %1272 = vmatprep.mubr.f32.mxu0 %v492_v15 }
 0x123   : > { %v1031_v18 = vpop.f32.mrf.mxu0 }
 0x125   : > { %v7931_v20 = vpop.f32.mrf.mxu0  ;;  %1273 = vmatmul.mubr.f32.gmra.mxu0 %v491_v17 }
 0x126   : > { %1277 = vmatprep.mubr.f32.mxu0 %v494_v19 }
 0x127   : > { %v1036_v22 = vpop.f32.mrf.mxu0 }
 0x128   : > { %v526_v22 = vld [vmem:[%s9878_s1 + $0x448] sm:$0xff] }
 0x129   : > { %v7939_v24 = vpop.f32.mrf.mxu0  ;;  %1278 = vmatmul.mubr.f32.gmra.mxu0 %v493_v21 }
 0x12a   : > { %1282 = vmatprep.mubr.f32.mxu0 %v496_v23 }
 0x12b   : > { %v1041_v26 = vpop.f32.mrf.mxu0 }
 0x12c   : > { %v528_v26 = vld [vmem:[%s9878_s1 + $0x458] sm:$0xff] }
 0x12d   : > { %v7947_v28 = vpop.f32.mrf.mxu0  ;;  %1283 = vmatmul.mubr.f32.gmra.mxu0 %v495_v25 }
 0x12e   : > { %1287 = vmatprep.mubr.f32.mxu0 %v498_v27 }
 0x12f   : > { %v1046_v30 = vpop.f32.mrf.mxu0 }
 0x131   : > { %v7955_v32 = vpop.f32.mrf.mxu0  ;;  %1288 = vmatmul.mubr.f32.gmra.mxu0 %v497_v29  ;;  %v527_v29 = vld [vmem:[%s9878_s1 + $0x450] sm:$0xff] }
 0x132   : > { %1292 = vmatprep.mubr.f32.mxu0 %v500_v31  ;;  %v530_v31 = vld [vmem:[%s9878_s1 + $0x468] sm:$0xff] }
 0x133   : > { %v1051_v34 = vpop.f32.mrf.mxu0 }
 0x135   : > { %v7963_v36 = vpop.f32.mrf.mxu0  ;;  %1293 = vmatmul.mubr.f32.gmra.mxu0 %v499_v33  ;;  %v529_v33 = vld [vmem:[%s9878_s1 + $0x460] sm:$0xff] }
 0x136   : > { %1297 = vmatprep.mubr.f32.mxu0 %v502_v35  ;;  %v532_v35 = vld [vmem:[%s9878_s1 + $0x478] sm:$0xff] }
 0x137   : > { %v1056_v39 = vpop.f32.mrf.mxu0 }
 0x139   : > { %v1059_v41 = vpop.f32.mrf.mxu0  ;;  %1298 = vmatmul.mubr.f32.gmra.mxu0 %v501_v37  ;;  %v531_v37 = vld [vmem:[%s9878_s1 + $0x470] sm:$0xff] }
 0x13a   : > { %6228 = vmatprep.mubr.msk.f32.mxu1 %vm1378_vm1, %v1059_v41  ;;  %1302 = vmatprep.mubr.f32.mxu0 %v504_v40 }
 0x13b   : > { %v1061_v43 = vpop.f32.mrf.mxu0 }
 0x13d   : > { %v1064_v45 = vpop.f32.mrf.mxu0  ;;  %1303 = vmatmul.mubr.f32.gmra.mxu0 %v503_v42 }
 0x13e   : > { %6229 = vmatmul.mubr.msk.f32.vlgmr.msra.gmra.mxu1 %vm1378_vm1, %v1064_v45  ;;  %1307 = vmatprep.mubr.f32.mxu0 %v506_v44  ;;  %v628_v45 = vld [vmem:[%s9881_s4 + $0x14] sm:$0xf] }
 0x13f   : > { %v1066_v48 = vpop.f32.mrf.mxu0  ;;  %6241 = vmatpush3.msk.msra.mxu1 %vm1403_vm0, %v7807_v38  ;;  %v509_v38 = vld [vmem:[%s9878_s1 + $0x3c0] sm:$0xff] }
 0x140   : > { %6254 = vmatprep.subr.msk.mxu1 %vm1403_vm0, %v625_v46 }
 0x141   : > { %v1069_v50 = vpop.f32.mrf.mxu0  ;;  %1308 = vmatmul.mubr.f32.gmra.mxu0 %v505_v47 }
 0x142   : > { %6231 = vmatprep.mubr.msk.f32.mxu1 %vm1378_vm1, %v1069_v50  ;;  %1312 = vmatprep.mubr.f32.mxu0 %v508_v49 }
 0x143   : > { %v1071_v52 = vpop.f32.mrf.mxu0 }
 0x145   : > { %v1074_v54 = vpop.f32.mrf.mxu0  ;;  %1313 = vmatmul.mubr.f32.gmra.mxu0 %v507_v51 }
 0x146   : > { %6232 = vmatmul.mubr.msk.f32.gmra.mxu1 %vm1378_vm1, %v1074_v54  ;;  %1317 = vmatprep.mubr.f32.mxu0 %v510_v53 }
 0x147   : > { %v1076_v55 = vpop.f32.mrf.mxu0 }
 0x149   : > { %v1079_v57 = vpop.f32.mrf.mxu0  ;;  %1318 = vmatmul.mubr.f32.gmra.mxu0 %v509_v38 }
 0x14a   : > { %6234 = vmatprep.mubr.msk.f32.mxu1 %vm1378_vm1, %v1079_v57  ;;  %1322 = vmatprep.mubr.f32.mxu0 %v512_v56 }
 0x14b   : > { %v1081_v59 = vpop.f32.mrf.mxu0 }
 0x14d   : > { %v1084_v61 = vpop.f32.mrf.mxu0  ;;  %1323 = vmatmul.mubr.f32.gmra.mxu0 %v511_v58 }
 0x14e   : > { %6235 = vmatmul.mubr.msk.f32.gmra.mxu1 %vm1378_vm1, %v1084_v61  ;;  %1327 = vmatprep.mubr.f32.mxu0 %v514_v60  ;;  %v629_v61 = vld [vmem:[%s9881_s4 + $0x18] sm:$0xf] }
 0x14f   : > { %v1086_v63 = vpop.f32.mrf.mxu0 }
 0x151   : > { %v1089_v2 = vpop.f32.mrf.mxu0  ;;  %1328 = vmatmul.mubr.f32.gmra.mxu0 %v513_v62 }
 0x152   : > { %6237 = vmatprep.mubr.msk.f32.mxu1 %vm1378_vm1, %v1089_v2  ;;  %1332 = vmatprep.mubr.f32.mxu0 %v516_v0 }
 0x153   : > { %v1091_v4 = vpop.f32.mrf.mxu0 }
 0x155   : > { %v1094_v6 = vpop.f32.mrf.mxu0  ;;  %1333 = vmatmul.mubr.f32.gmra.mxu0 %v515_v3 }
 0x156   : > { %6238 = vmatmul.mubr.msk.f32.gmra.mxu1 %vm1378_vm1, %v1094_v6  ;;  %1337 = vmatprep.mubr.f32.mxu0 %v518_v5 }
 0x157   : > { %v1096_v9 = vpop.f32.mrf.mxu0  ;;  %6242 = vmatprep.mubr.msk.f32.mxu1 %vm1378_vm1, %v7907_v8  ;;  %v522_v8 = vld [vmem:[%s9878_s1 + $0x428] sm:$0xff] }
 0x159   : > { %v1099_v11 = vpop.f32.mrf.mxu0  ;;  %1338 = vmatmul.mubr.f32.gmra.mxu0 %v517_v7 }
 0x15a   : > { %6243 = vmatmul.mubr.msk.f32.vlgmr.msra.gmra.mxu1 %vm1378_vm1, %v7915_v12  ;;  %1342 = vmatprep.mubr.f32.mxu0 %v520_v10  ;;  %v521_v12 = vld [vmem:[%s9878_s1 + $0x420] sm:$0xff] }
 0x15b   : > { %v1101_v15 = vpop.f32.mrf.mxu0  ;;  %6245 = vmatprep.mubr.msk.f32.mxu1 %vm1378_vm1, %v7923_v16  ;;  %6255 = vmatpush3.msk.msra.mxu1 %vm1403_vm0, %v625_v46  ;;  %v524_v16 = vld [vmem:[%s9878_s1 + $0x438] sm:$0xff] }
 0x15c   : > { %6268 = vmatprep.subr.msk.mxu1 %vm1403_vm0, %v626_v13 }
 0x15d   : > { %v1104_v17 = vpop.f32.mrf.mxu0  ;;  %1343 = vmatmul.mubr.f32.gmra.mxu0 %v519_v14 }
 0x15e   : > { %6246 = vmatmul.mubr.msk.f32.gmra.mxu1 %vm1378_vm1, %v7931_v20  ;;  %1347 = vmatprep.mubr.f32.mxu0 %v522_v8  ;;  %v523_v20 = vld [vmem:[%s9878_s1 + $0x430] sm:$0xff] }
 0x15f   : > { %v1106_v18 = vpop.f32.mrf.mxu0  ;;  %6248 = vmatprep.mubr.msk.f32.mxu1 %vm1378_vm1, %v7939_v24  ;;  %v525_v24 = vld [vmem:[%s9878_s1 + $0x440] sm:$0xff] }
 0x161   : > { %v1109_v19 = vpop.f32.mrf.mxu0  ;;  %1348 = vmatmul.mubr.f32.gmra.mxu0 %v521_v12 }
 0x162   : > { %6249 = vmatmul.mubr.msk.f32.gmra.mxu1 %vm1378_vm1, %v7947_v28  ;;  %1352 = vmatprep.mubr.f32.mxu0 %v524_v16  ;;  %v627_v28 = vld [vmem:[%s9881_s4 + $0x10] sm:$0xf] }
 0x163   : > { %v1111_v21 = vpop.f32.mrf.mxu0  ;;  %6251 = vmatprep.mubr.msk.f32.mxu1 %vm1378_vm1, %v7955_v32 }
 0x165   : > { %v1114_v23 = vpop.f32.mrf.mxu0  ;;  %1353 = vmatmul.mubr.f32.gmra.mxu0 %v523_v20 }
 0x166   : > { %6252 = vmatmul.mubr.msk.f32.gmra.mxu1 %vm1378_vm1, %v7963_v36  ;;  %1357 = vmatprep.mubr.f32.mxu0 %v526_v22 }
 0x167   : > { %v1116_v25 = vpop.f32.mrf.mxu0  ;;  %6256 = vmatprep.mubr.msk.f32.mxu1 %vm1378_vm1, %v1099_v11 }
 0x169   : > { %v1119_v27 = vpop.f32.mrf.mxu0  ;;  %1358 = vmatmul.mubr.f32.gmra.mxu0 %v525_v24 }
 0x16a   : > { %6257 = vmatmul.mubr.msk.f32.vlgmr.msra.gmra.mxu1 %vm1378_vm1, %v1104_v17  ;;  %1362 = vmatprep.mubr.f32.mxu0 %v528_v26  ;;  %v630_v17 = vld [vmem:[%s9881_s4 + $0x1c] sm:$0xf] }
 0x16b   : > { %v1121_v30 = vpop.f32.mrf.mxu0  ;;  %6259 = vmatprep.mubr.msk.f32.mxu1 %vm1378_vm1, %v1109_v19  ;;  %6269 = vmatpush3.msk.msra.mxu1 %vm1403_vm0, %v626_v13 }
 0x16c   : > { %6282 = vmatprep.subr.msk.mxu1 %vm1403_vm0, %v627_v28 }
 0x16d   : > { %v1124_v32 = vpop.f32.mrf.mxu0  ;;  %1363 = vmatmul.mubr.f32.gmra.mxu0 %v527_v29 }
 0x16e   : > { %6260 = vmatmul.mubr.msk.f32.gmra.mxu1 %vm1378_vm1, %v1114_v23  ;;  %1367 = vmatprep.mubr.f32.mxu0 %v530_v31 }
 0x16f   : > { %v1126_v34 = vpop.f32.mrf.mxu0  ;;  %6262 = vmatprep.mubr.msk.f32.mxu1 %vm1378_vm1, %v1119_v27 }
 0x171   : > { %v1129_v36 = vpop.f32.mrf.mxu0  ;;  %1368 = vmatmul.mubr.f32.gmra.mxu0 %v529_v33 }
 0x172   : > { %6263 = vmatmul.mubr.msk.f32.gmra.mxu1 %vm1378_vm1, %v1124_v32  ;;  %1372 = vmatprep.mubr.f32.mxu0 %v532_v35  ;;  %v631_v32 = vld [vmem:[%s9881_s4 + $0x20] sm:$0xf] }
 0x173   : > { %v1131_v39 = vpop.f32.mrf.mxu0  ;;  %6265 = vmatprep.mubr.msk.f32.mxu1 %vm1378_vm1, %v1129_v36 }
 0x175   : > { %v1134_v40 = vpop.f32.mrf.mxu0  ;;  %1373 = vmatmul.mubr.f32.gmra.mxu0 %v531_v37 }
 0x176   : > { %6266 = vmatmul.mubr.msk.f32.gmra.mxu1 %vm1378_vm1, %v1134_v40 }
 0x177   : > { %v1136_v41 = vpop.f32.mrf.mxu0 }
 0x179   : > { %v1139_v42 = vpop.f32.mrf.mxu0 }
 0x17a   : > { %6270 = vmatprep.mubr.msk.f32.mxu1 %vm1378_vm1, %v1139_v42 }
 0x17b   : > { %v1141_v43 = vpop.f32.mrf.mxu0 }
 0x17d   : > { %v1144_v44 = vpop.f32.mrf.mxu0 }
 0x17e   : > { %6271 = vmatmul.mubr.msk.f32.vlgmr.msra.gmra.mxu1 %vm1378_vm1, %v1144_v44 }
 0x17f   : > { %v1146_v46 = vpop.f32.mrf.mxu0  ;;  %6283 = vmatpush3.msk.msra.mxu1 %vm1403_vm0, %v627_v28 }
 0x180   : > { %6296 = vmatprep.subr.msk.mxu1 %vm1403_vm0, %v628_v45 }
 0x181   : > { %v1149_v47 = vpop.f32.mrf.mxu0 }
 0x182   : > { %6273 = vmatprep.mubr.msk.f32.mxu1 %vm1378_vm1, %v1149_v47 }
 0x183   : > { %v1151_v48 = vpop.f32.mrf.mxu0 }
 0x185   : > { %v1154_v49 = vpop.f32.mrf.mxu0 }
 0x186   : > { %6274 = vmatmul.mubr.msk.f32.gmra.mxu1 %vm1378_vm1, %v1154_v49 }
 0x187   : > { %v1156_v50 = vpop.f32.mrf.mxu0 }
 0x189   : > { %v1159_v51 = vpop.f32.mrf.mxu0 }
 0x18a   : > { %6276 = vmatprep.mubr.msk.f32.mxu1 %vm1378_vm1, %v1159_v51 }
 0x18b   : > { %v1161_v52 = vpop.f32.mrf.mxu0 }
 0x18d   : > { %v1164_v53 = vpop.f32.mrf.mxu0 }
 0x18e   : > { %6277 = vmatmul.mubr.msk.f32.gmra.mxu1 %vm1378_vm1, %v1164_v53 }
 0x18f   : > { %v1166_v54 = vpop.f32.mrf.mxu0 }
 0x191   : > { %v1169_v38 = vpop.f32.mrf.mxu0 }
 0x192   : > { %6279 = vmatprep.mubr.msk.f32.mxu1 %vm1378_vm1, %v1169_v38 }
 0x193   : > { %v1171_v55 = vpop.f32.mrf.mxu0 }
 0x195   : > { %v1174_v56 = vpop.f32.mrf.mxu0 }
 0x196   : > { %6280 = vmatmul.mubr.msk.f32.gmra.mxu1 %vm1378_vm1, %v1174_v56 }
 0x197   : > { %v1176_v57 = vpop.f32.mrf.mxu0 }
 0x199   : > { %v1179_v58 = vpop.f32.mrf.mxu0 }
 0x19a   : > { %6284 = vmatprep.mubr.msk.f32.mxu1 %vm1378_vm1, %v1179_v58 }
 0x19b   : > { %v1181_v59 = vpop.f32.mrf.mxu0 }
 0x19d   : > { %v1184_v60 = vpop.f32.mrf.mxu0 }
 0x19e   : > { %6285 = vmatmul.mubr.msk.f32.vlgmr.msra.gmra.mxu1 %vm1378_vm1, %v1184_v60 }
 0x19f   : > { %v1186_v62 = vpop.f32.mrf.mxu0  ;;  %6297 = vmatpush3.msk.msra.mxu1 %vm1403_vm0, %v628_v45 }
 0x1a0   : > { %6310 = vmatprep.subr.msk.mxu1 %vm1403_vm0, %v629_v61 }
 0x1a1   : > { %v1189_v63 = vpop.f32.mrf.mxu0 }
 0x1a2   : > { %6287 = vmatprep.mubr.msk.f32.mxu1 %vm1378_vm1, %v1189_v63 }
 0x1a3   : > { %v1191_v0 = vpop.f32.mrf.mxu0 }
 0x1a5   : > { %v1194_v2 = vpop.f32.mrf.mxu0 }
 0x1a6   : > { %6288 = vmatmul.mubr.msk.f32.gmra.mxu1 %vm1378_vm1, %v1194_v2 }
 0x1a7   : > { %v1196_v3 = vpop.f32.mrf.mxu0 }
 0x1a9   : > { %v1199_v4 = vpop.f32.mrf.mxu0 }
 0x1aa   : > { %6290 = vmatprep.mubr.msk.f32.mxu1 %vm1378_vm1, %v1199_v4 }
 0x1ab   : > { %v1201_v5 = vpop.f32.mrf.mxu0 }
 0x1ad   : > { %v1204_v6 = vpop.f32.mrf.mxu0 }
 0x1ae   : > { %6291 = vmatmul.mubr.msk.f32.gmra.mxu1 %vm1378_vm1, %v1204_v6 }
 0x1af   : > { %v1206_v7 = vpop.f32.mrf.mxu0 }
 0x1b1   : > { %v1209_v9 = vpop.f32.mrf.mxu0 }
 0x1b2   : > { %6293 = vmatprep.mubr.msk.f32.mxu1 %vm1378_vm1, %v1209_v9 }
 0x1b3   : > { %v1211_v10 = vpop.f32.mrf.mxu0 }
 0x1b5   : > { %v1214_v11 = vpop.f32.mrf.mxu0 }
 0x1b6   : > { %6294 = vmatmul.mubr.msk.f32.gmra.mxu1 %vm1378_vm1, %v1214_v11 }
 0x1b7   : > { %v1216_v13 = vpop.f32.mrf.mxu0 }
 0x1b9   : > { %v1219_v14 = vpop.f32.mrf.mxu0 }
 0x1ba   : > { %6298 = vmatprep.mubr.msk.f32.mxu1 %vm1378_vm1, %v1219_v14 }
 0x1bb   : > { %v1221_v15 = vpop.f32.mrf.mxu0 }
 0x1bd   : > { %v1224_v8 = vpop.f32.mrf.mxu0 }
 0x1be   : > { %6299 = vmatmul.mubr.msk.f32.vlgmr.msra.gmra.mxu1 %vm1378_vm1, %v1224_v8 }
 0x1bf   : > { %v1226_v12 = vpop.f32.mrf.mxu0  ;;  %6311 = vmatpush3.msk.msra.mxu1 %vm1403_vm0, %v629_v61 }
 0x1c0   : > { %6324 = vmatprep.subr.msk.mxu1 %vm1403_vm0, %v630_v17 }
 0x1c1   : > { %v1229_v18 = vpop.f32.mrf.mxu0 }
 0x1c2   : > { %6301 = vmatprep.mubr.msk.f32.mxu1 %vm1378_vm1, %v1229_v18 }
 0x1c3   : > { %v1231_v16 = vpop.f32.mrf.mxu0 }
 0x1c5   : > { %v1234_v19 = vpop.f32.mrf.mxu0 }
 0x1c6   : > { %6302 = vmatmul.mubr.msk.f32.gmra.mxu1 %vm1378_vm1, %v1234_v19 }
 0x1c7   : > { %v1236_v20 = vpop.f32.mrf.mxu0 }
 0x1c9   : > { %v1239_v21 = vpop.f32.mrf.mxu0 }
 0x1ca   : > { %6304 = vmatprep.mubr.msk.f32.mxu1 %vm1378_vm1, %v1239_v21 }
 0x1cb   : > { %v1241_v22 = vpop.f32.mrf.mxu0 }
 0x1cd   : > { %v1244_v23 = vpop.f32.mrf.mxu0 }
 0x1ce   : > { %6305 = vmatmul.mubr.msk.f32.gmra.mxu1 %vm1378_vm1, %v1244_v23 }
 0x1cf   : > { %v1246_v24 = vpop.f32.mrf.mxu0 }
 0x1d1   : > { %v1249_v25 = vpop.f32.mrf.mxu0 }
 0x1d2   : > { %6307 = vmatprep.mubr.msk.f32.mxu1 %vm1378_vm1, %v1249_v25 }
 0x1d3   : > { %v1251_v26 = vpop.f32.mrf.mxu0 }
 0x1d5   : > { %v1254_v27 = vpop.f32.mrf.mxu0 }
 0x1d6   : > { %6308 = vmatmul.mubr.msk.f32.gmra.mxu1 %vm1378_vm1, %v1254_v27 }
 0x1d7   : > { %v1256_v28 = vpop.f32.mrf.mxu0 }
 0x1d9   : > { %v1259_v29 = vpop.f32.mrf.mxu0 }
 0x1da   : > { %6312 = vmatprep.mubr.msk.f32.mxu1 %vm1378_vm1, %v1259_v29 }
 0x1db   : > { %v1261_v30 = vpop.f32.mrf.mxu0 }
 0x1dd   : > { %v1264_v31 = vpop.f32.mrf.mxu0 }
 0x1de   : > { %6313 = vmatmul.mubr.msk.f32.vlgmr.msra.gmra.mxu1 %vm1378_vm1, %v1264_v31 }
 0x1df   : > { %v1266_v33 = vpop.f32.mrf.mxu0  ;;  %6325 = vmatpush3.msk.msra.mxu1 %vm1403_vm0, %v630_v17 }
 0x1e0   : > { %6338 = vmatprep.subr.msk.mxu1 %vm1403_vm0, %v631_v32 }
 0x1e1   : > { %v1269_v34 = vpop.f32.mrf.mxu0 }
 0x1e2   : > { %6315 = vmatprep.mubr.msk.f32.mxu1 %vm1378_vm1, %v1269_v34 }
 0x1e3   : > { %v1271_v35 = vpop.f32.mrf.mxu0 }
 0x1e5   : > { %v1274_v36 = vpop.f32.mrf.mxu0 }
 0x1e6   : > { %6316 = vmatmul.mubr.msk.f32.gmra.mxu1 %vm1378_vm1, %v1274_v36 }
 0x1e7   : > { %v1276_v37 = vpop.f32.mrf.mxu0 }
 0x1e9   : > { %v1279_v39 = vpop.f32.mrf.mxu0 }
 0x1ea   : > { %6318 = vmatprep.mubr.msk.f32.mxu1 %vm1378_vm1, %v1279_v39 }
 0x1eb   : > { %v1281_v40 = vpop.f32.mrf.mxu0 }
 0x1ed   : > { %v1284_v41 = vpop.f32.mrf.mxu0 }
 0x1ee   : > { %6319 = vmatmul.mubr.msk.f32.gmra.mxu1 %vm1378_vm1, %v1284_v41 }
 0x1ef   : > { %v1286_v42 = vpop.f32.mrf.mxu0 }
 0x1f1   : > { %v1289_v43 = vpop.f32.mrf.mxu0 }
 0x1f2   : > { %6321 = vmatprep.mubr.msk.f32.mxu1 %vm1378_vm1, %v1289_v43 }
 0x1f3   : > { %v1291_v44 = vpop.f32.mrf.mxu0 }
 0x1f5   : > { %v1294_v45 = vpop.f32.mrf.mxu0 }
 0x1f6   : > { %6322 = vmatmul.mubr.msk.f32.gmra.mxu1 %vm1378_vm1, %v1294_v45 }
 0x1f7   : > { %v1296_v46 = vpop.f32.mrf.mxu0 }
 0x1f9   : > { %v1299_v47 = vpop.f32.mrf.mxu0 }
 0x1fa   : > { %6326 = vmatprep.mubr.msk.f32.mxu1 %vm1378_vm1, %v1299_v47 }
 0x1fb   : > { %v1301_v48 = vpop.f32.mrf.mxu0 }
 0x1fd   : > { %v1304_v49 = vpop.f32.mrf.mxu0 }
 0x1fe   : > { %6327 = vmatmul.mubr.msk.f32.vlgmr.msra.gmra.mxu1 %vm1378_vm1, %v1304_v49  ;;  %v6230_v53 = vpop.f32.mrf.mxu1 }
 0x1ff   : > { %v1306_v50 = vpop.f32.mrf.mxu0  ;;  %6339 = vmatpush3.msk.msra.mxu1 %vm1403_vm0, %v631_v32 }
 0x200   : > { %v8163_v55 = vpop.f32.mrf.mxu1 }
 0x201   : > { %v1309_v51 = vpop.f32.mrf.mxu0 }
 0x202   : > { %6329 = vmatprep.mubr.msk.f32.mxu1 %vm1378_vm1, %v1309_v51 }
 0x203   : > { %v1311_v52 = vpop.f32.mrf.mxu0 }
 0x205   : > { %v1314_v54 = vpop.f32.mrf.mxu0 }
 0x206   : > { %6330 = vmatmul.mubr.msk.f32.gmra.mxu1 %vm1378_vm1, %v1314_v54  ;;  %v6233_v57 = vpop.f32.mrf.mxu1 }
 0x207   : > { %v1316_v38 = vpop.f32.mrf.mxu0 }
 0x208   : > { %v8166_v60 = vpop.f32.mrf.mxu1 }
 0x209   : > { %v1319_v56 = vpop.f32.mrf.mxu0 }
 0x20a   : > { %6332 = vmatprep.mubr.msk.f32.mxu1 %vm1378_vm1, %v1319_v56 }
 0x20b   : > { %v1321_v58 = vpop.f32.mrf.mxu0 }
 0x20d   : > { %v1324_v59 = vpop.f32.mrf.mxu0 }
 0x20e   : > { %6333 = vmatmul.mubr.msk.f32.gmra.mxu1 %vm1378_vm1, %v1324_v59  ;;  %v6236_v62 = vpop.f32.mrf.mxu1 }
 0x20f   : > { %v1326_v61 = vpop.f32.mrf.mxu0 }
 0x210   : > { %v8170_v2 = vpop.f32.mrf.mxu1 }
 0x211   : > { %v1329_v63 = vpop.f32.mrf.mxu0 }
 0x212   : > { %6335 = vmatprep.mubr.msk.f32.mxu1 %vm1378_vm1, %v1329_v63  ;;  %v679_v63 = vld [vmem:[%s9882_s5 + $0x178] sm:$0xff] }
 0x213   : > { %v1331_v0 = vpop.f32.mrf.mxu0  ;;  %6564 = vmatprep.subr.mxu0 %v679_v63 }
 0x214   : > { %6565 = vmatpush3.msra.mxu0 %v679_v63  ;;  %v2624_v63 = vlaneseq }
 0x215   : > { %v1334_v3 = vpop.f32.mrf.mxu0 }
 0x216   : > { %v6239_v4 = vpop.f32.mrf.mxu1  ;;  %6336 = vmatmul.mubr.msk.f32.gmra.mxu1 %vm1378_vm1, %v1334_v3 }
 0x217   : > { %v1336_v5 = vpop.f32.mrf.mxu0 }
 0x218   : > { %v8173_v6 = vpop.f32.mrf.mxu1 }
 0x219   : > { %v1339_v7 = vpop.f32.mrf.mxu0 }
 0x21a   : > { %v6244_v9 = vpop.f32.mrf.mxu1  ;;  %6340 = vmatprep.mubr.msk.f32.mxu1 %vm1378_vm1, %v1339_v7 }
 0x21b   : > { %v1611_v10 = vadd.f32 %v6244_v9, %v6230_v53  ;;  %v1341_v11 = vpop.f32.mrf.mxu0 }
 0x21c   : > { %v8176_v13 = vpop.f32.mrf.mxu1 }
 0x21d   : > { %v1344_v14 = vpop.f32.mrf.mxu0 }
 0x21e   : > { %v6247_v15 = vpop.f32.mrf.mxu1  ;;  %6341 = vmatmul.mubr.msk.f32.vlgmr.msra.gmra.mxu1 %vm1378_vm1, %v1344_v14 }
 0x21f   : > { %v1621_v8 = vadd.f32 %v6247_v15, %v6233_v57  ;;  %v1346_v17 = vpop.f32.mrf.mxu0 }
 0x220   : > { %v8179_v12 = vpop.f32.mrf.mxu1 }
 0x221   : > { %v1349_v18 = vpop.f32.mrf.mxu0 }
 0x222   : > { %v6250_v16 = vpop.f32.mrf.mxu1  ;;  %6343 = vmatprep.mubr.msk.f32.mxu1 %vm1378_vm1, %v1349_v18  ;;  %v677_v18 = vld [vmem:[%s9882_s5 + $0x168] sm:$0xff] }
 0x223   : > { %v1631_v19 = vadd.f32 %v6250_v16, %v6236_v62  ;;  %v1351_v20 = vpop.f32.mrf.mxu0  ;;  %v533_v16 = vld [vmem:[%s9879_s2] sm:$0xff] }
 0x224   : > { %v8182_v21 = vpop.f32.mrf.mxu1 }
 0x225   : > { %v1354_v22 = vpop.f32.mrf.mxu0 }
 0x226   : > { %v6253_v23 = vpop.f32.mrf.mxu1  ;;  %6344 = vmatmul.mubr.msk.f32.gmra.mxu1 %vm1378_vm1, %v1354_v22 }
 0x227   : > { %v1641_v24 = vadd.f32 %v6253_v23, %v6239_v4  ;;  %v1356_v25 = vpop.f32.mrf.mxu0 }
 0x228   : > { %v8185_v26 = vpop.f32.mrf.mxu1  ;;  %v675_v25 = vld [vmem:[%s9882_s5 + $0x158] sm:$0xff] }
 0x229   : > { %v1359_v27 = vpop.f32.mrf.mxu0 }
 0x22a   : > { %v6258_v28 = vpop.f32.mrf.mxu1  ;;  %6346 = vmatprep.mubr.msk.f32.mxu1 %vm1378_vm1, %v1359_v27 }
 0x22b   : > { %v1777_v29 = vadd.f32 %v6258_v28, %v1611_v10  ;;  %v1361_v30 = vpop.f32.mrf.mxu0  ;;  %v678_v10 = vld [vmem:[%s9882_s5 + $0x170] sm:$0xff] }
 0x22c   : > { %v8188_v31 = vpop.f32.mrf.mxu1  ;;  %6566 = vmatprep.subr.mxu0 %v678_v10 }
 0x22d   : > { %v1364_v32 = vpop.f32.mrf.mxu0  ;;  %6567 = vmatpush3.msra.mxu0 %v678_v10  ;;  %v1636_v10 = vadd.f32 %v8185_v26, %v8173_v6 }
 0x22e   : > { %v6261_v33 = vpop.f32.mrf.mxu1  ;;  %6347 = vmatmul.mubr.msk.f32.gmra.mxu1 %vm1378_vm1, %v1364_v32  ;;  %6568 = vmatprep.subr.mxu0 %v677_v18 }
 0x22f   : > { %v1779_v34 = vadd.f32 %v6261_v33, %v1621_v8  ;;  %v1366_v35 = vpop.f32.mrf.mxu0  ;;  %6569 = vmatpush3.msra.mxu0 %v677_v18 }
 0x230   : > { %v8191_v36 = vpop.f32.mrf.mxu1 }
 0x231   : > { %v1369_v37 = vpop.f32.mrf.mxu0 }
 0x232   : > { %v6264_v39 = vpop.f32.mrf.mxu1  ;;  %6349 = vmatprep.mubr.msk.f32.mxu1 %vm1378_vm1, %v1369_v37 }
 0x233   : > { %v1781_v40 = vadd.f32 %v6264_v39, %v1631_v19  ;;  %v1371_v41 = vpop.f32.mrf.mxu0  ;;  %v676_v19 = vld [vmem:[%s9882_s5 + $0x160] sm:$0xff]  ;;  %v673_v39 = vld [vmem:[%s9882_s5 + $0x148] sm:$0xff] }
 0x234   : > { %v8194_v42 = vpop.f32.mrf.mxu1  ;;  %6570 = vmatprep.subr.mxu0 %v676_v19 }
 0x235   : > { %v1374_v43 = vpop.f32.mrf.mxu0  ;;  %6571 = vmatpush3.msra.mxu0 %v676_v19  ;;  %v8286_v19 = vshrl.u32 %v2624_v63, 7 }
 0x236   : > { %v6267_v44 = vpop.f32.mrf.mxu1  ;;  %6350 = vmatmul.mubr.msk.f32.gmra.mxu1 %vm1378_vm1, %v1374_v43  ;;  %6572 = vmatprep.subr.mxu0 %v675_v25 }
 0x237   : > { %v1783_v45 = vadd.f32 %v6267_v44, %v1641_v24  ;;  %v1376_v46 = vpop.f32.mrf.mxu0  ;;  %6368 = vmatprep.mubr.msk.f32.mxu1 %vm2644_vm2, %v533_v16  ;;  %6573 = vmatpush3.msra.mxu0 %v675_v25  ;;  %v1616_v16 = vadd.f32 %v8179_v12, %v8166_v60  ;;  %v1606_v12 = vadd.f32 %v8176_v13, %v8163_v55 }
 0x238   : > { %v8197_v47 = vpop.f32.mrf.mxu1 }
 0x239   : > { %v1782_v18 = vadd.f32 %v8197_v47, %v1636_v10 }
 0x23e   : > { %v6272_v48 = vpop.f32.mrf.mxu1 }
 0x23f   : > { %v1917_v49 = vadd.f32 %v6272_v48, %v1777_v29  ;;  %v674_v29 = vld [vmem:[%s9882_s5 + $0x150] sm:$0xff]  ;;  %v672_v48 = vld [vmem:[%s9882_s5 + $0x140] sm:$0xff] }
 0x240   : > { %v8199_v50 = vpop.f32.mrf.mxu1  ;;  %6574 = vmatprep.subr.mxu0 %v674_v29 }
 0x241   : > { %6575 = vmatpush3.msra.mxu0 %v674_v29 }
 0x242   : > { %6576 = vmatprep.subr.mxu0 %v673_v39 }
 0x243   : > { %6577 = vmatpush3.msra.mxu0 %v673_v39 }
 0x244   : > { %6578 = vmatprep.subr.mxu0 %v672_v48 }
 0x245   : > { %6579 = vmatpush3.msra.mxu0 %v672_v48 }
 0x246   : > { %v6275_v51 = vpop.f32.mrf.mxu1 }
 0x247   : > { %v1919_v52 = vadd.f32 %v6275_v51, %v1779_v34 }
 0x248   : > { %v8201_v53 = vpop.f32.mrf.mxu1 }
 0x24e   : > { %v6278_v54 = vpop.f32.mrf.mxu1 }
 0x24f   : > { %v1921_v38 = vadd.f32 %v6278_v54, %v1781_v40 }
 0x250   : > { %v8203_v56 = vpop.f32.mrf.mxu1 }
 0x256   : > { %v6281_v57 = vpop.f32.mrf.mxu1 }
 0x257   : > { %v8205_v58 = vadd.f32 %v6281_v57, %v1783_v45 }
 0x258   : > { %v8207_v59 = vpop.f32.mrf.mxu1 }
 0x259   : > { %v1922_v39 = vadd.f32 %v8207_v59, %v1782_v18  ;;  %v2626_v59 = vsub.s32 0, %v8286_v19 }
 0x25e   : > { %v6286_v61 = vpop.f32.mrf.mxu1 }
 0x25f   : > { %v2057_v62 = vadd.f32 %v6286_v61, %v1917_v49  ;;  %v671_v61 = vld [vmem:[%s9882_s5 + $0x138] sm:$0xff] }
 0x260   : > { %v8212_v0 = vpop.f32.mrf.mxu1  ;;  %6580 = vmatprep.subr.mxu0 %v671_v61 }
 0x261   : > { %6581 = vmatpush3.msra.mxu0 %v671_v61 }
 0x266   : > { %v6289_v3 = vpop.f32.mrf.mxu1 }
 0x267   : > { %v8214_v4 = vadd.f32 %v6289_v3, %v1919_v52 }
 0x268   : > { %v8216_v5 = vpop.f32.mrf.mxu1 }
 0x26e   : > { %v6292_v7 = vpop.f32.mrf.mxu1 }
 0x26f   : > { %v8218_v9 = vadd.f32 %v6292_v7, %v1921_v38  ;;  %v1626_v7 = vadd.f32 %v8182_v21, %v8170_v2  ;;  %v1778_v21 = vadd.f32 %v8191_v36, %v1616_v16  ;;  %v952_v36 = vld [vmem:[%s9886_s9] sm:$0x1f] }
 0x270   : > { %v8223_v11 = vpop.f32.mrf.mxu1 }
 0x276   : > { %v8225_v14 = vpop.f32.mrf.mxu1 }
 0x277   : > { %v2063_v2 = vadd.f32 %v8225_v14, %v8205_v58 }
 0x278   : > { %v8227_v15 = vpop.f32.mrf.mxu1 }
 0x27e   : > { %v6300_v8 = vpop.f32.mrf.mxu1 }
 0x27f   : > { %v8229_v17 = vadd.f32 %v6300_v8, %v2057_v62  ;;  %v1780_v8 = vadd.f32 %v8194_v42, %v1626_v7  ;;  %v2062_v42 = vadd.f32 %v8227_v15, %v1922_v39 }
 0x280   : > { %v8241_v20 = vpop.f32.mrf.mxu1 }
 0x281   : > { %v1920_v29 = vadd.f32 %v8203_v56, %v1780_v8  ;;  %v1918_v56 = vadd.f32 %v8201_v53, %v1778_v21 }
 0x283   : > { %v2060_v26 = vadd.f32 %v8223_v11, %v1920_v29  ;;  %v1776_v11 = vadd.f32 %v8188_v31, %v1606_v12  ;;  %v662_v12 = vld [vmem:[%s9882_s5 + $0xf0] sm:$0xff] }
 0x286   : > { %v8243_v22 = vpop.f32.mrf.mxu1 }
 0x287   : > { %v2199_v15 = vadd.f32 %v8243_v22, %v8214_v4 }
 0x288   : > { %v8245_v23 = vpop.f32.mrf.mxu1 }
 0x28e   : > { %v6306_v24 = vpop.f32.mrf.mxu1 }
 0x28f   : > { %v2201_v47 = vadd.f32 %v6306_v24, %v8218_v9  ;;  %v2058_v9 = vadd.f32 %v8216_v5, %v1918_v56  ;;  %v536_v56 = vld [vmem:[%s9879_s2 + $0x18] sm:$0xff] }
 0x290   : > { %v2177_v27 = vpop.f32.mrf.mxu1 }
 0x291   : > { %v2200_v48 = vadd.f32 %v2177_v27, %v2060_v26  ;;  %v1916_v27 = vadd.f32 %v8199_v50, %v1776_v11  ;;  %v670_v50 = vld [vmem:[%s9882_s5 + $0x130] sm:$0xff] }
 0x292   : > { %6582 = vmatprep.subr.mxu0 %v670_v50  ;;  %v658_v11 = vld [vmem:[%s9882_s5 + $0xd0] sm:$0xff] }
 0x293   : > { %v2056_v5 = vadd.f32 %v8212_v0, %v1916_v27  ;;  %6583 = vmatpush3.msra.mxu0 %v670_v50  ;;  %v543_v27 = vld [vmem:[%s9879_s2 + $0x50] sm:$0xff]  ;;  %v553_v50 = vld [vmem:[%s9879_s2 + $0xa0] sm:$0xff] }
 0x296   : > { %v6309_v28 = vpop.f32.mrf.mxu1 }
 0x297   : > { %v2203_v60 = vadd.f32 %v6309_v28, %v2063_v2 }
 0x298   : > { %v2187_v30 = vpop.f32.mrf.mxu1 }
 0x299   : > { %v2202_v61 = vadd.f32 %v2187_v30, %v2062_v42  ;;  %v2198_v30 = vadd.f32 %v8245_v23, %v2058_v9  ;;  %v2196_v23 = vadd.f32 %v8241_v20, %v2056_v5  ;;  %v534_v42 = vld [vmem:[%s9879_s2 + $0x8] sm:$0xff]  ;;  %v540_v9 = vld [vmem:[%s9879_s2 + $0x38] sm:$0xff]  ;;  %v547_v5 = vld [vmem:[%s9879_s2 + $0x70] sm:$0xff] }
 0x29e   : > { %v8253_v32 = vpop.f32.mrf.mxu1 }
 0x2a0   : > { %v8255_v33 = vpop.f32.mrf.mxu1 }
 0x2a6   : > { %v6317_v34 = vpop.f32.mrf.mxu1 }
 0x2a8   : > { %v8257_v35 = vpop.f32.mrf.mxu1 }
 0x2a9   : > { %v2338_v4 = vadd.f32 %v8257_v35, %v2198_v30  ;;  %v654_v30 = vld [vmem:[%s9882_s5 + $0xb0] sm:$0xff] }
 0x2ae   : > { %v6320_v37 = vpop.f32.mrf.mxu1 }
 0x2af   : > { %v2341_v58 = vadd.f32 %v6320_v37, %v2201_v47  ;;  %v2339_v37 = vadd.f32 %v6317_v34, %v2199_v15  ;;  %v2337_v34 = vadd.f32 %v8253_v32, %v8229_v17  ;;  %v663_v47 = vld [vmem:[%s9882_s5 + $0xf8] sm:$0xff]  ;;  %v657_v15 = vld [vmem:[%s9882_s5 + $0xc8] sm:$0xff] }
 0x2b0   : > { %v2317_v40 = vpop.f32.mrf.mxu1 }
 0x2b1   : > { %v2340_v13 = vadd.f32 %v2317_v40, %v2200_v48  ;;  %v537_v48 = vld [vmem:[%s9879_s2 + $0x20] sm:$0xff] }
 0x2b6   : > { %v6323_v41 = vpop.f32.mrf.mxu1 }
 0x2b7   : > { %v2343_v14 = vadd.f32 %v6323_v41, %v2203_v60  ;;  %v2627_v41 = vrot.slane %v952_v36, %v2626_v59  ;;  %v535_v60 = vld [vmem:[%s9879_s2 + $0x10] sm:$0xff]  ;;  %v661_v59 = vld [vmem:[%s9882_s5 + $0xe8] sm:$0xff] }
 0x2b8   : > { %v2327_v43 = vpop.f32.mrf.mxu1  ;;  %v539_v36 = vld [vmem:[%s9879_s2 + $0x30] sm:$0xff] }
 0x2b9   : > { %v2342_v53 = vadd.f32 %v2327_v43, %v2202_v61  ;;  %v660_v61 = vld [vmem:[%s9882_s5 + $0xe0] sm:$0xff] }
 0x2be   : > { %v8262_v44 = vpop.f32.mrf.mxu1 }
 0x2bf   : > { %v2477_v16 = vadd.f32 %v8262_v44, %v2337_v34  ;;  %v555_v34 = vld [vmem:[%s9879_s2 + $0xb0] sm:$0xff] }
 0x2c0   : > { %v8264_v45 = vpop.f32.mrf.mxu1 }
 0x2c6   : > { %v6331_v46 = vpop.f32.mrf.mxu1 }
 0x2c7   : > { %v2479_v40 = vadd.f32 %v6331_v46, %v2339_v37  ;;  %v2336_v46 = vadd.f32 %v8255_v33, %v2196_v23  ;;  %v667_v37 = vld [vmem:[%s9882_s5 + $0x118] sm:$0xff]  ;;  %v554_v23 = vld [vmem:[%s9879_s2 + $0xa8] sm:$0xff] }
 0x2c8   : > { %v8269_v49 = vpop.f32.mrf.mxu1 }
 0x2c9   : > { %v2476_v20 = vadd.f32 %v8264_v45, %v2336_v46  ;;  %v561_v46 = vld [vmem:[%s9879_s2 + $0xe0] sm:$0xff] }
 0x2ce   : > { %v6334_v51 = vpop.f32.mrf.mxu1 }
 0x2cf   : > { %v2481_v24 = vadd.f32 %v6334_v51, %v2341_v58  ;;  %v538_v58 = vld [vmem:[%s9879_s2 + $0x28] sm:$0xff] }
 0x2d0   : > { %v2457_v52 = vpop.f32.mrf.mxu1 }
 0x2d1   : > { %v2480_v7 = vadd.f32 %v2457_v52, %v2340_v13  ;;  %v2478_v52 = vadd.f32 %v8269_v49, %v2338_v4  ;;  %v656_v13 = vld [vmem:[%s9882_s5 + $0xc0] sm:$0xff]  ;;  %v650_v4 = vld [vmem:[%s9882_s5 + $0x90] sm:$0xff] }
 0x2d6   : > { %v6337_v54 = vpop.f32.mrf.mxu1 }
 0x2d7   : > { %v2483_v28 = vadd.f32 %v6337_v54, %v2343_v14  ;;  %v659_v14 = vld [vmem:[%s9882_s5 + $0xd8] sm:$0xff] }
 0x2d8   : > { %v2467_v38 = vpop.f32.mrf.mxu1 }
 0x2d9   : > { %v2482_v10 = vadd.f32 %v2467_v38, %v2342_v53  ;;  %v668_v53 = vld [vmem:[%s9882_s5 + $0x120] sm:$0xff] }
 0x2de   : > { %v8271_v57 = vpop.f32.mrf.mxu1 }
 0x2df   : > { %v2617_v17 = vadd.f32 %v8271_v57, %v2477_v16  ;;  %v562_v16 = vld [vmem:[%s9879_s2 + $0xe8] sm:$0xff] }
 0x2e0   : > { %v8276_v62 = vpop.f32.mrf.mxu1 }
 0x2e1   : > { %v2629_v44 = vadd.f32 %v2627_v41, %v2617_v17  ;;  %v567_v17 = vld [vmem:[%s9879_s2 + $0x110] sm:$0xff] }
 0x2e3   : > { %v2637_v45 = vmax.f32 %v2629_v44, 0.0  ;;  %v571_v44 = vld [vmem:[%s9879_s2 + $0x130] sm:$0xff] }
 0x2e6   : > { %v6345_v3 = vpop.f32.mrf.mxu1 }
 0x2e7   : > { %v2619_v0 = vadd.f32 %v6345_v3, %v2479_v40  ;;  %v2616_v3 = vadd.f32 %v8276_v62, %v2476_v20  ;;  %v669_v62 = vld [vmem:[%s9882_s5 + $0x128] sm:$0xff]  ;;  %v549_v40 = vld [vmem:[%s9879_s2 + $0x80] sm:$0xff] }
 0x2e8   : > { %v2587_v25 = vpop.f32.mrf.mxu1  ;;  %6584 = vmatprep.subr.mxu0 %v669_v62  ;;  %v566_v20 = vld [vmem:[%s9879_s2 + $0x108] sm:$0xff] }
 0x2e9   : > { %v2618_v29 = vadd.f32 %v2587_v25, %v2478_v52  ;;  %v2631_v32 = vadd.f32 %v2627_v41, %v2619_v0  ;;  %6585 = vmatpush3.msra.mxu0 %v669_v62  ;;  %v556_v52 = vld [vmem:[%s9879_s2 + $0xb8] sm:$0xff]  ;;  %v557_v0 = vld [vmem:[%s9879_s2 + $0xc0] sm:$0xff] }
 0x2ea   : > { %6586 = vmatprep.subr.mxu0 %v668_v53  ;;  %v576_v62 = vld [vmem:[%s9879_s2 + $0x158] sm:$0xff] }
 0x2eb   : > { %v2630_v21 = vadd.f32 %v2627_v41, %v2618_v29  ;;  %v2639_v25 = vmax.f32 %v2631_v32, 0.0  ;;  %6587 = vmatpush3.msra.mxu0 %v668_v53  ;;  %v563_v29 = vld [vmem:[%s9879_s2 + $0xf0] sm:$0xff]  ;;  %v590_v53 = vld [vmem:[%s9879_s2 + $0x1c8] sm:$0xff] }
 0x2ec   : > { %6588 = vmatprep.subr.mxu0 %v667_v37  ;;  %v666_v32 = vld [vmem:[%s9882_s5 + $0x110] sm:$0xff] }
 0x2ed   : > { %v2638_v26 = vmax.f32 %v2630_v21, 0.0  ;;  %6589 = vmatpush3.msra.mxu0 %v667_v37  ;;  %v649_v21 = vld [vmem:[%s9882_s5 + $0x88] sm:$0xff] }
 0x2ee   : > { %v6348_v6 = vpop.f32.mrf.mxu1  ;;  %6590 = vmatprep.subr.mxu0 %v666_v32  ;;  %v594_v37 = vld [vmem:[%s9879_s2 + $0x1e8] sm:$0xff] }
 0x2ef   : > { %v2621_v31 = vadd.f32 %v6348_v6, %v2481_v24  ;;  %v2628_v6 = vadd.f32 %v2627_v41, %v2616_v3  ;;  %v542_v24 = vld [vmem:[%s9879_s2 + $0x48] sm:$0xff]  ;;  %v569_v3 = vld [vmem:[%s9879_s2 + $0x120] sm:$0xff]  ;;  %6591 = vmatpush3.msra.mxu0 %v666_v32  ;;  %v642_v32 = vld [vmem:[%s9882_s5 + $0x50] sm:$0xff] }
 0x2f0   : > { %v2597_v55 = vpop.f32.mrf.mxu1 }
 0x2f1   : > { %v2620_v43 = vadd.f32 %v2597_v55, %v2480_v7  ;;  %v2633_v38 = vadd.f32 %v2627_v41, %v2621_v31  ;;  %v2636_v57 = vmax.f32 %v2628_v6, 0.0  ;;  %v541_v55 = vld [vmem:[%s9879_s2 + $0x40] sm:$0xff]  ;;  %v546_v31 = vld [vmem:[%s9879_s2 + $0x68] sm:$0xff] }
 0x2f2   : > { %v545_v7 = vld [vmem:[%s9879_s2 + $0x60] sm:$0xff] }
 0x2f3   : > { %v2632_v39 = vadd.f32 %v2627_v41, %v2620_v43  ;;  %v2641_v49 = vmax.f32 %v2633_v38, 0.0  ;;  %v550_v43 = vld [vmem:[%s9879_s2 + $0x88] sm:$0xff]  ;;  %v573_v6 = vld [vmem:[%s9879_s2 + $0x140] sm:$0xff] }
 0x2f4   : > { %v558_v38 = vld [vmem:[%s9879_s2 + $0xc8] sm:$0xff] }
 0x2f5   : > { %v2640_v33 = vmax.f32 %v2632_v39, 0.0  ;;  %v564_v39 = vld [vmem:[%s9879_s2 + $0xf8] sm:$0xff] }
 0x2f6   : > { %v6351_v63 = vpop.f32.mrf.mxu1 }
 0x2f7   : > { %v2623_v8 = vadd.f32 %v6351_v63, %v2483_v28  ;;  %v655_v28 = vld [vmem:[%s9882_s5 + $0xb8] sm:$0xff]  ;;  %v653_v63 = vld [vmem:[%s9882_s5 + $0xa8] sm:$0xff] }
 0x2f8   : > { %v2607_v22 = vpop.f32.mrf.mxu1 }
 0x2f9   : > { %v2635_v51 = vadd.f32 %v2627_v41, %v2623_v8  ;;  %v2622_v54 = vadd.f32 %v2607_v22, %v2482_v10  ;;  %v652_v10 = vld [vmem:[%s9882_s5 + $0xa0] sm:$0xff]  ;;  %v651_v8 = vld [vmem:[%s9882_s5 + $0x98] sm:$0xff] }
 0x2fa   : > { %v548_v22 = vld [vmem:[%s9879_s2 + $0x78] sm:$0xff] }
 0x2fb   : > { %v2643_v35 = vmax.f32 %v2635_v51, 0.0  ;;  %v2634_v18 = vadd.f32 %v2627_v41, %v2622_v54  ;;  %v544_v41 = vld [vmem:[%s9879_s2 + $0x58] sm:$0xff]  ;;  %v551_v51 = vld [vmem:[%s9879_s2 + $0x90] sm:$0xff] }
 0x2fc   : > { %v552_v54 = vld [vmem:[%s9879_s2 + $0x98] sm:$0xff] }
 0x2fd   : > { %6352 = vmatprep.subr.mxu1 %v2643_v35  ;;  %v2642_v2 = vmax.f32 %v2634_v18, 0.0  ;;  %v560_v18 = vld [vmem:[%s9879_s2 + $0xd8] sm:$0xff] }
 0x2fe   : > { %6353 = vmatpush3.msra.mxu1 %v2643_v35  ;;  %v559_v35 = vld [vmem:[%s9879_s2 + $0xd0] sm:$0xff] }
 0x2ff   : > { %6354 = vmatprep.subr.mxu1 %v2642_v2 }
 0x300   : > { %6355 = vmatpush3.msra.mxu1 %v2642_v2  ;;  %v565_v2 = vld [vmem:[%s9879_s2 + $0x100] sm:$0xff] }
 0x301   : > { %6356 = vmatprep.subr.mxu1 %v2641_v49 }
 0x302   : > { %6357 = vmatpush3.msra.mxu1 %v2641_v49  ;;  %v568_v49 = vld [vmem:[%s9879_s2 + $0x118] sm:$0xff] }
 0x303   : > { %6358 = vmatprep.subr.mxu1 %v2640_v33 }
 0x304   : > { %6359 = vmatpush3.msra.mxu1 %v2640_v33  ;;  %v570_v33 = vld [vmem:[%s9879_s2 + $0x128] sm:$0xff] }
 0x305   : > { %6360 = vmatprep.subr.mxu1 %v2639_v25 }
 0x306   : > { %6361 = vmatpush3.msra.mxu1 %v2639_v25  ;;  %v572_v25 = vld [vmem:[%s9879_s2 + $0x138] sm:$0xff] }
 0x307   : > { %6362 = vmatprep.subr.mxu1 %v2638_v26 }
 0x308   : > { %6363 = vmatpush3.msra.mxu1 %v2638_v26  ;;  %v648_v26 = vld [vmem:[%s9882_s5 + $0x80] sm:$0xff] }
 0x309   : > { %6364 = vmatprep.subr.mxu1 %v2637_v45 }
 0x30a   : > { %6365 = vmatpush3.msra.mxu1 %v2637_v45  ;;  %v574_v45 = vld [vmem:[%s9879_s2 + $0x148] sm:$0xff] }
 0x30b   : > { %6366 = vmatprep.subr.mxu1 %v2636_v57 }
 0x30c   : > { %6367 = vmatpush3.msra.mxu1 %v2636_v57  ;;  %v575_v57 = vld [vmem:[%s9879_s2 + $0x150] sm:$0xff] }
 0x30d   : > { %6369 = vmatmul.mubr.msk.f32.vlgmr.msra.gmra.mxu1 %vm2644_vm2, %v534_v42  ;;  %6476 = vmatprep.subr.mxu1 %v663_v47  ;;  %v577_v42 = vld [vmem:[%s9879_s2 + $0x160] sm:$0xff] }
 0x30e   : > { %6371 = vmatprep.mubr.msk.f32.mxu1 %vm2644_vm2, %v535_v60  ;;  %6477 = vmatpush3.msra.mxu1 %v663_v47  ;;  %v665_v47 = vld [vmem:[%s9882_s5 + $0x108] sm:$0xff]  ;;  %v8563_v60 = vld [vmem:[%s9882_s5 + $0x78] sm:$0xff] }
 0x30f   : > { %6478 = vmatprep.subr.mxu1 %v662_v12  ;;  %6592 = vmatprep.subr.mxu0 %v665_v47 }
 0x310   : > { %6479 = vmatpush3.msra.mxu1 %v662_v12  ;;  %6593 = vmatpush3.msra.mxu0 %v665_v47  ;;  %v578_v12 = vld [vmem:[%s9879_s2 + $0x168] sm:$0xff]  ;;  %v636_v47 = vld [vmem:[%s9882_s5 + $0x20] sm:$0xff] }
 0x311   : > { %6372 = vmatmul.mubr.msk.f32.gmra.mxu1 %vm2644_vm2, %v536_v56  ;;  %6480 = vmatprep.subr.mxu1 %v661_v59  ;;  %v579_v56 = vld [vmem:[%s9879_s2 + $0x170] sm:$0xff] }
 0x312   : > { %6374 = vmatprep.mubr.msk.f32.mxu1 %vm2644_vm2, %v537_v48  ;;  %6481 = vmatpush3.msra.mxu1 %v661_v59  ;;  %v580_v59 = vld [vmem:[%s9879_s2 + $0x178] sm:$0xff]  ;;  %v581_v48 = vld [vmem:[%s9879_s2 + $0x180] sm:$0xff] }
 0x313   : > { %6482 = vmatprep.subr.mxu1 %v660_v61 }
 0x314   : > { %6483 = vmatpush3.msra.mxu1 %v660_v61  ;;  %v582_v61 = vld [vmem:[%s9879_s2 + $0x188] sm:$0xff] }
 0x315   : > { %6375 = vmatmul.mubr.msk.f32.gmra.mxu1 %vm2644_vm2, %v538_v58  ;;  %6484 = vmatprep.subr.mxu1 %v659_v14  ;;  %v583_v58 = vld [vmem:[%s9879_s2 + $0x190] sm:$0xff] }
 0x316   : > { %6377 = vmatprep.mubr.msk.f32.mxu1 %vm2644_vm2, %v539_v36  ;;  %6485 = vmatpush3.msra.mxu1 %v659_v14  ;;  %v584_v14 = vld [vmem:[%s9879_s2 + $0x198] sm:$0xff]  ;;  %v585_v36 = vld [vmem:[%s9879_s2 + $0x1a0] sm:$0xff] }
 0x317   : > { %6486 = vmatprep.subr.mxu1 %v658_v11 }
 0x318   : > { %6487 = vmatpush3.msra.mxu1 %v658_v11  ;;  %v586_v11 = vld [vmem:[%s9879_s2 + $0x1a8] sm:$0xff] }
 0x319   : > { %6378 = vmatmul.mubr.msk.f32.gmra.mxu1 %vm2644_vm2, %v540_v9  ;;  %6488 = vmatprep.subr.mxu1 %v657_v15  ;;  %v664_v9 = vld [vmem:[%s9882_s5 + $0x100] sm:$0xff] }
 0x31a   : > { %6380 = vmatprep.mubr.msk.f32.mxu1 %vm2644_vm2, %v541_v55  ;;  %6489 = vmatpush3.msra.mxu1 %v657_v15  ;;  %v587_v15 = vld [vmem:[%s9879_s2 + $0x1b0] sm:$0xff]  ;;  %v588_v55 = vld [vmem:[%s9879_s2 + $0x1b8] sm:$0xff] }
 0x31b   : > { %6490 = vmatprep.subr.mxu1 %v656_v13  ;;  %6594 = vmatprep.subr.mxu0 %v664_v9 }
 0x31c   : > { %6491 = vmatpush3.msra.mxu1 %v656_v13  ;;  %6595 = vmatpush3.msra.mxu0 %v664_v9  ;;  %v589_v13 = vld [vmem:[%s9879_s2 + $0x1c0] sm:$0xff] }
 0x31d   : > { %6381 = vmatmul.mubr.msk.f32.gmra.mxu1 %vm2644_vm2, %v542_v24  ;;  %6492 = vmatprep.subr.mxu1 %v655_v28  ;;  %v591_v24 = vld [vmem:[%s9879_s2 + $0x1d0] sm:$0xff]  ;;  %v632_v9 = vld [vmem:[%s9882_s5] sm:$0xff] }
 0x31e   : > { %6383 = vmatprep.mubr.msk.f32.mxu1 %vm2644_vm2, %v543_v27  ;;  %6493 = vmatpush3.msra.mxu1 %v655_v28  ;;  %v8629_v28 = vld [vmem:[%s9882_s5 + $0x278] sm:$0xff] }
 0x31f   : > { %6494 = vmatprep.subr.mxu1 %v654_v30  ;;  %v592_v27 = vld [vmem:[%s9879_s2 + $0x1d8] sm:$0xff]  ;;  %6652 = vmatprep.subr.mxu0 %v8629_v28 }
 0x320   : > { %6495 = vmatpush3.msra.mxu1 %v654_v30  ;;  %v593_v30 = vld [vmem:[%s9879_s2 + $0x1e0] sm:$0xff] }
 0x321   : > { %6384 = vmatmul.mubr.msk.f32.gmra.mxu1 %vm2644_vm2, %v544_v41  ;;  %6496 = vmatprep.subr.mxu1 %v653_v63  ;;  %v595_v41 = vld [vmem:[%s9879_s2 + $0x1f0] sm:$0xff] }
 0x322   : > { %6386 = vmatprep.mubr.msk.f32.mxu1 %vm2644_vm2, %v545_v7  ;;  %6497 = vmatpush3.msra.mxu1 %v653_v63  ;;  %v596_v63 = vld [vmem:[%s9879_s2 + $0x1f8] sm:$0xff]  ;;  %v597_v7 = vld [vmem:[%s9879_s2 + $0x200] sm:$0xff] }
 0x323   : > { %6498 = vmatprep.subr.mxu1 %v652_v10 }
 0x324   : > { %6499 = vmatpush3.msra.mxu1 %v652_v10  ;;  %v598_v10 = vld [vmem:[%s9879_s2 + $0x208] sm:$0xff] }
 0x325   : > { %6387 = vmatmul.mubr.msk.f32.gmra.mxu1 %vm2644_vm2, %v546_v31  ;;  %6500 = vmatprep.subr.mxu1 %v651_v8  ;;  %v599_v31 = vld [vmem:[%s9879_s2 + $0x210] sm:$0xff] }
 0x326   : > { %6389 = vmatprep.mubr.msk.f32.mxu1 %vm2644_vm2, %v547_v5  ;;  %6501 = vmatpush3.msra.mxu1 %v651_v8  ;;  %v600_v8 = vld [vmem:[%s9879_s2 + $0x218] sm:$0xff]  ;;  %v601_v5 = vld [vmem:[%s9879_s2 + $0x220] sm:$0xff] }
 0x327   : > { %6502 = vmatprep.subr.mxu1 %v650_v4 }
 0x328   : > { %6503 = vmatpush3.msra.mxu1 %v650_v4  ;;  %v602_v4 = vld [vmem:[%s9879_s2 + $0x228] sm:$0xff] }
 0x329   : > { %6390 = vmatmul.mubr.msk.f32.gmra.mxu1 %vm2644_vm2, %v548_v22  ;;  %6504 = vmatprep.subr.mxu1 %v649_v21  ;;  %v603_v22 = vld [vmem:[%s9879_s2 + $0x230] sm:$0xff] }
 0x32a   : > { %6392 = vmatprep.mubr.msk.f32.mxu1 %vm2644_vm2, %v549_v40  ;;  %6505 = vmatpush3.msra.mxu1 %v649_v21  ;;  %v604_v40 = vld [vmem:[%s9879_s2 + $0x238] sm:$0xff] }
 0x32b   : > { %6506 = vmatprep.subr.mxu1 %v648_v26 }
 0x32c   : > { %6507 = vmatpush3.msra.mxu1 %v648_v26  ;;  %v638_v26 = vld [vmem:[%s9882_s5 + $0x30] sm:$0xff] }
 0x32d   : > { %6393 = vmatmul.mubr.msk.f32.gmra.mxu1 %vm2644_vm2, %v550_v43  ;;  %6520 = vmatprep.subr.mxu1 %v8563_v60 }
 0x32e   : > { %6395 = vmatprep.mubr.msk.f32.mxu1 %vm2644_vm2, %v551_v51 }
 0x331   : > { %6396 = vmatmul.mubr.msk.f32.gmra.mxu1 %vm2644_vm2, %v552_v54 }
 0x332   : > { %6398 = vmatprep.mubr.msk.f32.mxu1 %vm2644_vm2, %v553_v50 }
 0x335   : > { %6399 = vmatmul.mubr.msk.f32.gmra.mxu1 %vm2644_vm2, %v554_v23 }
 0x336   : > { %6401 = vmatprep.mubr.msk.f32.mxu1 %vm2644_vm2, %v555_v34 }
 0x339   : > { %6402 = vmatmul.mubr.msk.f32.gmra.mxu1 %vm2644_vm2, %v556_v52 }
 0x33a   : > { %6404 = vmatprep.mubr.msk.f32.mxu1 %vm2644_vm2, %v557_v0 }
 0x33d   : > { %6405 = vmatmul.mubr.msk.f32.gmra.mxu1 %vm2644_vm2, %v558_v38 }
 0x33e   : > { %6407 = vmatprep.mubr.msk.f32.mxu1 %vm2644_vm2, %v559_v35 }
 0x341   : > { %6408 = vmatmul.mubr.msk.f32.gmra.mxu1 %vm2644_vm2, %v560_v18  ;;  %v646_v18 = vld [vmem:[%s9882_s5 + $0x70] sm:$0xff] }
 0x342   : > { %6410 = vmatprep.mubr.msk.f32.mxu1 %vm2644_vm2, %v561_v46 }
 0x345   : > { %6411 = vmatmul.mubr.msk.f32.gmra.mxu1 %vm2644_vm2, %v562_v16  ;;  %v645_v16 = vld [vmem:[%s9882_s5 + $0x68] sm:$0xff] }
 0x346   : > { %6413 = vmatprep.mubr.msk.f32.mxu1 %vm2644_vm2, %v563_v29 }
 0x349   : > { %6414 = vmatmul.mubr.msk.f32.gmra.mxu1 %vm2644_vm2, %v564_v39  ;;  %v644_v39 = vld [vmem:[%s9882_s5 + $0x60] sm:$0xff] }
 0x34a   : > { %6416 = vmatprep.mubr.msk.f32.mxu1 %vm2644_vm2, %v565_v2 }
 0x34d   : > { %6417 = vmatmul.mubr.msk.f32.gmra.mxu1 %vm2644_vm2, %v566_v20  ;;  %v643_v20 = vld [vmem:[%s9882_s5 + $0x58] sm:$0xff] }
 0x34e   : > { %6419 = vmatprep.mubr.msk.f32.mxu1 %vm2644_vm2, %v567_v17 }
 0x351   : > { %6420 = vmatmul.mubr.msk.f32.gmra.mxu1 %vm2644_vm2, %v568_v49 }
 0x352   : > { %6422 = vmatprep.mubr.msk.f32.mxu1 %vm2644_vm2, %v569_v3  ;;  %v641_v3 = vld [vmem:[%s9882_s5 + $0x48] sm:$0xff] }
 0x355   : > { %6423 = vmatmul.mubr.msk.f32.gmra.mxu1 %vm2644_vm2, %v570_v33  ;;  %v640_v33 = vld [vmem:[%s9882_s5 + $0x40] sm:$0xff] }
 0x356   : > { %6425 = vmatprep.mubr.msk.f32.mxu1 %vm2644_vm2, %v571_v44 }
 0x359   : > { %6426 = vmatmul.mubr.msk.f32.gmra.mxu1 %vm2644_vm2, %v572_v25  ;;  %v639_v25 = vld [vmem:[%s9882_s5 + $0x38] sm:$0xff] }
 0x35a   : > { %6428 = vmatprep.mubr.msk.f32.mxu1 %vm2644_vm2, %v573_v6 }
 0x35d   : > { %6429 = vmatmul.mubr.msk.f32.gmra.mxu1 %vm2644_vm2, %v574_v45  ;;  %v710_v45 = vld [vmem:[%s9882_s5 + $0x270] sm:$0xff] }
 0x35e   : > { %6431 = vmatprep.mubr.msk.f32.mxu1 %vm2644_vm2, %v575_v57 }
 0x361   : > { %6432 = vmatmul.mubr.msk.f32.gmra.mxu1 %vm2644_vm2, %v576_v62  ;;  %v637_v62 = vld [vmem:[%s9882_s5 + $0x28] sm:$0xff] }
 0x362   : > { %6434 = vmatprep.mubr.msk.f32.mxu1 %vm2644_vm2, %v577_v42 }
 0x365   : > { %6435 = vmatmul.mubr.msk.f32.gmra.mxu1 %vm2644_vm2, %v578_v12 }
 0x366   : > { %6437 = vmatprep.mubr.msk.f32.mxu1 %vm2644_vm2, %v579_v56  ;;  %v635_v56 = vld [vmem:[%s9882_s5 + $0x18] sm:$0xff] }
 0x369   : > { %6438 = vmatmul.mubr.msk.f32.gmra.mxu1 %vm2644_vm2, %v580_v59  ;;  %v708_v59 = vld [vmem:[%s9882_s5 + $0x260] sm:$0xff] }
 0x36a   : > { %6440 = vmatprep.mubr.msk.f32.mxu1 %vm2644_vm2, %v581_v48 }
 0x36d   : > { %6441 = vmatmul.mubr.msk.f32.gmra.mxu1 %vm2644_vm2, %v582_v61  ;;  %v634_v61 = vld [vmem:[%s9882_s5 + $0x10] sm:$0xff] }
 0x36e   : > { %6443 = vmatprep.mubr.msk.f32.mxu1 %vm2644_vm2, %v583_v58 }
 0x371   : > { %6444 = vmatmul.mubr.msk.f32.gmra.mxu1 %vm2644_vm2, %v584_v14  ;;  %v633_v14 = vld [vmem:[%s9882_s5 + $0x8] sm:$0xff] }
 0x372   : > { %6446 = vmatprep.mubr.msk.f32.mxu1 %vm2644_vm2, %v585_v36  ;;  %v707_v36 = vld [vmem:[%s9882_s5 + $0x258] sm:$0xff] }
 0x375   : > { %6447 = vmatmul.mubr.msk.f32.gmra.mxu1 %vm2644_vm2, %v586_v11 }
 0x376   : > { %6449 = vmatprep.mubr.msk.f32.mxu1 %vm2644_vm2, %v587_v15  ;;  %v706_v15 = vld [vmem:[%s9882_s5 + $0x250] sm:$0xff] }
 0x379   : > { %6450 = vmatmul.mubr.msk.f32.gmra.mxu1 %vm2644_vm2, %v588_v55 }
 0x37a   : > { %6452 = vmatprep.mubr.msk.f32.mxu1 %vm2644_vm2, %v589_v13  ;;  %v695_v13 = vld [vmem:[%s9882_s5 + $0x1f8] sm:$0xff] }
 0x37d   : > { %6453 = vmatmul.mubr.msk.f32.gmra.mxu1 %vm2644_vm2, %v590_v53 }
 0x37e   : > { %6455 = vmatprep.mubr.msk.f32.mxu1 %vm2644_vm2, %v591_v24  ;;  %v694_v24 = vld [vmem:[%s9882_s5 + $0x1f0] sm:$0xff] }
 0x381   : > { %6456 = vmatmul.mubr.msk.f32.gmra.mxu1 %vm2644_vm2, %v592_v27  ;;  %v693_v27 = vld [vmem:[%s9882_s5 + $0x1e8] sm:$0xff] }
 0x382   : > { %6458 = vmatprep.mubr.msk.f32.mxu1 %vm2644_vm2, %v593_v30 }
 0x385   : > { %6459 = vmatmul.mubr.msk.f32.gmra.mxu1 %vm2644_vm2, %v594_v37  ;;  %v692_v37 = vld [vmem:[%s9882_s5 + $0x1e0] sm:$0xff] }
 0x386   : > { %6461 = vmatprep.mubr.msk.f32.mxu1 %vm2644_vm2, %v595_v41  ;;  %v705_v41 = vld [vmem:[%s9882_s5 + $0x248] sm:$0xff] }
 0x389   : > { %6462 = vmatmul.mubr.msk.f32.gmra.mxu1 %vm2644_vm2, %v596_v63 }
 0x38a   : > { %6464 = vmatprep.mubr.msk.f32.mxu1 %vm2644_vm2, %v597_v7  ;;  %v691_v7 = vld [vmem:[%s9882_s5 + $0x1d8] sm:$0xff] }
 0x38d   : > { %6465 = vmatmul.mubr.msk.f32.gmra.mxu1 %vm2644_vm2, %v598_v10 }
 0x38e   : > { %6467 = vmatprep.mubr.msk.f32.mxu1 %vm2644_vm2, %v599_v31  ;;  %v690_v31 = vld [vmem:[%s9882_s5 + $0x1d0] sm:$0xff] }
 0x391   : > { %6468 = vmatmul.mubr.msk.f32.gmra.mxu1 %vm2644_vm2, %v600_v8  ;;  %v704_v8 = vld [vmem:[%s9882_s5 + $0x240] sm:$0xff] }
 0x392   : > { %6470 = vmatprep.mubr.msk.f32.mxu1 %vm2644_vm2, %v601_v5 }
 0x395   : > { %6471 = vmatmul.mubr.msk.f32.gmra.mxu1 %vm2644_vm2, %v602_v4  ;;  %v689_v4 = vld [vmem:[%s9882_s5 + $0x1c8] sm:$0xff] }
 0x396   : > { %6473 = vmatprep.mubr.msk.f32.mxu1 %vm2644_vm2, %v603_v22  ;;  %v703_v22 = vld [vmem:[%s9882_s5 + $0x238] sm:$0xff] }
 0x399   : > { %6474 = vmatmul.mubr.msk.f32.gmra.mxu1 %vm2644_vm2, %v604_v40 }
 0x3cd   : > { %v8685_v43 = vpop.f32.mrf.mxu1 }
 0x3cf   : > { %v2927_v51 = vpop.f32.mrf.mxu1 }
 0x3d1   : > { %v8687_v54 = vpop.f32.mrf.mxu1 }
 0x3d3   : > { %v8689_v50 = vpop.f32.mrf.mxu1 }
 0x3d5   : > { %v8691_v23 = vpop.f32.mrf.mxu1 }
 0x3d7   : > { %v8693_v34 = vpop.f32.mrf.mxu1 }
 0x3d9   : > { %v8695_v52 = vpop.f32.mrf.mxu1 }
 0x3db   : > { %v8697_v0 = vpop.f32.mrf.mxu1 }
 0x3dd   : > { %v6382_v38 = vpop.f32.mrf.mxu1 }
 0x3df   : > { %v2967_v35 = vpop.f32.mrf.mxu1 }
 0x3e0   : > { %6508 = vmatprep.mubr.f32.mxu1 %v2967_v35  ;;  %v685_v35 = vld [vmem:[%s9882_s5 + $0x1a8] sm:$0xff] }
 0x3e1   : > { %v6385_v46 = vpop.f32.mrf.mxu1  ;;  %6509 = vmatmul.mubr.f32.vlgmr.msra.gmra.mxu1 %v6382_v38  ;;  %v700_v38 = vld [vmem:[%s9882_s5 + $0x220] sm:$0xff] }
 0x3e2   : > { %6521 = vmatpush3.msra.mxu1 %v8563_v60  ;;  %v709_v60 = vld [vmem:[%s9882_s5 + $0x268] sm:$0xff] }
 0x3e3   : > { %6522 = vmatprep.subr.mxu1 %v646_v18  ;;  %v2977_v29 = vpop.f32.mrf.mxu1 }
 0x3e4   : > { %6523 = vmatpush3.msra.mxu1 %v646_v18  ;;  %6511 = vmatprep.mubr.f32.mxu1 %v2977_v29 }
 0x3e5   : > { %6524 = vmatprep.subr.mxu1 %v645_v16  ;;  %v6388_v2 = vpop.f32.mrf.mxu1  ;;  %6512 = vmatmul.mubr.f32.gmra.mxu1 %v6385_v46  ;;  %v699_v46 = vld [vmem:[%s9882_s5 + $0x218] sm:$0xff] }
 0x3e6   : > { %6525 = vmatpush3.msra.mxu1 %v645_v16  ;;  %v684_v16 = vld [vmem:[%s9882_s5 + $0x1a0] sm:$0xff] }
 0x3e7   : > { %6526 = vmatprep.subr.mxu1 %v644_v39  ;;  %v2987_v17 = vpop.f32.mrf.mxu1 }
 0x3e8   : > { %6527 = vmatpush3.msra.mxu1 %v644_v39  ;;  %6514 = vmatprep.mubr.f32.mxu1 %v2987_v17  ;;  %v698_v39 = vld [vmem:[%s9882_s5 + $0x210] sm:$0xff]  ;;  %v697_v17 = vld [vmem:[%s9882_s5 + $0x208] sm:$0xff] }
 0x3e9   : > { %6528 = vmatprep.subr.mxu1 %v643_v20  ;;  %v6391_v49 = vpop.f32.mrf.mxu1  ;;  %6515 = vmatmul.mubr.f32.gmra.mxu1 %v6388_v2  ;;  %v683_v2 = vld [vmem:[%s9882_s5 + $0x198] sm:$0xff] }
 0x3ea   : > { %6529 = vmatpush3.msra.mxu1 %v643_v20 }
 0x3eb   : > { %6530 = vmatprep.subr.mxu1 %v642_v32  ;;  %v2997_v21 = vpop.f32.mrf.mxu1 }
 0x3ec   : > { %6531 = vmatpush3.msra.mxu1 %v642_v32  ;;  %6517 = vmatprep.mubr.f32.mxu1 %v2997_v21  ;;  %v682_v32 = vld [vmem:[%s9882_s5 + $0x190] sm:$0xff]  ;;  %v681_v21 = vld [vmem:[%s9882_s5 + $0x188] sm:$0xff] }
 0x3ed   : > { %6532 = vmatprep.subr.mxu1 %v641_v3  ;;  %6518 = vmatmul.mubr.f32.gmra.mxu1 %v6391_v49  ;;  %v6394_v44 = vpop.f32.mrf.mxu1 }
 0x3ee   : > { %6533 = vmatpush3.msra.mxu1 %v641_v3  ;;  %6552 = vmatprep.mubr.f32.mxu1 %v2927_v51  ;;  %v696_v3 = vld [vmem:[%s9882_s5 + $0x200] sm:$0xff] }
 0x3ef   : > { %6534 = vmatprep.subr.mxu1 %v640_v33  ;;  %v3007_v6 = vpop.f32.mrf.mxu1 }
 0x3f0   : > { %6535 = vmatpush3.msra.mxu1 %v640_v33  ;;  %6596 = vmatprep.mubr.f32.mxu0 %v3007_v6 }
 0x3f1   : > { %6536 = vmatprep.subr.mxu1 %v639_v25  ;;  %v6397_v57 = vpop.f32.mrf.mxu1  ;;  %6597 = vmatmul.mubr.f32.vlgmr.msra.gmra.mxu0 %v6394_v44  ;;  %v743_v44 = vld [vmem:[%s9882_s5 + $0x378] sm:$0xff] }
 0x3f2   : > { %6537 = vmatpush3.msra.mxu1 %v639_v25  ;;  %6653 = vmatpush3.msra.mxu0 %v8629_v28  ;;  %v680_v25 = vld [vmem:[%s9882_s5 + $0x180] sm:$0xff] }
 0x3f3   : > { %6538 = vmatprep.subr.mxu1 %v638_v26  ;;  %v3017_v42 = vpop.f32.mrf.mxu1  ;;  %6654 = vmatprep.subr.mxu0 %v710_v45 }
 0x3f4   : > { %6539 = vmatpush3.msra.mxu1 %v638_v26  ;;  %6599 = vmatprep.mubr.f32.mxu0 %v3017_v42  ;;  %v742_v26 = vld [vmem:[%s9882_s5 + $0x370] sm:$0xff]  ;;  %v741_v42 = vld [vmem:[%s9882_s5 + $0x368] sm:$0xff] }
 0x3f5   : > { %6540 = vmatprep.subr.mxu1 %v637_v62  ;;  %6655 = vmatpush3.msra.mxu0 %v710_v45  ;;  %v6400_v12 = vpop.f32.mrf.mxu1 }
 0x3f6   : > { %6541 = vmatpush3.msra.mxu1 %v637_v62  ;;  %6600 = vmatmul.mubr.f32.gmra.mxu0 %v6397_v57  ;;  %v727_v57 = vld [vmem:[%s9882_s5 + $0x2f8] sm:$0xff] }
 0x3f7   : > { %6542 = vmatprep.subr.mxu1 %v636_v47  ;;  %6656 = vmatprep.subr.mxu0 %v709_v60  ;;  %v3027_v48 = vpop.f32.mrf.mxu1 }
 0x3f8   : > { %6543 = vmatpush3.msra.mxu1 %v636_v47  ;;  %6657 = vmatpush3.msra.mxu0 %v709_v60  ;;  %v726_v47 = vld [vmem:[%s9882_s5 + $0x2f0] sm:$0xff] }
 0x3f9   : > { %6544 = vmatprep.subr.mxu1 %v635_v56  ;;  %6658 = vmatprep.subr.mxu0 %v708_v59  ;;  %v6403_v58 = vpop.f32.mrf.mxu1 }
 0x3fa   : > { %6545 = vmatpush3.msra.mxu1 %v635_v56  ;;  %6602 = vmatprep.mubr.f32.mxu0 %v3027_v48 }
 0x3fb   : > { %6546 = vmatprep.subr.mxu1 %v634_v61  ;;  %6659 = vmatpush3.msra.mxu0 %v708_v59  ;;  %v3037_v11 = vpop.f32.mrf.mxu1  ;;  %v725_v59 = vld [vmem:[%s9882_s5 + $0x2e8] sm:$0xff] }
 0x3fc   : > { %6547 = vmatpush3.msra.mxu1 %v634_v61  ;;  %6603 = vmatmul.mubr.f32.gmra.mxu0 %v6400_v12  ;;  %v740_v12 = vld [vmem:[%s9882_s5 + $0x360] sm:$0xff]  ;;  %v739_v61 = vld [vmem:[%s9882_s5 + $0x358] sm:$0xff] }
 0x3fd   : > { %6548 = vmatprep.subr.mxu1 %v633_v14  ;;  %6660 = vmatprep.subr.mxu0 %v707_v36  ;;  %v8761_v55 = vpop.f32.mrf.mxu1 }
 0x3fe   : > { %6549 = vmatpush3.msra.mxu1 %v633_v14  ;;  %6661 = vmatpush3.msra.mxu0 %v707_v36  ;;  %v738_v36 = vld [vmem:[%s9882_s5 + $0x350] sm:$0xff] }
 0x3ff   : > { %6550 = vmatprep.subr.mxu1 %v632_v9  ;;  %6662 = vmatprep.subr.mxu0 %v706_v15  ;;  %v3047_v53 = vpop.f32.mrf.mxu1 }
 0x400   : > { %6551 = vmatpush3.msra.mxu1 %v632_v9  ;;  %6605 = vmatprep.mubr.f32.mxu0 %v3037_v11  ;;  %v723_v9 = vld [vmem:[%s9882_s5 + $0x2d8] sm:$0xff] }
 0x401   : > { %6553 = vmatmul.mubr.f32.vlgmr.msra.gmra.mxu1 %v8685_v43  ;;  %6608 = vmatprep.subr.mxu1 %v695_v13  ;;  %v8770_v28 = vpop.f32.mrf.mxu1  ;;  %v688_v43 = vld [vmem:[%s9882_s5 + $0x1c0] sm:$0xff] }
 0x402   : > { %6555 = vmatprep.mubr.f32.mxu1 %v8689_v50  ;;  %6609 = vmatpush3.msra.mxu1 %v695_v13  ;;  %v687_v50 = vld [vmem:[%s9882_s5 + $0x1b8] sm:$0xff]  ;;  %v722_v13 = vld [vmem:[%s9882_s5 + $0x2d0] sm:$0xff] }
 0x403   : > { %6610 = vmatprep.subr.mxu1 %v694_v24  ;;  %6663 = vmatpush3.msra.mxu0 %v706_v15  ;;  %v8776_v30 = vpop.f32.mrf.mxu1 }
 0x404   : > { %6611 = vmatpush3.msra.mxu1 %v694_v24  ;;  %6606 = vmatmul.mubr.f32.gmra.mxu0 %v6403_v58  ;;  %v724_v58 = vld [vmem:[%s9882_s5 + $0x2e0] sm:$0xff] }
 0x405   : > { %6556 = vmatmul.mubr.f32.gmra.mxu1 %v8687_v54  ;;  %6612 = vmatprep.subr.mxu1 %v693_v27  ;;  %v8785_v63 = vpop.f32.mrf.mxu1  ;;  %v702_v54 = vld [vmem:[%s9882_s5 + $0x230] sm:$0xff]  ;;  %v736_v24 = vld [vmem:[%s9882_s5 + $0x340] sm:$0xff] }
 0x406   : > { %6558 = vmatprep.mubr.f32.mxu1 %v8693_v34  ;;  %6613 = vmatpush3.msra.mxu1 %v693_v27  ;;  %v701_v34 = vld [vmem:[%s9882_s5 + $0x228] sm:$0xff] }
 0x407   : > { %6614 = vmatprep.subr.mxu1 %v692_v37  ;;  %6664 = vmatprep.subr.mxu0 %v705_v41  ;;  %v8791_v10 = vpop.f32.mrf.mxu1  ;;  %v721_v27 = vld [vmem:[%s9882_s5 + $0x2c8] sm:$0xff] }
 0x408   : > { %6615 = vmatpush3.msra.mxu1 %v692_v37  ;;  %6665 = vmatpush3.msra.mxu0 %v705_v41  ;;  %v720_v41 = vld [vmem:[%s9882_s5 + $0x2c0] sm:$0xff] }
 0x409   : > { %6559 = vmatmul.mubr.f32.gmra.mxu1 %v8691_v23  ;;  %6616 = vmatprep.subr.mxu1 %v691_v7  ;;  %v8800_v5 = vpop.f32.mrf.mxu1 }
 0x40a   : > { %6561 = vmatprep.mubr.f32.mxu1 %v8697_v0  ;;  %6617 = vmatpush3.msra.mxu1 %v691_v7  ;;  %v734_v7 = vld [vmem:[%s9882_s5 + $0x330] sm:$0xff] }
 0x40b   : > { %6618 = vmatprep.subr.mxu1 %v690_v31  ;;  %6666 = vmatprep.subr.mxu0 %v704_v8  ;;  %v8809_v40 = vpop.f32.mrf.mxu1 }
 0x40c   : > { %6619 = vmatpush3.msra.mxu1 %v690_v31  ;;  %6667 = vmatpush3.msra.mxu0 %v704_v8  ;;  %v733_v8 = vld [vmem:[%s9882_s5 + $0x328] sm:$0xff] }
 0x40d   : > { %6562 = vmatmul.mubr.f32.gmra.mxu1 %v8695_v52  ;;  %6620 = vmatprep.subr.mxu1 %v689_v4  ;;  %v6418_v51 = vpop.f32.mrf.mxu1  ;;  %v686_v52 = vld [vmem:[%s9882_s5 + $0x1b0] sm:$0xff] }
 0x40e   : > { %6621 = vmatpush3.msra.mxu1 %v689_v4  ;;  %6668 = vmatprep.subr.mxu0 %v703_v22 }
 0x40f   : > { %6622 = vmatprep.subr.mxu1 %v688_v43  ;;  %6669 = vmatpush3.msra.mxu0 %v703_v22  ;;  %v3087_v23 = vpop.f32.mrf.mxu1  ;;  %v732_v22 = vld [vmem:[%s9882_s5 + $0x320] sm:$0xff] }
 0x410   : > { %6623 = vmatpush3.msra.mxu1 %v688_v43  ;;  %6640 = vmatprep.mubr.f32.mxu1 %v3047_v53 }
 0x411   : > { %6670 = vmatprep.subr.mxu0 %v702_v54  ;;  %6624 = vmatprep.subr.mxu1 %v687_v50  ;;  %v8827_v0 = vpop.f32.mrf.mxu1 }
 0x412   : > { %6671 = vmatpush3.msra.mxu0 %v702_v54  ;;  %6625 = vmatpush3.msra.mxu1 %v687_v50  ;;  %v716_v54 = vld [vmem:[%s9882_s5 + $0x2a0] sm:$0xff] }
 0x413   : > { %6672 = vmatprep.subr.mxu0 %v701_v34  ;;  %6626 = vmatprep.subr.mxu1 %v686_v52  ;;  %v3097_v18 = vpop.f32.mrf.mxu1 }
 0x414   : > { %6673 = vmatpush3.msra.mxu0 %v701_v34  ;;  %6627 = vmatpush3.msra.mxu1 %v686_v52  ;;  %v715_v34 = vld [vmem:[%s9882_s5 + $0x298] sm:$0xff] }
 0x415   : > { %6674 = vmatprep.subr.mxu0 %v700_v38  ;;  %6628 = vmatprep.subr.mxu1 %v685_v35  ;;  %v8841_v29 = vpop.f32.mrf.mxu1 }
 0x416   : > { %6675 = vmatpush3.msra.mxu0 %v700_v38  ;;  %6629 = vmatpush3.msra.mxu1 %v685_v35  ;;  %v714_v38 = vld [vmem:[%s9882_s5 + $0x290] sm:$0xff] }
 0x417   : > { %6676 = vmatprep.subr.mxu0 %v699_v46  ;;  %6630 = vmatprep.subr.mxu1 %v684_v16  ;;  %v3107_v20 = vpop.f32.mrf.mxu1 }
 0x418   : > { %6677 = vmatpush3.msra.mxu0 %v699_v46  ;;  %6631 = vmatpush3.msra.mxu1 %v684_v16  ;;  %v713_v46 = vld [vmem:[%s9882_s5 + $0x288] sm:$0xff]  ;;  %v775_v16 = vld [vmem:[%s9882_s5 + $0x478] sm:$0xff] }
 0x419   : > { %6678 = vmatprep.subr.mxu0 %v698_v39  ;;  %6632 = vmatprep.subr.mxu1 %v683_v2  ;;  %v8855_v49 = vpop.f32.mrf.mxu1 }
 0x41a   : > { %6679 = vmatpush3.msra.mxu0 %v698_v39  ;;  %6633 = vmatpush3.msra.mxu1 %v683_v2  ;;  %v774_v2 = vld [vmem:[%s9882_s5 + $0x470] sm:$0xff] }
 0x41b   : > { %6680 = vmatprep.subr.mxu0 %v697_v17  ;;  %6634 = vmatprep.subr.mxu1 %v682_v32  ;;  %v3117_v33 = vpop.f32.mrf.mxu1 }
 0x41c   : > { %6681 = vmatpush3.msra.mxu0 %v697_v17  ;;  %6635 = vmatpush3.msra.mxu1 %v682_v32  ;;  %v773_v32 = vld [vmem:[%s9882_s5 + $0x468] sm:$0xff] }
 0x41d   : > { %6682 = vmatprep.subr.mxu0 %v696_v3  ;;  %6636 = vmatprep.subr.mxu1 %v681_v21  ;;  %v8869_v6 = vpop.f32.mrf.mxu1 }
 0x41e   : > { %6683 = vmatpush3.msra.mxu0 %v696_v3  ;;  %6684 = vmatprep.mubr.f32.mxu0 %v3087_v23  ;;  %v730_v23 = vld [vmem:[%s9882_s5 + $0x310] sm:$0xff]  ;;  %v772_v3 = vld [vmem:[%s9882_s5 + $0x460] sm:$0xff] }
 0x41f   : > { %6637 = vmatpush3.msra.mxu1 %v681_v21  ;;  %6685 = vmatmul.mubr.f32.vlgmr.msra.gmra.mxu0 %v6418_v51  ;;  %v8874_v45 = vpop.f32.mrf.mxu1  ;;  %v731_v51 = vld [vmem:[%s9882_s5 + $0x318] sm:$0xff] }
 0x420   : > { %6740 = vmatprep.subr.mxu0 %v743_v44  ;;  %6638 = vmatprep.subr.mxu1 %v680_v25 }
 0x421   : > { %6741 = vmatpush3.msra.mxu0 %v743_v44  ;;  %6639 = vmatpush3.msra.mxu1 %v680_v25  ;;  %v8879_v62 = vpop.f32.mrf.mxu1  ;;  %v771_v44 = vld [vmem:[%s9882_s5 + $0x458] sm:$0xff]  ;;  %v756_v25 = vld [vmem:[%s9882_s5 + $0x3e0] sm:$0xff] }
 0x422   : > { %6742 = vmatprep.subr.mxu0 %v742_v26  ;;  %6641 = vmatmul.mubr.f32.vlgmr.msra.gmra.mxu1 %v8761_v55  ;;  %v737_v55 = vld [vmem:[%s9882_s5 + $0x348] sm:$0xff] }
 0x423   : > { %6687 = vmatprep.mubr.f32.mxu0 %v3097_v18  ;;  %6696 = vmatprep.subr.mxu1 %v727_v57  ;;  %v8888_v60 = vpop.f32.mrf.mxu1  ;;  %v728_v18 = vld [vmem:[%s9882_s5 + $0x300] sm:$0xff] }
 0x424   : > { %6743 = vmatpush3.msra.mxu0 %v742_v26  ;;  %6643 = vmatprep.mubr.f32.mxu1 %v8776_v30  ;;  %v735_v30 = vld [vmem:[%s9882_s5 + $0x338] sm:$0xff]  ;;  %v770_v26 = vld [vmem:[%s9882_s5 + $0x450] sm:$0xff] }
 0x425   : > { %6688 = vmatmul.mubr.f32.gmra.mxu0 %v8827_v0  ;;  %6697 = vmatpush3.msra.mxu1 %v727_v57  ;;  %v8895_v56 = vpop.f32.mrf.mxu1  ;;  %v729_v0 = vld [vmem:[%s9882_s5 + $0x308] sm:$0xff] }
 0x426   : > { %6744 = vmatprep.subr.mxu0 %v741_v42  ;;  %6698 = vmatprep.subr.mxu1 %v726_v47 }
 0x427   : > { %6745 = vmatpush3.msra.mxu0 %v741_v42  ;;  %6699 = vmatpush3.msra.mxu1 %v726_v47  ;;  %v8900_v48 = vpop.f32.mrf.mxu1  ;;  %v754_v42 = vld [vmem:[%s9882_s5 + $0x3d0] sm:$0xff]  ;;  %v768_v47 = vld [vmem:[%s9882_s5 + $0x440] sm:$0xff] }
 0x428   : > { %6746 = vmatprep.subr.mxu0 %v740_v12  ;;  %6644 = vmatmul.mubr.f32.gmra.mxu1 %v8770_v28 }
 0x429   : > { %6690 = vmatprep.mubr.f32.mxu0 %v3107_v20  ;;  %6700 = vmatprep.subr.mxu1 %v725_v59  ;;  %v8909_v14 = vpop.f32.mrf.mxu1  ;;  %v759_v20 = vld [vmem:[%s9882_s5 + $0x3f8] sm:$0xff] }
 0x42a   : > { %6747 = vmatpush3.msra.mxu0 %v740_v12  ;;  %6646 = vmatprep.mubr.f32.mxu1 %v8791_v10  ;;  %v719_v10 = vld [vmem:[%s9882_s5 + $0x2b8] sm:$0xff]  ;;  %v753_v12 = vld [vmem:[%s9882_s5 + $0x3c8] sm:$0xff] }
 0x42b   : > { %6691 = vmatmul.mubr.f32.gmra.mxu0 %v8841_v29  ;;  %6701 = vmatpush3.msra.mxu1 %v725_v59  ;;  %v8916_v11 = vpop.f32.mrf.mxu1  ;;  %v712_v29 = vld [vmem:[%s9882_s5 + $0x280] sm:$0xff] }
 0x42c   : > { %6748 = vmatprep.subr.mxu0 %v739_v61  ;;  %6702 = vmatprep.subr.mxu1 %v724_v58  ;;  %v752_v59 = vld [vmem:[%s9882_s5 + $0x3c0] sm:$0xff] }
 0x42d   : > { %6749 = vmatpush3.msra.mxu0 %v739_v61  ;;  %6703 = vmatpush3.msra.mxu1 %v724_v58  ;;  %v8921_v15 = vpop.f32.mrf.mxu1  ;;  %v766_v61 = vld [vmem:[%s9882_s5 + $0x430] sm:$0xff]  ;;  %v751_v58 = vld [vmem:[%s9882_s5 + $0x3b8] sm:$0xff] }
 0x42e   : > { %6750 = vmatprep.subr.mxu0 %v738_v36  ;;  %6647 = vmatmul.mubr.f32.gmra.mxu1 %v8785_v63 }
 0x42f   : > { %6693 = vmatprep.mubr.f32.mxu0 %v3117_v33  ;;  %6704 = vmatprep.subr.mxu1 %v723_v9  ;;  %v8930_v53 = vpop.f32.mrf.mxu1  ;;  %v757_v33 = vld [vmem:[%s9882_s5 + $0x3e8] sm:$0xff] }
 0x430   : > { %6751 = vmatpush3.msra.mxu0 %v738_v36  ;;  %6649 = vmatprep.mubr.f32.mxu1 %v8809_v40  ;;  %v717_v40 = vld [vmem:[%s9882_s5 + $0x2a8] sm:$0xff]  ;;  %v750_v36 = vld [vmem:[%s9882_s5 + $0x3b0] sm:$0xff] }
 0x431   : > { %6694 = vmatmul.mubr.f32.gmra.mxu0 %v8855_v49  ;;  %6705 = vmatpush3.msra.mxu1 %v723_v9  ;;  %v8937_v28 = vpop.f32.mrf.mxu1  ;;  %v758_v49 = vld [vmem:[%s9882_s5 + $0x3f0] sm:$0xff]  ;;  %v764_v9 = vld [vmem:[%s9882_s5 + $0x420] sm:$0xff] }
 0x432   : > { %6752 = vmatprep.subr.mxu0 %v737_v55  ;;  %6706 = vmatprep.subr.mxu1 %v722_v13 }
 0x433   : > { %6753 = vmatpush3.msra.mxu0 %v737_v55  ;;  %6707 = vmatpush3.msra.mxu1 %v722_v13  ;;  %v8945_v37 = vpop.f32.mrf.mxu1  ;;  %v763_v55 = vld [vmem:[%s9882_s5 + $0x418] sm:$0xff]  ;;  %v748_v13 = vld [vmem:[%s9882_s5 + $0x3a0] sm:$0xff] }
 0x434   : > { %6754 = vmatprep.subr.mxu0 %v736_v24  ;;  %6650 = vmatmul.mubr.f32.gmra.mxu1 %v8800_v5  ;;  %v718_v5 = vld [vmem:[%s9882_s5 + $0x2b0] sm:$0xff] }
 0x435   : > { %6708 = vmatprep.subr.mxu1 %v721_v27  ;;  %6755 = vmatpush3.msra.mxu0 %v736_v24  ;;  %v8951_v63 = vpop.f32.mrf.mxu1  ;;  %v762_v24 = vld [vmem:[%s9882_s5 + $0x410] sm:$0xff] }
 0x436   : > { %6709 = vmatpush3.msra.mxu1 %v721_v27  ;;  %6756 = vmatprep.subr.mxu0 %v735_v30  ;;  %v761_v27 = vld [vmem:[%s9882_s5 + $0x408] sm:$0xff] }
 0x437   : > { %6710 = vmatprep.subr.mxu1 %v720_v41  ;;  %6757 = vmatpush3.msra.mxu0 %v735_v30  ;;  %v8959_v31 = vpop.f32.mrf.mxu1  ;;  %v746_v30 = vld [vmem:[%s9882_s5 + $0x390] sm:$0xff] }
 0x438   : > { %6711 = vmatpush3.msra.mxu1 %v720_v41  ;;  %6728 = vmatprep.mubr.f32.mxu1 %v8874_v45  ;;  %v755_v45 = vld [vmem:[%s9882_s5 + $0x3d8] sm:$0xff]  ;;  %v760_v41 = vld [vmem:[%s9882_s5 + $0x400] sm:$0xff] }
 0x439   : > { %6758 = vmatprep.subr.mxu0 %v734_v7  ;;  %6712 = vmatprep.subr.mxu1 %v719_v10  ;;  %v8968_v4 = vpop.f32.mrf.mxu1 }
 0x43a   : > { %6759 = vmatpush3.msra.mxu0 %v734_v7  ;;  %6713 = vmatpush3.msra.mxu1 %v719_v10  ;;  %v744_v7 = vld [vmem:[%s9882_s5 + $0x380] sm:$0xff] }
 0x43b   : > { %6760 = vmatprep.subr.mxu0 %v733_v8  ;;  %6714 = vmatprep.subr.mxu1 %v718_v5  ;;  %v8976_v43 = vpop.f32.mrf.mxu1 }
 0x43c   : > { %6761 = vmatpush3.msra.mxu0 %v733_v8  ;;  %6715 = vmatpush3.msra.mxu1 %v718_v5 }
 0x43d   : > { %6762 = vmatprep.subr.mxu0 %v732_v22  ;;  %6716 = vmatprep.subr.mxu1 %v717_v40  ;;  %v8984_v50 = vpop.f32.mrf.mxu1 }
 0x43e   : > { %6763 = vmatpush3.msra.mxu0 %v732_v22  ;;  %6717 = vmatpush3.msra.mxu1 %v717_v40 }
 0x43f   : > { %6764 = vmatprep.subr.mxu0 %v731_v51  ;;  %6718 = vmatprep.subr.mxu1 %v716_v54  ;;  %v8992_v52 = vpop.f32.mrf.mxu1 }
 0x440   : > { %6765 = vmatpush3.msra.mxu0 %v731_v51  ;;  %6719 = vmatpush3.msra.mxu1 %v716_v54 }
 0x441   : > { %6766 = vmatprep.subr.mxu0 %v730_v23  ;;  %6720 = vmatprep.subr.mxu1 %v715_v34  ;;  %v9000_v35 = vpop.f32.mrf.mxu1 }
 0x442   : > { %6767 = vmatpush3.msra.mxu0 %v730_v23  ;;  %6721 = vmatpush3.msra.mxu1 %v715_v34  ;;  %v605_v23 = vld [vmem:[%s9880_s3] sm:$0xff]  ;;  %v607_v34 = vld [vmem:[%s9880_s3 + $0x10] sm:$0xff] }
 0x443   : > { %6768 = vmatprep.subr.mxu0 %v729_v0  ;;  %6722 = vmatprep.subr.mxu1 %v714_v38  ;;  %v9014_v39 = vpop.f32.mrf.mxu1 }
 0x444   : > { %6769 = vmatpush3.msra.mxu0 %v729_v0  ;;  %6723 = vmatpush3.msra.mxu1 %v714_v38 }
 0x445   : > { %6770 = vmatprep.subr.mxu0 %v728_v18  ;;  %6724 = vmatprep.subr.mxu1 %v713_v46  ;;  %v9024_v17 = vpop.f32.mrf.mxu1 }
 0x446   : > { %6771 = vmatpush3.msra.mxu0 %v728_v18  ;;  %6772 = vmatprep.mubr.f32.mxu0 %v8930_v53 }
 0x447   : > { %6725 = vmatpush3.msra.mxu1 %v713_v46  ;;  %6773 = vmatmul.mubr.f32.vlgmr.msra.gmra.mxu0 %v8921_v15  ;;  %v9039_v21 = vpop.f32.mrf.mxu1  ;;  %v749_v15 = vld [vmem:[%s9882_s5 + $0x3a8] sm:$0xff] }
 0x448   : > { %6828 = vmatprep.subr.mxu0 %v775_v16  ;;  %6726 = vmatprep.subr.mxu1 %v712_v29 }
 0x449   : > { %6829 = vmatpush3.msra.mxu0 %v775_v16  ;;  %6727 = vmatpush3.msra.mxu1 %v712_v29 }
 0x44a   : > { %6830 = vmatprep.subr.mxu0 %v774_v2  ;;  %6729 = vmatmul.mubr.f32.vlgmr.msra.gmra.mxu1 %v8869_v6  ;;  %v9052_v6 = vpop.f32.mrf.mxu1 }
 0x44b   : > { %6775 = vmatprep.mubr.f32.mxu0 %v8945_v37  ;;  %6784 = vmatprep.subr.mxu1 %v759_v20 }
 0x44c   : > { %6831 = vmatpush3.msra.mxu0 %v774_v2  ;;  %6731 = vmatprep.mubr.f32.mxu1 %v8888_v60  ;;  %v9062_v57 = vpop.f32.mrf.mxu1 }
 0x44d   : > { %6776 = vmatmul.mubr.f32.gmra.mxu0 %v8937_v28  ;;  %6785 = vmatpush3.msra.mxu1 %v759_v20  ;;  %v747_v28 = vld [vmem:[%s9882_s5 + $0x398] sm:$0xff] }
 0x44e   : > { %6832 = vmatprep.subr.mxu0 %v773_v32  ;;  %6786 = vmatprep.subr.mxu1 %v758_v49  ;;  %v9077_v60 = vpop.f32.mrf.mxu1 }
 0x44f   : > { %6833 = vmatpush3.msra.mxu0 %v773_v32  ;;  %6787 = vmatpush3.msra.mxu1 %v758_v49 }
 0x450   : > { %6834 = vmatprep.subr.mxu0 %v772_v3  ;;  %6732 = vmatmul.mubr.f32.gmra.mxu1 %v8879_v62  ;;  %v769_v62 = vld [vmem:[%s9882_s5 + $0x448] sm:$0xff] }
 0x451   : > { %6778 = vmatprep.mubr.f32.mxu0 %v8959_v31  ;;  %6788 = vmatprep.subr.mxu1 %v757_v33 }
 0x452   : > { %6835 = vmatpush3.msra.mxu0 %v772_v3  ;;  %6734 = vmatprep.mubr.f32.mxu1 %v8900_v48  ;;  %v3247_v48 = vpop.f32.mrf.mxu1 }
 0x453   : > { %6779 = vmatmul.mubr.f32.gmra.mxu0 %v8951_v63  ;;  %6789 = vmatpush3.msra.mxu1 %v757_v33  ;;  %v745_v63 = vld [vmem:[%s9882_s5 + $0x388] sm:$0xff] }
 0x454   : > { %6836 = vmatprep.subr.mxu0 %v771_v44  ;;  %6790 = vmatprep.subr.mxu1 %v756_v25 }
 0x455   : > { %6837 = vmatpush3.msra.mxu0 %v771_v44  ;;  %6791 = vmatpush3.msra.mxu1 %v756_v25 }
 0x456   : > { %6838 = vmatprep.subr.mxu0 %v770_v26  ;;  %6735 = vmatmul.mubr.f32.gmra.mxu1 %v8895_v56  ;;  %v767_v56 = vld [vmem:[%s9882_s5 + $0x438] sm:$0xff] }
 0x457   : > { %6781 = vmatprep.mubr.f32.mxu0 %v8976_v43  ;;  %6792 = vmatprep.subr.mxu1 %v755_v45 }
 0x458   : > { %6839 = vmatpush3.msra.mxu0 %v770_v26  ;;  %6737 = vmatprep.mubr.f32.mxu1 %v8916_v11  ;;  %v6469_v11 = vpop.f32.mrf.mxu1 }
 0x459   : > { %6782 = vmatmul.mubr.f32.gmra.mxu0 %v8968_v4  ;;  %6793 = vmatpush3.msra.mxu1 %v755_v45 }
 0x45a   : > { %6840 = vmatprep.subr.mxu0 %v769_v62  ;;  %6794 = vmatprep.subr.mxu1 %v754_v42  ;;  %v3257_v53 = vpop.f32.mrf.mxu1 }
 0x45b   : > { %6841 = vmatpush3.msra.mxu0 %v769_v62  ;;  %6795 = vmatpush3.msra.mxu1 %v754_v42 }
 0x45c   : > { %6842 = vmatprep.subr.mxu0 %v768_v47  ;;  %6738 = vmatmul.mubr.f32.gmra.mxu1 %v8909_v14  ;;  %v765_v14 = vld [vmem:[%s9882_s5 + $0x428] sm:$0xff]  ;;  %v6472_v37 = vpop.f32.mrf.mxu1 }
 0x45d   : > { %6796 = vmatprep.subr.mxu1 %v753_v12  ;;  %6843 = vmatpush3.msra.mxu0 %v768_v47 }
 0x45e   : > { %6797 = vmatpush3.msra.mxu1 %v753_v12  ;;  %6844 = vmatprep.subr.mxu0 %v767_v56  ;;  %v3267_v10 = vpop.f32.mrf.mxu1 }
 0x45f   : > { %6798 = vmatprep.subr.mxu1 %v752_v59  ;;  %6845 = vmatpush3.msra.mxu0 %v767_v56 }
 0x460   : > { %6799 = vmatpush3.msra.mxu1 %v752_v59  ;;  %6816 = vmatprep.mubr.f32.mxu1 %v8992_v52  ;;  %v6475_v31 = vpop.f32.mrf.mxu1 }
 0x461   : > { %6846 = vmatprep.subr.mxu0 %v766_v61  ;;  %6800 = vmatprep.subr.mxu1 %v751_v58 }
 0x462   : > { %6847 = vmatpush3.msra.mxu0 %v766_v61  ;;  %6801 = vmatpush3.msra.mxu1 %v751_v58  ;;  %v3277_v8 = vpop.f32.mrf.mxu1 }
 0x463   : > { %6848 = vmatprep.subr.mxu0 %v765_v14  ;;  %6802 = vmatprep.subr.mxu1 %v750_v36 }
 0x464   : > { %6849 = vmatpush3.msra.mxu0 %v765_v14  ;;  %6803 = vmatpush3.msra.mxu1 %v750_v36 }
 0x465   : > { %6850 = vmatprep.subr.mxu0 %v764_v9  ;;  %6804 = vmatprep.subr.mxu1 %v749_v15 }
 0x466   : > { %6851 = vmatpush3.msra.mxu0 %v764_v9  ;;  %6805 = vmatpush3.msra.mxu1 %v749_v15 }
 0x467   : > { %6852 = vmatprep.subr.mxu0 %v763_v55  ;;  %6806 = vmatprep.subr.mxu1 %v748_v13 }
 0x468   : > { %6853 = vmatpush3.msra.mxu0 %v763_v55  ;;  %6807 = vmatpush3.msra.mxu1 %v748_v13 }
 0x469   : > { %6854 = vmatprep.subr.mxu0 %v762_v24  ;;  %6808 = vmatprep.subr.mxu1 %v747_v28 }
 0x46a   : > { %6855 = vmatpush3.msra.mxu0 %v762_v24  ;;  %6809 = vmatpush3.msra.mxu1 %v747_v28 }
 0x46b   : > { %6856 = vmatprep.subr.mxu0 %v761_v27  ;;  %6810 = vmatprep.subr.mxu1 %v746_v30 }
 0x46c   : > { %6857 = vmatpush3.msra.mxu0 %v761_v27  ;;  %6811 = vmatpush3.msra.mxu1 %v746_v30 }
 0x46d   : > { %6858 = vmatprep.subr.mxu0 %v760_v41  ;;  %6812 = vmatprep.subr.mxu1 %v745_v63 }
 0x46e   : > { %6859 = vmatpush3.msra.mxu0 %v760_v41  ;;  %6860 = vmatprep.mubr.f32.mxu0 %v3247_v48 }
 0x46f   : > { %6813 = vmatpush3.msra.mxu1 %v745_v63  ;;  %6861 = vmatmul.mubr.f32.vlgmr.msra.gmra.mxu0 %v9077_v60 }
 0x470   : > { %6814 = vmatprep.subr.mxu1 %v744_v7  ;;  %6863 = vmatprep.mubr.f32.mxu0 %v3257_v53 }
 0x471   : > { %6815 = vmatpush3.msra.mxu1 %v744_v7 }
 0x472   : > { %6817 = vmatmul.mubr.f32.vlgmr.msra.gmra.mxu1 %v8984_v50 }
 0x473   : > { %6819 = vmatprep.mubr.f32.mxu1 %v9014_v39  ;;  %6864 = vmatmul.mubr.f32.gmra.mxu0 %v6469_v11 }
 0x474   : > { %6866 = vmatprep.mubr.f32.mxu0 %v3267_v10 }
 0x476   : > { %6820 = vmatmul.mubr.f32.gmra.mxu1 %v9000_v35 }
 0x477   : > { %6822 = vmatprep.mubr.f32.mxu1 %v9039_v21  ;;  %6867 = vmatmul.mubr.f32.gmra.mxu0 %v6472_v37 }
 0x478   : > { %6869 = vmatprep.mubr.f32.mxu0 %v3277_v8 }
 0x47a   : > { %6823 = vmatmul.mubr.f32.gmra.mxu1 %v9024_v17 }
 0x47b   : > { %6825 = vmatprep.mubr.f32.mxu1 %v9062_v57  ;;  %6870 = vmatmul.mubr.f32.gmra.mxu0 %v6475_v31 }
 0x47c   : > { %6888 = vmatprep.mubr.msk.f32.mxu0 %vm2644_vm2, %v605_v23 }
 0x47e   : > { %6826 = vmatmul.mubr.f32.gmra.mxu1 %v9052_v6 }
 0x47f   : > { %6891 = vmatprep.mubr.msk.f32.mxu1 %vm2644_vm2, %v607_v34 }
 0x4a1   : > { %v9143_v5 = vpop.f32.mrf.mxu1 }
 0x4a3   : > { %v9145_v4 = vpop.f32.mrf.mxu1 }
 0x4a5   : > { %v6513_v22 = vpop.f32.mrf.mxu1 }
 0x4a7   : > { %v9147_v40 = vpop.f32.mrf.mxu1 }
 0x4a9   : > { %v6516_v43 = vpop.f32.mrf.mxu1 }
 0x4ab   : > { %v3372_v51 = vpop.f32.mrf.mxu1 }
 0x4ad   : > { %v6519_v54 = vpop.f32.mrf.mxu1 }
 0x4af   : > { %v3382_v52 = vpop.f32.mrf.mxu1 }
 0x4b1   : > { %v9149_v50 = vpop.f32.mrf.mxu0 }
 0x4b3   : > { %v9159_v38 = vpop.f32.mrf.mxu0 }
 0x4b6   : > { %v6601_v18 = vpop.f32.mrf.mxu0 }
 0x4b8   : > { %v3572_v16 = vpop.f32.mrf.mxu0 }
 0x4bc   : > { %v6604_v39 = vpop.f32.mrf.mxu0 }
 0x4be   : > { %v3582_v20 = vpop.f32.mrf.mxu0 }
 0x4c1   : > { %v6554_v0 = vpop.f32.mrf.mxu1 }
 0x4c3   : > { %v9161_v35 = vpop.f32.mrf.mxu1 }
 0x4c4   : > { %v6607_v32 = vpop.f32.mrf.mxu0 }
 0x4c5   : > { %v6557_v46 = vpop.f32.mrf.mxu1 }
 0x4c6   : > { %v3592_v3 = vpop.f32.mrf.mxu0  ;;  %v3473_v31 = vadd.f32 %v6557_v46, %v6513_v22  ;;  %v3458_v46 = vadd.f32 %v9161_v35, %v9145_v4 }
 0x4c7   : > { %v3467_v29 = vpop.f32.mrf.mxu1 }
 0x4c8   : > { %v3468_v1 = vadd.f32 %v3467_v29, %v9147_v40 }
 0x4c9   : > { %v6560_v2 = vpop.f32.mrf.mxu1 }
 0x4ca   : > { %v3483_v37 = vadd.f32 %v6560_v2, %v6516_v43 }
 0x4cb   : > { %v3477_v17 = vpop.f32.mrf.mxu1 }
 0x4cc   : > { %v3478_v63 = vadd.f32 %v3477_v17, %v3372_v51  ;;  %v3606_v23 = vadd.f32 %v6604_v39, %v3483_v37  ;;  %v3604_v51 = vadd.f32 %v6601_v18, %v3473_v31  ;;  %v3603_v39 = vadd.f32 %v3572_v16, %v3468_v1 }
 0x4cd   : > { %v6563_v49 = vpop.f32.mrf.mxu1 }
 0x4ce   : > { %v3493_v7 = vadd.f32 %v6563_v49, %v6519_v54 }
 0x4cf   : > { %v3487_v33 = vpop.f32.mrf.mxu1 }
 0x4d0   : > { %v3488_v8 = vadd.f32 %v3487_v33, %v3382_v52 }
 0x4d2   : > { %v3607_v22 = vadd.f32 %v3592_v3, %v3488_v8 }
 0x4df   : > { %v9163_v21 = vpop.f32.mrf.mxu0 }
 0x4e1   : > { %v9167_v25 = vpop.f32.mrf.mxu0 }
 0x4e2   : > { %v9165_v44 = vpop.f32.mrf.mxu1  ;;  %9892 = vst [vmem:[#allocation5_spill] sm:$0xff] %v9167_v25  ;;  %v3463_v25 = vadd.f32 %v6554_v0, %v9143_v5 }
 0x4e4   : > { %v9169_v6 = vpop.f32.mrf.mxu1  ;;  %v3602_v49 = vadd.f32 %v9149_v50, %v3463_v25 }
 0x4e5   : > { %v9171_v26 = vpop.f32.mrf.mxu0 }
 0x4e6   : > { %v3715_v3 = vadd.f32 %v9165_v44, %v3602_v49 }
 0x4e7   : > { %v9173_v57 = vpop.f32.mrf.mxu0 }
 0x4e8   : > { %v6645_v45 = vpop.f32.mrf.mxu1 }
 0x4e9   : > { %v3717_v29 = vadd.f32 %v6645_v45, %v3604_v51 }
 0x4ea   : > { %v3685_v62 = vpop.f32.mrf.mxu1 }
 0x4eb   : > { %v6692_v42 = vpop.f32.mrf.mxu0  ;;  %v3716_v33 = vadd.f32 %v3685_v62, %v3603_v39  ;;  %v3830_v1 = vadd.f32 %v9171_v26, %v3717_v29 }
 0x4ed   : > { %v3808_v60 = vpop.f32.mrf.mxu0  ;;  %v3829_v50 = vadd.f32 %v9173_v57, %v3716_v33 }
 0x4ee   : > { %v6648_v47 = vpop.f32.mrf.mxu1 }
 0x4f0   : > { %v3695_v12 = vpop.f32.mrf.mxu1 }
 0x4f1   : > { %v6695_v56 = vpop.f32.mrf.mxu0 }
 0x4f3   : > { %v3818_v48 = vpop.f32.mrf.mxu0 }
 0x4f4   : > { %v6651_v59 = vpop.f32.mrf.mxu1 }
 0x4f6   : > { %v3705_v58 = vpop.f32.mrf.mxu1 }
 0x4f7   : > { %v3720_v17 = vadd.f32 %v3705_v58, %v3607_v22 }
 0x4f9   : > { %v3833_v16 = vadd.f32 %v3818_v48, %v3720_v17 }
 0x507   : > { %v9175_v61 = vpop.f32.mrf.mxu0 }
 0x508   : > { %9893 = vst [vmem:[#allocation6_spill] sm:$0xff] %v9175_v61  ;;  %v3719_v61 = vadd.f32 %v6648_v47, %v3606_v23 }
 0x509   : > { %v9179_v36 = vpop.f32.mrf.mxu0 }
 0x50a   : > { %v9177_v14 = vpop.f32.mrf.mxu1  ;;  %9894 = vst [vmem:[#allocation7_spill] sm:$0xff] %v9179_v36 }
 0x50c   : > { %v9181_v11 = vpop.f32.mrf.mxu1 }
 0x50d   : > { %9895 = vst [vmem:[#allocation8_spill] sm:$0xff] %v9181_v11  ;;  %v9183_v9 = vpop.f32.mrf.mxu0  ;;  %v3608_v11 = vadd.f32 %v6607_v32, %v3493_v7 }
 0x50e   : > { %9896 = vst [vmem:[#allocation9_spill] sm:$0xff] %v9183_v9 }
 0x50f   : > { %v9185_v55 = vpop.f32.mrf.mxu0  ;;  %v3721_v2 = vadd.f32 %v6651_v59, %v3608_v11  ;;  %v3601_v59 = vadd.f32 %v9159_v38, %v3458_v46  ;;  %v4289_v38 = vsub.s32 1, %v8286_v19 }
 0x510   : > { %v6733_v15 = vpop.f32.mrf.mxu1  ;;  %9897 = vst [vmem:[#allocation10_spill] sm:$0xff] %v9185_v55  ;;  %v3605_v55 = vadd.f32 %v3582_v20, %v3478_v63  ;;  %v3832_v20 = vadd.f32 %v6692_v42, %v3719_v61  ;;  %v3828_v61 = vadd.f32 %v9163_v21, %v3715_v3 }
 0x511   : > { %v3834_v18 = vadd.f32 %v6695_v56, %v3721_v2  ;;  %v3714_v45 = vadd.f32 %v9169_v6, %v3601_v59  ;;  %v3943_v42 = vadd.f32 %v6733_v15, %v3830_v1  ;;  %v9902_v2 = vld [vmem:[#allocation6_spill] sm:$0xff]  ;;  %v9903_v49 = vld [vmem:[#allocation7_spill] sm:$0xff] }
 0x512   : > { %v3911_v13 = vpop.f32.mrf.mxu1  ;;  %v3718_v54 = vadd.f32 %v3695_v12, %v3605_v55  ;;  %v3941_v48 = vadd.f32 %v9177_v14, %v3828_v61  ;;  %v806_v61 = vld [vmem:[%s9883_s6 + $0xf0] sm:$0xff] }
 0x513   : > { %v6780_v53 = vpop.f32.mrf.mxu0  ;;  %v3942_v44 = vadd.f32 %v3911_v13, %v3829_v50  ;;  %v7357_v13 = vld [vmem:[%s9886_s9] sm:$0x1f] }
 0x514   : > { %v3831_v47 = vadd.f32 %v3808_v60, %v3718_v54  ;;  %v9900_v7 = vld [vmem:[#allocation8_spill] sm:$0xff]  ;;  %v4290_v31 = vrot.slane %v7357_v13, %v4289_v38  ;;  %v4054_v22 = vadd.f32 %v9902_v2, %v3941_v48  ;;  %v790_v38 = vld [vmem:[%s9883_s6 + $0x70] sm:$0xff]  ;;  %v785_v13 = vld [vmem:[%s9883_s6 + $0x48] sm:$0xff] }
 0x515   : > { %v4034_v28 = vpop.f32.mrf.mxu0  ;;  %v804_v48 = vld [vmem:[%s9883_s6 + $0xe0] sm:$0xff] }
 0x516   : > { %v6736_v24 = vpop.f32.mrf.mxu1  ;;  %v621_v2 = vld [vmem:[%s9880_s3 + $0x80] sm:$0xff] }
 0x517   : > { %v3945_v0 = vadd.f32 %v6736_v24, %v3832_v20 }
 0x518   : > { %v3921_v27 = vpop.f32.mrf.mxu1 }
 0x519   : > { %v6783_v30 = vpop.f32.mrf.mxu0  ;;  %v3944_v4 = vadd.f32 %v3921_v27, %v3831_v47  ;;  %v4058_v56 = vadd.f32 %v6780_v53, %v3945_v0  ;;  %v9898_v27 = vld [vmem:[#allocation5_spill] sm:$0xff] }
 0x51a   : > { %v3827_v6 = vadd.f32 %v9898_v27, %v3714_v45  ;;  %v613_v27 = vld [vmem:[%s9880_s3 + $0x40] sm:$0xff] }
 0x51b   : > { %v4044_v10 = vpop.f32.mrf.mxu0  ;;  %v4057_v26 = vadd.f32 %v4034_v28, %v3944_v4  ;;  %v9901_v28 = vld [vmem:[#allocation10_spill] sm:$0xff] }
 0x51c   : > { %v6739_v41 = vpop.f32.mrf.mxu1  ;;  %v3940_v21 = vadd.f32 %v9900_v7, %v3827_v6  ;;  %v788_v6 = vld [vmem:[%s9883_s6 + $0x60] sm:$0xff]  ;;  %v801_v7 = vld [vmem:[%s9883_s6 + $0xc8] sm:$0xff] }
 0x51d   : > { %v3947_v35 = vadd.f32 %v6739_v41, %v3834_v18  ;;  %v9899_v41 = vld [vmem:[#allocation9_spill] sm:$0xff] }
 0x51e   : > { %v3931_v36 = vpop.f32.mrf.mxu1  ;;  %v4056_v63 = vadd.f32 %v9899_v41, %v3943_v42  ;;  %v4053_v33 = vadd.f32 %v9903_v49, %v3940_v21  ;;  %v609_v42 = vld [vmem:[%s9880_s3 + $0x20] sm:$0xff]  ;;  %v787_v41 = vld [vmem:[%s9883_s6 + $0x58] sm:$0xff] }
 0x51f   : > { %v3946_v60 = vadd.f32 %v3931_v36, %v3833_v16  ;;  %v4060_v24 = vadd.f32 %v6783_v30, %v3947_v35  ;;  %v4055_v30 = vadd.f32 %v9901_v28, %v3942_v44  ;;  %v610_v44 = vld [vmem:[%s9880_s3 + $0x28] sm:$0xff]  ;;  %v617_v21 = vld [vmem:[%s9880_s3 + $0x60] sm:$0xff]  ;;  %v779_v49 = vld [vmem:[%s9883_s6 + $0x18] sm:$0xff] }
 0x520   : > { %v618_v28 = vld [vmem:[%s9880_s3 + $0x68] sm:$0xff] }
 0x521   : > { %v4059_v53 = vadd.f32 %v4044_v10, %v3946_v60  ;;  %v807_v60 = vld [vmem:[%s9883_s6 + $0xf8] sm:$0xff] }
 0x52f   : > { %v9187_v34 = vpop.f32.mrf.mxu0 }
 0x531   : > { %v9190_v9 = vpop.f32.mrf.mxu0 }
 0x532   : > { %v9193_v43 = vpop.f32.mrf.mxu1 }
 0x533   : > { %v6865_v52 = vpop.f32.mrf.mxu0  ;;  %v4167_v20 = vadd.f32 %v9193_v43, %v4054_v22  ;;  %v782_v22 = vld [vmem:[%s9883_s6 + $0x30] sm:$0xff] }
 0x534   : > { %v4127_v40 = vpop.f32.mrf.mxu1 }
 0x535   : > { %v4250_v32 = vpop.f32.mrf.mxu0  ;;  %v4166_v59 = vadd.f32 %v4127_v40, %v4053_v33  ;;  %v794_v33 = vld [vmem:[%s9883_s6 + $0x90] sm:$0xff] }
 0x536   : > { %v6821_v5 = vpop.f32.mrf.mxu1 }
 0x537   : > { %v6868_v12 = vpop.f32.mrf.mxu0  ;;  %v4169_v14 = vadd.f32 %v6821_v5, %v4056_v63  ;;  %v4279_v43 = vadd.f32 %v9190_v9, %v4166_v59  ;;  %v615_v63 = vld [vmem:[%s9880_s3 + $0x50] sm:$0xff]  ;;  %v776_v59 = vld [vmem:[%s9883_s6] sm:$0xff] }
 0x538   : > { %v4137_v11 = vpop.f32.mrf.mxu1 }
 0x539   : > { %v4260_v25 = vpop.f32.mrf.mxu0  ;;  %v4168_v39 = vadd.f32 %v4137_v11, %v4055_v30  ;;  %v4282_v0 = vadd.f32 %v6865_v52, %v4169_v14  ;;  %v4280_v11 = vadd.f32 %v9187_v34, %v4167_v20  ;;  %v4291_v34 = vadd.f32 %v4290_v31, %v4279_v43  ;;  %v784_v30 = vld [vmem:[%s9883_s6 + $0x40] sm:$0xff]  ;;  %v799_v14 = vld [vmem:[%s9883_s6 + $0xb8] sm:$0xff]  ;;  %v822_v43 = vld [vmem:[%s9883_s6 + $0x170] sm:$0xff] }
 0x53a   : > { %v6824_v62 = vpop.f32.mrf.mxu1  ;;  %v795_v20 = vld [vmem:[%s9883_s6 + $0x98] sm:$0xff] }
 0x53b   : > { %v4171_v55 = vadd.f32 %v6824_v62, %v4058_v56  ;;  %v6871_v37 = vpop.f32.mrf.mxu0  ;;  %v4281_v5 = vadd.f32 %v4250_v32, %v4168_v39  ;;  %v4294_v4 = vadd.f32 %v4290_v31, %v4282_v0  ;;  %v4292_v40 = vadd.f32 %v4290_v31, %v4280_v11  ;;  %v608_v62 = vld [vmem:[%s9880_s3 + $0x18] sm:$0xff]  ;;  %v622_v39 = vld [vmem:[%s9880_s3 + $0x88] sm:$0xff]  ;;  %v778_v0 = vld [vmem:[%s9883_s6 + $0x10] sm:$0xff] }
 0x53c   : > { %v4147_v58 = vpop.f32.mrf.mxu1  ;;  %v4299_v9 = vmax.f32 %v4291_v34, 0.0  ;;  %v791_v56 = vld [vmem:[%s9883_s6 + $0x78] sm:$0xff]  ;;  %v836_v34 = vld [vmem:[%s9883_s6 + $0x1e0] sm:$0xff] }
 0x53d   : > { %v4170_v15 = vadd.f32 %v4147_v58, %v4057_v26  ;;  %v4284_v23 = vadd.f32 %v6868_v12, %v4171_v55  ;;  %v4270_v46 = vpop.f32.mrf.mxu0  ;;  %v4293_v52 = vadd.f32 %v4290_v31, %v4281_v5  ;;  %v4302_v32 = vmax.f32 %v4294_v4, 0.0  ;;  %v611_v58 = vld [vmem:[%s9880_s3 + $0x30] sm:$0xff]  ;;  %v805_v55 = vld [vmem:[%s9883_s6 + $0xe8] sm:$0xff]  ;;  %v823_v5 = vld [vmem:[%s9883_s6 + $0x178] sm:$0xff] }
 0x53e   : > { %v6827_v57 = vpop.f32.mrf.mxu1  ;;  %v4300_v50 = vmax.f32 %v4292_v40, 0.0  ;;  %v789_v26 = vld [vmem:[%s9883_s6 + $0x68] sm:$0xff] }
 0x53f   : > { %v4173_v36 = vadd.f32 %v6827_v57, %v4060_v24  ;;  %v4283_v29 = vadd.f32 %v4260_v25, %v4170_v15  ;;  %v4296_v47 = vadd.f32 %v4290_v31, %v4284_v23  ;;  %v4301_v45 = vmax.f32 %v4293_v52, 0.0  ;;  %v606_v25 = vld [vmem:[%s9880_s3 + $0x8] sm:$0xff]  ;;  %v612_v24 = vld [vmem:[%s9880_s3 + $0x38] sm:$0xff]  ;;  %v802_v15 = vld [vmem:[%s9883_s6 + $0xd0] sm:$0xff] }
 0x540   : > { %v4157_v8 = vpop.f32.mrf.mxu1  ;;  %v614_v57 = vld [vmem:[%s9880_s3 + $0x48] sm:$0xff]  ;;  %v783_v23 = vld [vmem:[%s9883_s6 + $0x38] sm:$0xff]  ;;  %v838_v52 = vld [vmem:[%s9883_s6 + $0x1f0] sm:$0xff] }
 0x541   : > { %v4286_v51 = vadd.f32 %v6871_v37, %v4173_v36  ;;  %v4172_v54 = vadd.f32 %v4157_v8, %v4059_v53  ;;  %v4295_v12 = vadd.f32 %v4290_v31, %v4283_v29  ;;  %v4304_v35 = vmax.f32 %v4296_v47, 0.0  ;;  %v803_v37 = vld [vmem:[%s9883_s6 + $0xd8] sm:$0xff]  ;;  %v786_v36 = vld [vmem:[%s9883_s6 + $0x50] sm:$0xff]  ;;  %v781_v29 = vld [vmem:[%s9883_s6 + $0x28] sm:$0xff] }
 0x542   : > { %v616_v53 = vld [vmem:[%s9880_s3 + $0x58] sm:$0xff]  ;;  %v619_v8 = vld [vmem:[%s9880_s3 + $0x70] sm:$0xff]  ;;  %v793_v47 = vld [vmem:[%s9883_s6 + $0x88] sm:$0xff] }
 0x543   : > { %v4298_v10 = vadd.f32 %v4290_v31, %v4286_v51  ;;  %v4285_v17 = vadd.f32 %v4270_v46, %v4172_v54  ;;  %v4303_v16 = vmax.f32 %v4295_v12, 0.0  ;;  %v620_v51 = vld [vmem:[%s9880_s3 + $0x78] sm:$0xff]  ;;  %v798_v54 = vld [vmem:[%s9883_s6 + $0xb0] sm:$0xff]  ;;  %v797_v46 = vld [vmem:[%s9883_s6 + $0xa8] sm:$0xff] }
 0x544   : > { %v839_v12 = vld [vmem:[%s9883_s6 + $0x1f8] sm:$0xff]  ;;  %v837_v40 = vld [vmem:[%s9883_s6 + $0x1e8] sm:$0xff] }
 0x545   : > { %v4306_v18 = vmax.f32 %v4298_v10, 0.0  ;;  %v4297_v3 = vadd.f32 %v4290_v31, %v4285_v17  ;;  %v800_v31 = vld [vmem:[%s9883_s6 + $0xc0] sm:$0xff] }
 0x546   : > { %v796_v10 = vld [vmem:[%s9883_s6 + $0xa0] sm:$0xff] }
 0x547   : > { %v4305_v1 = vmax.f32 %v4297_v3, 0.0  ;;  %6872 = vmatprep.subr.mxu0 %v4306_v18  ;;  %7300 = vmatprep.subr.mxu1 %v4306_v18  ;;  %v780_v17 = vld [vmem:[%s9883_s6 + $0x20] sm:$0xff] }
 0x548   : > { %6873 = vmatpush3.msra.mxu0 %v4306_v18  ;;  %7308 = vmatpush3.msra.mxu1 %v4306_v18  ;;  %v777_v18 = vld [vmem:[%s9883_s6 + $0x8] sm:$0xff]  ;;  %v792_v3 = vld [vmem:[%s9883_s6 + $0x80] sm:$0xff] }
 0x549   : > { %6874 = vmatprep.subr.mxu0 %v4305_v1  ;;  %7301 = vmatprep.subr.mxu1 %v4305_v1 }
 0x54a   : > { %6875 = vmatpush3.msra.mxu0 %v4305_v1  ;;  %7309 = vmatpush3.msra.mxu1 %v4305_v1 }
 0x54b   : > { %6876 = vmatprep.subr.mxu0 %v4304_v35  ;;  %7302 = vmatprep.subr.mxu1 %v4304_v35 }
 0x54c   : > { %6877 = vmatpush3.msra.mxu0 %v4304_v35  ;;  %7310 = vmatpush3.msra.mxu1 %v4304_v35 }
 0x54d   : > { %6878 = vmatprep.subr.mxu0 %v4303_v16  ;;  %7303 = vmatprep.subr.mxu1 %v4303_v16 }
 0x54e   : > { %6879 = vmatpush3.msra.mxu0 %v4303_v16  ;;  %7311 = vmatpush3.msra.mxu1 %v4303_v16  ;;  %v821_v16 = vld [vmem:[%s9883_s6 + $0x168] sm:$0xff] }
 0x54f   : > { %6880 = vmatprep.subr.mxu0 %v4302_v32  ;;  %7304 = vmatprep.subr.mxu1 %v4302_v32 }
 0x550   : > { %6881 = vmatpush3.msra.mxu0 %v4302_v32  ;;  %7312 = vmatpush3.msra.mxu1 %v4302_v32  ;;  %v820_v32 = vld [vmem:[%s9883_s6 + $0x160] sm:$0xff] }
 0x551   : > { %6882 = vmatprep.subr.mxu0 %v4301_v45  ;;  %7305 = vmatprep.subr.mxu1 %v4301_v45 }
 0x552   : > { %6883 = vmatpush3.msra.mxu0 %v4301_v45  ;;  %7313 = vmatpush3.msra.mxu1 %v4301_v45  ;;  %v819_v45 = vld [vmem:[%s9883_s6 + $0x158] sm:$0xff] }
 0x553   : > { %6884 = vmatprep.subr.mxu0 %v4300_v50  ;;  %7306 = vmatprep.subr.mxu1 %v4300_v50 }
 0x554   : > { %6885 = vmatpush3.msra.mxu0 %v4300_v50  ;;  %7314 = vmatpush3.msra.mxu1 %v4300_v50  ;;  %v835_v50 = vld [vmem:[%s9883_s6 + $0x1d8] sm:$0xff] }
 0x555   : > { %6886 = vmatprep.subr.mxu0 %v4299_v9  ;;  %7307 = vmatprep.subr.mxu1 %v4299_v9 }
 0x556   : > { %6887 = vmatpush3.msra.mxu0 %v4299_v9  ;;  %7315 = vmatpush3.msra.mxu1 %v4299_v9  ;;  %v818_v9 = vld [vmem:[%s9883_s6 + $0x150] sm:$0xff] }
 0x557   : > { %6889 = vmatmul.mubr.msk.f32.vlgmr.msra.gmra.mxu0 %vm2644_vm2, %v606_v25  ;;  %6892 = vmatmul.mubr.msk.f32.vlgmr.msra.gmra.mxu1 %vm2644_vm2, %v608_v62  ;;  %v834_v25 = vld [vmem:[%s9883_s6 + $0x1d0] sm:$0xff]  ;;  %v817_v62 = vld [vmem:[%s9883_s6 + $0x148] sm:$0xff] }
 0x558   : > { %6894 = vmatprep.mubr.msk.f32.mxu1 %vm2644_vm2, %v609_v42  ;;  %6915 = vmatprep.subr.mxu1 %v807_v60  ;;  %v833_v42 = vld [vmem:[%s9883_s6 + $0x1c8] sm:$0xff] }
 0x559   : > { %6916 = vmatpush3.msra.mxu1 %v807_v60  ;;  %6950 = vmatprep.subr.mxu0 %v791_v56  ;;  %v816_v60 = vld [vmem:[%s9883_s6 + $0x140] sm:$0xff] }
 0x55a   : > { %6917 = vmatprep.subr.mxu1 %v806_v61  ;;  %6951 = vmatpush3.msra.mxu0 %v791_v56  ;;  %v832_v56 = vld [vmem:[%s9883_s6 + $0x1c0] sm:$0xff] }
 0x55b   : > { %6895 = vmatmul.mubr.msk.f32.gmra.mxu1 %vm2644_vm2, %v610_v44  ;;  %6952 = vmatprep.subr.mxu0 %v790_v38  ;;  %v831_v44 = vld [vmem:[%s9883_s6 + $0x1b8] sm:$0xff] }
 0x55c   : > { %6897 = vmatprep.mubr.msk.f32.mxu1 %vm2644_vm2, %v611_v58  ;;  %6918 = vmatpush3.msra.mxu1 %v806_v61  ;;  %v815_v61 = vld [vmem:[%s9883_s6 + $0x138] sm:$0xff]  ;;  %v830_v58 = vld [vmem:[%s9883_s6 + $0x1b0] sm:$0xff] }
 0x55d   : > { %6919 = vmatprep.subr.mxu1 %v805_v55  ;;  %6953 = vmatpush3.msra.mxu0 %v790_v38  ;;  %v814_v38 = vld [vmem:[%s9883_s6 + $0x130] sm:$0xff] }
 0x55e   : > { %6920 = vmatpush3.msra.mxu1 %v805_v55  ;;  %6954 = vmatprep.subr.mxu0 %v789_v26  ;;  %v813_v55 = vld [vmem:[%s9883_s6 + $0x128] sm:$0xff] }
 0x55f   : > { %6898 = vmatmul.mubr.msk.f32.gmra.mxu1 %vm2644_vm2, %v612_v24  ;;  %6921 = vmatprep.subr.mxu1 %v804_v48 }
 0x560   : > { %6900 = vmatprep.mubr.msk.f32.mxu1 %vm2644_vm2, %v613_v27  ;;  %6955 = vmatpush3.msra.mxu0 %v789_v26  ;;  %v829_v26 = vld [vmem:[%s9883_s6 + $0x1a8] sm:$0xff]  ;;  %v828_v27 = vld [vmem:[%s9883_s6 + $0x1a0] sm:$0xff] }
 0x561   : > { %6922 = vmatpush3.msra.mxu1 %v804_v48  ;;  %6956 = vmatprep.subr.mxu0 %v788_v6  ;;  %v812_v48 = vld [vmem:[%s9883_s6 + $0x120] sm:$0xff] }
 0x562   : > { %6923 = vmatprep.subr.mxu1 %v803_v37  ;;  %6957 = vmatpush3.msra.mxu0 %v788_v6  ;;  %v811_v6 = vld [vmem:[%s9883_s6 + $0x118] sm:$0xff] }
 0x563   : > { %6901 = vmatmul.mubr.msk.f32.gmra.mxu1 %vm2644_vm2, %v614_v57  ;;  %6958 = vmatprep.subr.mxu0 %v787_v41 }
 0x564   : > { %6903 = vmatprep.mubr.msk.f32.mxu1 %vm2644_vm2, %v615_v63  ;;  %6924 = vmatpush3.msra.mxu1 %v803_v37  ;;  %v827_v37 = vld [vmem:[%s9883_s6 + $0x198] sm:$0xff]  ;;  %v826_v63 = vld [vmem:[%s9883_s6 + $0x190] sm:$0xff] }
 0x565   : > { %6925 = vmatprep.subr.mxu1 %v802_v15  ;;  %6959 = vmatpush3.msra.mxu0 %v787_v41  ;;  %v810_v41 = vld [vmem:[%s9883_s6 + $0x110] sm:$0xff] }
 0x566   : > { %6926 = vmatpush3.msra.mxu1 %v802_v15  ;;  %6960 = vmatprep.subr.mxu0 %v786_v36  ;;  %v809_v15 = vld [vmem:[%s9883_s6 + $0x108] sm:$0xff] }
 0x567   : > { %6904 = vmatmul.mubr.msk.f32.gmra.mxu1 %vm2644_vm2, %v616_v53  ;;  %6927 = vmatprep.subr.mxu1 %v801_v7 }
 0x568   : > { %6906 = vmatprep.mubr.msk.f32.mxu1 %vm2644_vm2, %v617_v21  ;;  %6961 = vmatpush3.msra.mxu0 %v786_v36  ;;  %v825_v36 = vld [vmem:[%s9883_s6 + $0x188] sm:$0xff]  ;;  %v824_v21 = vld [vmem:[%s9883_s6 + $0x180] sm:$0xff] }
 0x569   : > { %6928 = vmatpush3.msra.mxu1 %v801_v7  ;;  %6962 = vmatprep.subr.mxu0 %v785_v13  ;;  %v808_v7 = vld [vmem:[%s9883_s6 + $0x100] sm:$0xff] }
 0x56a   : > { %6929 = vmatprep.subr.mxu1 %v800_v31  ;;  %6963 = vmatpush3.msra.mxu0 %v785_v13  ;;  %v855_v13 = vld [vmem:[%s9883_s6 + $0x278] sm:$0xff] }
 0x56b   : > { %6907 = vmatmul.mubr.msk.f32.gmra.mxu1 %vm2644_vm2, %v618_v28  ;;  %6964 = vmatprep.subr.mxu0 %v784_v30  ;;  %v854_v28 = vld [vmem:[%s9883_s6 + $0x270] sm:$0xff] }
 0x56c   : > { %6909 = vmatprep.mubr.msk.f32.mxu1 %vm2644_vm2, %v619_v8  ;;  %6930 = vmatpush3.msra.mxu1 %v800_v31  ;;  %v853_v8 = vld [vmem:[%s9883_s6 + $0x268] sm:$0xff] }
 0x56d   : > { %6931 = vmatprep.subr.mxu1 %v799_v14  ;;  %6965 = vmatpush3.msra.mxu0 %v784_v30  ;;  %v871_v30 = vld [vmem:[%s9883_s6 + $0x2f8] sm:$0xff] }
 0x56e   : > { %6932 = vmatpush3.msra.mxu1 %v799_v14  ;;  %6966 = vmatprep.subr.mxu0 %v783_v23  ;;  %v870_v14 = vld [vmem:[%s9883_s6 + $0x2f0] sm:$0xff] }
 0x56f   : > { %6910 = vmatmul.mubr.msk.f32.gmra.mxu1 %vm2644_vm2, %v620_v51  ;;  %6933 = vmatprep.subr.mxu1 %v798_v54  ;;  %v869_v51 = vld [vmem:[%s9883_s6 + $0x2e8] sm:$0xff] }
 0x570   : > { %6912 = vmatprep.mubr.msk.f32.mxu1 %vm2644_vm2, %v621_v2  ;;  %6967 = vmatpush3.msra.mxu0 %v783_v23  ;;  %v852_v23 = vld [vmem:[%s9883_s6 + $0x260] sm:$0xff] }
 0x571   : > { %6934 = vmatpush3.msra.mxu1 %v798_v54  ;;  %6968 = vmatprep.subr.mxu0 %v782_v22  ;;  %v851_v54 = vld [vmem:[%s9883_s6 + $0x258] sm:$0xff]  ;;  %v868_v2 = vld [vmem:[%s9883_s6 + $0x2e0] sm:$0xff] }
 0x572   : > { %6935 = vmatprep.subr.mxu1 %v797_v46  ;;  %6969 = vmatpush3.msra.mxu0 %v782_v22  ;;  %v850_v22 = vld [vmem:[%s9883_s6 + $0x250] sm:$0xff] }
 0x573   : > { %6913 = vmatmul.mubr.msk.f32.gmra.mxu1 %vm2644_vm2, %v622_v39  ;;  %6970 = vmatprep.subr.mxu0 %v781_v29  ;;  %v849_v39 = vld [vmem:[%s9883_s6 + $0x248] sm:$0xff] }
 0x574   : > { %6936 = vmatpush3.msra.mxu1 %v797_v46  ;;  %6971 = vmatpush3.msra.mxu0 %v781_v29  ;;  %v867_v46 = vld [vmem:[%s9883_s6 + $0x2d8] sm:$0xff]  ;;  %v866_v29 = vld [vmem:[%s9883_s6 + $0x2d0] sm:$0xff] }
 0x575   : > { %6937 = vmatprep.subr.mxu1 %v796_v10  ;;  %6972 = vmatprep.subr.mxu0 %v780_v17 }
 0x576   : > { %6938 = vmatpush3.msra.mxu1 %v796_v10  ;;  %6973 = vmatpush3.msra.mxu0 %v780_v17  ;;  %v848_v10 = vld [vmem:[%s9883_s6 + $0x240] sm:$0xff]  ;;  %v865_v17 = vld [vmem:[%s9883_s6 + $0x2c8] sm:$0xff] }
 0x577   : > { %6939 = vmatprep.subr.mxu1 %v795_v20  ;;  %6974 = vmatprep.subr.mxu0 %v779_v49 }
 0x578   : > { %6940 = vmatpush3.msra.mxu1 %v795_v20  ;;  %6975 = vmatpush3.msra.mxu0 %v779_v49  ;;  %v847_v20 = vld [vmem:[%s9883_s6 + $0x238] sm:$0xff]  ;;  %v864_v49 = vld [vmem:[%s9883_s6 + $0x2c0] sm:$0xff] }
 0x579   : > { %6941 = vmatprep.subr.mxu1 %v794_v33  ;;  %6976 = vmatprep.subr.mxu0 %v778_v0 }
 0x57a   : > { %6942 = vmatpush3.msra.mxu1 %v794_v33  ;;  %6977 = vmatpush3.msra.mxu0 %v778_v0  ;;  %v846_v33 = vld [vmem:[%s9883_s6 + $0x230] sm:$0xff]  ;;  %v863_v0 = vld [vmem:[%s9883_s6 + $0x2b8] sm:$0xff] }
 0x57b   : > { %6943 = vmatprep.subr.mxu1 %v793_v47  ;;  %6978 = vmatprep.subr.mxu0 %v777_v18 }
 0x57c   : > { %6944 = vmatpush3.msra.mxu1 %v793_v47  ;;  %6979 = vmatpush3.msra.mxu0 %v777_v18  ;;  %v845_v47 = vld [vmem:[%s9883_s6 + $0x228] sm:$0xff]  ;;  %v862_v18 = vld [vmem:[%s9883_s6 + $0x2b0] sm:$0xff] }
 0x57d   : > { %6945 = vmatprep.subr.mxu1 %v792_v3  ;;  %6980 = vmatprep.subr.mxu0 %v776_v59 }
 0x57e   : > { %6946 = vmatpush3.msra.mxu1 %v792_v3  ;;  %6981 = vmatpush3.msra.mxu0 %v776_v59  ;;  %v844_v3 = vld [vmem:[%s9883_s6 + $0x220] sm:$0xff]  ;;  %v861_v59 = vld [vmem:[%s9883_s6 + $0x2a8] sm:$0xff] }
 0x57f   : > { %6985 = vmatprep.subr.mxu1 %v823_v5  ;;  %7020 = vmatprep.subr.mxu0 %v839_v12 }
 0x617   : > { %v6890_v1 = vpop.f32.mrf.mxu0  ;;  %v6893_v11 = vpop.f32.mrf.mxu1 }
 0x619   : > { %v4427_v4 = vpop.f32.mrf.mxu0  ;;  %v4437_v35 = vpop.f32.mrf.mxu1 }
 0x61a   : > { %6947 = vmatprep.mubr.f32.mxu1 %v4437_v35  ;;  %6982 = vmatprep.mubr.f32.mxu0 %v4427_v4  ;;  %v859_v4 = vld [vmem:[%s9883_s6 + $0x298] sm:$0xff] }
 0x61b   : > { %6948 = vmatmul.mubr.f32.vlgmr.msra.gmra.mxu1 %v6893_v11  ;;  %6983 = vmatmul.mubr.f32.vlgmr.msra.gmra.mxu0 %v6890_v1  ;;  %v6896_v24 = vpop.f32.mrf.mxu1  ;;  %v860_v1 = vld [vmem:[%s9883_s6 + $0x2a0] sm:$0xff]  ;;  %v842_v11 = vld [vmem:[%s9883_s6 + $0x210] sm:$0xff] }
 0x61c   : > { %6986 = vmatpush3.msra.mxu1 %v823_v5  ;;  %7021 = vmatpush3.msra.mxu0 %v839_v12  ;;  %v843_v12 = vld [vmem:[%s9883_s6 + $0x218] sm:$0xff] }
 0x61d   : > { %6987 = vmatprep.subr.mxu1 %v822_v43  ;;  %7022 = vmatprep.subr.mxu0 %v838_v52  ;;  %v4447_v57 = vpop.f32.mrf.mxu1 }
 0x61e   : > { %6988 = vmatpush3.msra.mxu1 %v822_v43  ;;  %7023 = vmatpush3.msra.mxu0 %v838_v52  ;;  %v841_v43 = vld [vmem:[%s9883_s6 + $0x208] sm:$0xff]  ;;  %v858_v52 = vld [vmem:[%s9883_s6 + $0x290] sm:$0xff] }
 0x61f   : > { %6989 = vmatprep.subr.mxu1 %v821_v16  ;;  %7024 = vmatprep.subr.mxu0 %v837_v40  ;;  %v6899_v53 = vpop.f32.mrf.mxu1 }
 0x620   : > { %6990 = vmatpush3.msra.mxu1 %v821_v16  ;;  %7025 = vmatpush3.msra.mxu0 %v837_v40  ;;  %v840_v40 = vld [vmem:[%s9883_s6 + $0x200] sm:$0xff] }
 0x621   : > { %6991 = vmatprep.subr.mxu1 %v820_v32  ;;  %7026 = vmatprep.subr.mxu0 %v836_v34  ;;  %v4457_v31 = vpop.f32.mrf.mxu1 }
 0x622   : > { %6992 = vmatpush3.msra.mxu1 %v820_v32  ;;  %7027 = vmatpush3.msra.mxu0 %v836_v34  ;;  %v857_v32 = vld [vmem:[%s9883_s6 + $0x288] sm:$0xff]  ;;  %v856_v34 = vld [vmem:[%s9883_s6 + $0x280] sm:$0xff] }
 0x623   : > { %6993 = vmatprep.subr.mxu1 %v819_v45  ;;  %7028 = vmatprep.subr.mxu0 %v835_v50  ;;  %v6902_v5 = vpop.f32.mrf.mxu1 }
 0x624   : > { %6994 = vmatpush3.msra.mxu1 %v819_v45  ;;  %7029 = vmatpush3.msra.mxu0 %v835_v50  ;;  %v887_v45 = vld [vmem:[%s9883_s6 + $0x378] sm:$0xff] }
 0x625   : > { %6995 = vmatprep.subr.mxu1 %v818_v9  ;;  %7030 = vmatprep.subr.mxu0 %v834_v25  ;;  %v4467_v35 = vpop.f32.mrf.mxu1 }
 0x626   : > { %6996 = vmatpush3.msra.mxu1 %v818_v9  ;;  %7031 = vmatpush3.msra.mxu0 %v834_v25  ;;  %v886_v9 = vld [vmem:[%s9883_s6 + $0x370] sm:$0xff]  ;;  %v903_v25 = vld [vmem:[%s9883_s6 + $0x3f8] sm:$0xff] }
 0x627   : > { %6997 = vmatprep.subr.mxu1 %v817_v62  ;;  %7032 = vmatprep.subr.mxu0 %v833_v42  ;;  %v6905_v16 = vpop.f32.mrf.mxu1 }
 0x628   : > { %6998 = vmatpush3.msra.mxu1 %v817_v62  ;;  %7033 = vmatpush3.msra.mxu0 %v833_v42  ;;  %v885_v62 = vld [vmem:[%s9883_s6 + $0x368] sm:$0xff]  ;;  %v902_v42 = vld [vmem:[%s9883_s6 + $0x3f0] sm:$0xff] }
 0x629   : > { %6999 = vmatprep.subr.mxu1 %v816_v60  ;;  %7034 = vmatprep.subr.mxu0 %v832_v56  ;;  %v4477_v50 = vpop.f32.mrf.mxu1 }
 0x62a   : > { %7000 = vmatpush3.msra.mxu1 %v816_v60  ;;  %7035 = vmatpush3.msra.mxu0 %v832_v56  ;;  %v884_v60 = vld [vmem:[%s9883_s6 + $0x360] sm:$0xff]  ;;  %v901_v56 = vld [vmem:[%s9883_s6 + $0x3e8] sm:$0xff] }
 0x62b   : > { %7001 = vmatprep.subr.mxu1 %v815_v61  ;;  %7036 = vmatprep.subr.mxu0 %v831_v44 }
 0x62c   : > { %7002 = vmatpush3.msra.mxu1 %v815_v61  ;;  %7037 = vmatpush3.msra.mxu0 %v831_v44  ;;  %v883_v61 = vld [vmem:[%s9883_s6 + $0x358] sm:$0xff]  ;;  %v900_v44 = vld [vmem:[%s9883_s6 + $0x3e0] sm:$0xff] }
 0x62d   : > { %7003 = vmatprep.subr.mxu1 %v814_v38  ;;  %7038 = vmatprep.subr.mxu0 %v830_v58 }
 0x62e   : > { %7004 = vmatpush3.msra.mxu1 %v814_v38  ;;  %7039 = vmatpush3.msra.mxu0 %v830_v58  ;;  %v882_v38 = vld [vmem:[%s9883_s6 + $0x350] sm:$0xff]  ;;  %v899_v58 = vld [vmem:[%s9883_s6 + $0x3d8] sm:$0xff] }
 0x62f   : > { %7005 = vmatprep.subr.mxu1 %v813_v55  ;;  %7040 = vmatprep.subr.mxu0 %v829_v26 }
 0x630   : > { %7006 = vmatpush3.msra.mxu1 %v813_v55  ;;  %7041 = vmatpush3.msra.mxu0 %v829_v26  ;;  %v881_v55 = vld [vmem:[%s9883_s6 + $0x348] sm:$0xff]  ;;  %v898_v26 = vld [vmem:[%s9883_s6 + $0x3d0] sm:$0xff] }
 0x631   : > { %7007 = vmatprep.subr.mxu1 %v812_v48  ;;  %7042 = vmatprep.subr.mxu0 %v828_v27 }
 0x632   : > { %7008 = vmatpush3.msra.mxu1 %v812_v48  ;;  %7043 = vmatpush3.msra.mxu0 %v828_v27  ;;  %v897_v48 = vld [vmem:[%s9883_s6 + $0x3c8] sm:$0xff]  ;;  %v879_v27 = vld [vmem:[%s9883_s6 + $0x338] sm:$0xff] }
 0x633   : > { %7009 = vmatprep.subr.mxu1 %v811_v6  ;;  %7044 = vmatprep.subr.mxu0 %v827_v37 }
 0x634   : > { %7010 = vmatpush3.msra.mxu1 %v811_v6  ;;  %7045 = vmatpush3.msra.mxu0 %v827_v37  ;;  %v896_v6 = vld [vmem:[%s9883_s6 + $0x3c0] sm:$0xff]  ;;  %v878_v37 = vld [vmem:[%s9883_s6 + $0x330] sm:$0xff] }
 0x635   : > { %7011 = vmatprep.subr.mxu1 %v810_v41  ;;  %7046 = vmatprep.subr.mxu0 %v826_v63 }
 0x636   : > { %7012 = vmatpush3.msra.mxu1 %v810_v41  ;;  %7047 = vmatpush3.msra.mxu0 %v826_v63  ;;  %v6908_v41 = vpop.f32.mrf.mxu1  ;;  %v877_v63 = vld [vmem:[%s9883_s6 + $0x328] sm:$0xff] }
 0x637   : > { %7013 = vmatprep.subr.mxu1 %v809_v15  ;;  %7048 = vmatprep.subr.mxu0 %v825_v36 }
 0x638   : > { %7014 = vmatpush3.msra.mxu1 %v809_v15  ;;  %7017 = vmatprep.mubr.f32.mxu1 %v4447_v57  ;;  %v895_v57 = vld [vmem:[%s9883_s6 + $0x3b8] sm:$0xff]  ;;  %v894_v15 = vld [vmem:[%s9883_s6 + $0x3b0] sm:$0xff] }
 0x639   : > { %7015 = vmatprep.subr.mxu1 %v808_v7  ;;  %7049 = vmatpush3.msra.mxu0 %v825_v36  ;;  %v876_v36 = vld [vmem:[%s9883_s6 + $0x320] sm:$0xff] }
 0x63a   : > { %7016 = vmatpush3.msra.mxu1 %v808_v7  ;;  %7050 = vmatprep.subr.mxu0 %v824_v21  ;;  %v4487_v7 = vpop.f32.mrf.mxu1 }
 0x63b   : > { %7018 = vmatmul.mubr.f32.vlgmr.msra.gmra.mxu1 %v6896_v24  ;;  %7055 = vmatprep.subr.mxu1 %v855_v13  ;;  %v880_v24 = vld [vmem:[%s9883_s6 + $0x340] sm:$0xff] }
 0x63c   : > { %7051 = vmatpush3.msra.mxu0 %v824_v21  ;;  %7052 = vmatprep.mubr.f32.mxu0 %v4457_v31  ;;  %v875_v21 = vld [vmem:[%s9883_s6 + $0x318] sm:$0xff]  ;;  %v874_v31 = vld [vmem:[%s9883_s6 + $0x310] sm:$0xff] }
 0x63d   : > { %7056 = vmatpush3.msra.mxu1 %v855_v13  ;;  %7053 = vmatmul.mubr.f32.vlgmr.msra.gmra.mxu0 %v6899_v53  ;;  %v893_v53 = vld [vmem:[%s9883_s6 + $0x3a8] sm:$0xff]  ;;  %v892_v13 = vld [vmem:[%s9883_s6 + $0x3a0] sm:$0xff] }
 0x63e   : > { %7057 = vmatprep.subr.mxu1 %v854_v28  ;;  %7090 = vmatprep.subr.mxu0 %v871_v30 }
 0x63f   : > { %7058 = vmatpush3.msra.mxu1 %v854_v28  ;;  %7091 = vmatpush3.msra.mxu0 %v871_v30  ;;  %v891_v28 = vld [vmem:[%s9883_s6 + $0x398] sm:$0xff]  ;;  %v6911_v30 = vpop.f32.mrf.mxu1 }
 0x640   : > { %7059 = vmatprep.subr.mxu1 %v853_v8  ;;  %7092 = vmatprep.subr.mxu0 %v870_v14 }
 0x641   : > { %7060 = vmatpush3.msra.mxu1 %v853_v8  ;;  %7093 = vmatpush3.msra.mxu0 %v870_v14  ;;  %v873_v8 = vld [vmem:[%s9883_s6 + $0x308] sm:$0xff]  ;;  %v890_v14 = vld [vmem:[%s9883_s6 + $0x390] sm:$0xff] }
 0x642   : > { %7061 = vmatprep.subr.mxu1 %v852_v23  ;;  %7094 = vmatprep.subr.mxu0 %v869_v51 }
 0x643   : > { %7062 = vmatpush3.msra.mxu1 %v852_v23  ;;  %7095 = vmatpush3.msra.mxu0 %v869_v51  ;;  %v872_v23 = vld [vmem:[%s9883_s6 + $0x300] sm:$0xff]  ;;  %v889_v51 = vld [vmem:[%s9883_s6 + $0x388] sm:$0xff] }
 0x644   : > { %7063 = vmatprep.subr.mxu1 %v851_v54  ;;  %7096 = vmatprep.subr.mxu0 %v868_v2 }
 0x645   : > { %7064 = vmatpush3.msra.mxu1 %v851_v54  ;;  %7097 = vmatpush3.msra.mxu0 %v868_v2  ;;  %v4497_v54 = vpop.f32.mrf.mxu1 }
 0x646   : > { %7065 = vmatprep.subr.mxu1 %v850_v22  ;;  %7098 = vmatprep.subr.mxu0 %v867_v46 }
 0x647   : > { %7066 = vmatpush3.msra.mxu1 %v850_v22  ;;  %7099 = vmatpush3.msra.mxu0 %v867_v46  ;;  %v6914_v2 = vpop.f32.mrf.mxu1  ;;  %v888_v22 = vld [vmem:[%s9883_s6 + $0x380] sm:$0xff]  ;;  %v919_v46 = vld [vmem:[%s9883_s6 + $0x478] sm:$0xff] }
 0x648   : > { %7067 = vmatprep.subr.mxu1 %v849_v39  ;;  %7100 = vmatprep.subr.mxu0 %v866_v29 }
 0x649   : > { %7068 = vmatpush3.msra.mxu1 %v849_v39  ;;  %7101 = vmatpush3.msra.mxu0 %v866_v29  ;;  %v918_v39 = vld [vmem:[%s9883_s6 + $0x470] sm:$0xff]  ;;  %v4507_v29 = vpop.f32.mrf.mxu1 }
 0x64a   : > { %7069 = vmatprep.subr.mxu1 %v848_v10  ;;  %7102 = vmatprep.subr.mxu0 %v865_v17 }
 0x64b   : > { %7070 = vmatpush3.msra.mxu1 %v848_v10  ;;  %7103 = vmatpush3.msra.mxu0 %v865_v17  ;;  %v917_v10 = vld [vmem:[%s9883_s6 + $0x468] sm:$0xff]  ;;  %v916_v17 = vld [vmem:[%s9883_s6 + $0x460] sm:$0xff] }
 0x64c   : > { %7071 = vmatprep.subr.mxu1 %v847_v20  ;;  %7104 = vmatprep.subr.mxu0 %v864_v49 }
 0x64d   : > { %7072 = vmatpush3.msra.mxu1 %v847_v20  ;;  %7105 = vmatpush3.msra.mxu0 %v864_v49  ;;  %v915_v20 = vld [vmem:[%s9883_s6 + $0x458] sm:$0xff]  ;;  %v914_v49 = vld [vmem:[%s9883_s6 + $0x450] sm:$0xff] }
 0x64e   : > { %7073 = vmatprep.subr.mxu1 %v846_v33  ;;  %7106 = vmatprep.subr.mxu0 %v863_v0 }
 0x64f   : > { %7074 = vmatpush3.msra.mxu1 %v846_v33  ;;  %7107 = vmatpush3.msra.mxu0 %v863_v0  ;;  %v913_v33 = vld [vmem:[%s9883_s6 + $0x448] sm:$0xff]  ;;  %v912_v0 = vld [vmem:[%s9883_s6 + $0x440] sm:$0xff] }
 0x650   : > { %7075 = vmatprep.subr.mxu1 %v845_v47  ;;  %7108 = vmatprep.subr.mxu0 %v862_v18 }
 0x651   : > { %7076 = vmatpush3.msra.mxu1 %v845_v47  ;;  %7109 = vmatpush3.msra.mxu0 %v862_v18  ;;  %v911_v47 = vld [vmem:[%s9883_s6 + $0x438] sm:$0xff]  ;;  %v910_v18 = vld [vmem:[%s9883_s6 + $0x430] sm:$0xff] }
 0x652   : > { %7077 = vmatprep.subr.mxu1 %v844_v3  ;;  %7110 = vmatprep.subr.mxu0 %v861_v59 }
 0x653   : > { %7078 = vmatpush3.msra.mxu1 %v844_v3  ;;  %7111 = vmatpush3.msra.mxu0 %v861_v59  ;;  %v909_v3 = vld [vmem:[%s9883_s6 + $0x428] sm:$0xff]  ;;  %v908_v59 = vld [vmem:[%s9883_s6 + $0x420] sm:$0xff] }
 0x654   : > { %7079 = vmatprep.subr.mxu1 %v843_v12  ;;  %7112 = vmatprep.subr.mxu0 %v860_v1 }
 0x655   : > { %7080 = vmatpush3.msra.mxu1 %v843_v12  ;;  %7113 = vmatpush3.msra.mxu0 %v860_v1  ;;  %v906_v12 = vld [vmem:[%s9883_s6 + $0x410] sm:$0xff]  ;;  %v905_v1 = vld [vmem:[%s9883_s6 + $0x408] sm:$0xff] }
 0x656   : > { %7081 = vmatprep.subr.mxu1 %v842_v11  ;;  %7114 = vmatprep.subr.mxu0 %v859_v4 }
 0x657   : > { %7082 = vmatpush3.msra.mxu1 %v842_v11  ;;  %7115 = vmatpush3.msra.mxu0 %v859_v4  ;;  %v904_v11 = vld [vmem:[%s9883_s6 + $0x400] sm:$0xff]  ;;  %v9904_v4 = vmov 0.0  }
 0x658   : > { %7083 = vmatprep.subr.mxu1 %v841_v43  ;;  %7116 = vmatprep.subr.mxu0 %v858_v52 }
 0x659   : > { %7084 = vmatpush3.msra.mxu1 %v841_v43  ;;  %7117 = vmatpush3.msra.mxu0 %v858_v52  ;;  %v934_v43 = vld [vmem:[%s9884_s7 + $0x70] sm:$0xff]  ;;  %v933_v52 = vld [vmem:[%s9884_s7 + $0x68] sm:$0xff] }
 0x65a   : > { %7085 = vmatprep.subr.mxu1 %v840_v40  ;;  %7118 = vmatprep.subr.mxu0 %v857_v32 }
 0x65b   : > { %7086 = vmatpush3.msra.mxu1 %v840_v40  ;;  %7087 = vmatprep.mubr.f32.mxu1 %v4467_v35  ;;  %v935_v35 = vld [vmem:[%s9884_s7 + $0x78] sm:$0xff] }
 0x65c   : > { %7119 = vmatpush3.msra.mxu0 %v857_v32  ;;  %7088 = vmatmul.mubr.f32.vlgmr.msra.gmra.mxu1 %v6902_v5  ;;  %v907_v5 = vld [vmem:[%s9883_s6 + $0x418] sm:$0xff]  ;;  %v930_v32 = vld [vmem:[%s9884_s7 + $0x50] sm:$0xff] }
 0x65d   : > { %7120 = vmatprep.subr.mxu0 %v856_v34  ;;  %7125 = vmatprep.subr.mxu1 %v887_v45  ;;  %v931_v40 = vld [vmem:[%s9884_s7 + $0x58] sm:$0xff] }
 0x65e   : > { %7121 = vmatpush3.msra.mxu0 %v856_v34  ;;  %7122 = vmatprep.mubr.f32.mxu0 %v4477_v50  ;;  %v929_v34 = vld [vmem:[%s9884_s7 + $0x48] sm:$0xff]  ;;  %v927_v50 = vld [vmem:[%s9884_s7 + $0x38] sm:$0xff] }
 0x65f   : > { %7126 = vmatpush3.msra.mxu1 %v887_v45  ;;  %7123 = vmatmul.mubr.f32.vlgmr.msra.gmra.mxu0 %v6905_v16  ;;  %v932_v16 = vld [vmem:[%s9884_s7 + $0x60] sm:$0xff] }
 0x660   : > { %7127 = vmatprep.subr.mxu1 %v886_v9  ;;  %7160 = vmatprep.subr.mxu0 %v903_v25  ;;  %v928_v45 = vld [vmem:[%s9884_s7 + $0x40] sm:$0xff] }
 0x661   : > { %7128 = vmatpush3.msra.mxu1 %v886_v9  ;;  %7161 = vmatpush3.msra.mxu0 %v903_v25  ;;  %v926_v9 = vld [vmem:[%s9884_s7 + $0x30] sm:$0xff]  ;;  %v925_v25 = vld [vmem:[%s9884_s7 + $0x28] sm:$0xff] }
 0x662   : > { %7129 = vmatprep.subr.mxu1 %v885_v62  ;;  %7162 = vmatprep.subr.mxu0 %v902_v42 }
 0x663   : > { %7130 = vmatpush3.msra.mxu1 %v885_v62  ;;  %7163 = vmatpush3.msra.mxu0 %v902_v42  ;;  %v924_v62 = vld [vmem:[%s9884_s7 + $0x20] sm:$0xff]  ;;  %v923_v42 = vld [vmem:[%s9884_s7 + $0x18] sm:$0xff] }
 0x664   : > { %7131 = vmatprep.subr.mxu1 %v884_v60  ;;  %7164 = vmatprep.subr.mxu0 %v901_v56 }
 0x665   : > { %7132 = vmatpush3.msra.mxu1 %v884_v60  ;;  %7165 = vmatpush3.msra.mxu0 %v901_v56  ;;  %v922_v60 = vld [vmem:[%s9884_s7 + $0x10] sm:$0xff]  ;;  %v921_v56 = vld [vmem:[%s9884_s7 + $0x8] sm:$0xff] }
 0x666   : > { %7133 = vmatprep.subr.mxu1 %v883_v61  ;;  %7166 = vmatprep.subr.mxu0 %v900_v44 }
 0x667   : > { %7134 = vmatpush3.msra.mxu1 %v883_v61  ;;  %7167 = vmatpush3.msra.mxu0 %v900_v44  ;;  %v920_v61 = vld [vmem:[%s9884_s7] sm:$0xff]  ;;  %v951_v44 = vld [vmem:[%s9885_s8 + $0x78] sm:$0xff] }
 0x668   : > { %7135 = vmatprep.subr.mxu1 %v882_v38  ;;  %7168 = vmatprep.subr.mxu0 %v899_v58 }
 0x669   : > { %7136 = vmatpush3.msra.mxu1 %v882_v38  ;;  %7169 = vmatpush3.msra.mxu0 %v899_v58  ;;  %v950_v38 = vld [vmem:[%s9885_s8 + $0x70] sm:$0xff]  ;;  %v949_v58 = vld [vmem:[%s9885_s8 + $0x68] sm:$0xff] }
 0x66a   : > { %7137 = vmatprep.subr.mxu1 %v881_v55  ;;  %7170 = vmatprep.subr.mxu0 %v898_v26 }
 0x66b   : > { %7138 = vmatpush3.msra.mxu1 %v881_v55  ;;  %7171 = vmatpush3.msra.mxu0 %v898_v26  ;;  %v948_v55 = vld [vmem:[%s9885_s8 + $0x60] sm:$0xff] }
 0x66c   : > { %7139 = vmatprep.subr.mxu1 %v880_v24  ;;  %7172 = vmatprep.subr.mxu0 %v897_v48 }
 0x66d   : > { %7140 = vmatpush3.msra.mxu1 %v880_v24  ;;  %7173 = vmatpush3.msra.mxu0 %v897_v48 }
 0x66e   : > { %7141 = vmatprep.subr.mxu1 %v879_v27  ;;  %7174 = vmatprep.subr.mxu0 %v896_v6 }
 0x66f   : > { %7142 = vmatpush3.msra.mxu1 %v879_v27  ;;  %7175 = vmatpush3.msra.mxu0 %v896_v6 }
 0x670   : > { %7143 = vmatprep.subr.mxu1 %v878_v37  ;;  %7176 = vmatprep.subr.mxu0 %v895_v57 }
 0x671   : > { %7144 = vmatpush3.msra.mxu1 %v878_v37  ;;  %7177 = vmatpush3.msra.mxu0 %v895_v57 }
 0x672   : > { %7145 = vmatprep.subr.mxu1 %v877_v63  ;;  %7178 = vmatprep.subr.mxu0 %v894_v15 }
 0x673   : > { %7146 = vmatpush3.msra.mxu1 %v877_v63  ;;  %7179 = vmatpush3.msra.mxu0 %v894_v15 }
 0x674   : > { %7147 = vmatprep.subr.mxu1 %v876_v36  ;;  %7180 = vmatprep.subr.mxu0 %v893_v53 }
 0x675   : > { %7148 = vmatpush3.msra.mxu1 %v876_v36  ;;  %7181 = vmatpush3.msra.mxu0 %v893_v53 }
 0x676   : > { %7149 = vmatprep.subr.mxu1 %v875_v21  ;;  %7182 = vmatprep.subr.mxu0 %v892_v13 }
 0x677   : > { %7150 = vmatpush3.msra.mxu1 %v875_v21  ;;  %7183 = vmatpush3.msra.mxu0 %v892_v13 }
 0x678   : > { %7151 = vmatprep.subr.mxu1 %v874_v31  ;;  %7184 = vmatprep.subr.mxu0 %v891_v28 }
 0x679   : > { %7152 = vmatpush3.msra.mxu1 %v874_v31  ;;  %7185 = vmatpush3.msra.mxu0 %v891_v28 }
 0x67a   : > { %7153 = vmatprep.subr.mxu1 %v873_v8  ;;  %7186 = vmatprep.subr.mxu0 %v890_v14 }
 0x67b   : > { %7154 = vmatpush3.msra.mxu1 %v873_v8  ;;  %7187 = vmatpush3.msra.mxu0 %v890_v14 }
 0x67c   : > { %7155 = vmatprep.subr.mxu1 %v872_v23  ;;  %7188 = vmatprep.subr.mxu0 %v889_v51 }
 0x67d   : > { %7156 = vmatpush3.msra.mxu1 %v872_v23  ;;  %7157 = vmatprep.mubr.f32.mxu1 %v4487_v7 }
 0x67e   : > { %7189 = vmatpush3.msra.mxu0 %v889_v51  ;;  %7158 = vmatmul.mubr.f32.vlgmr.msra.gmra.mxu1 %v6908_v41 }
 0x67f   : > { %7190 = vmatprep.subr.mxu0 %v888_v22  ;;  %7195 = vmatprep.subr.mxu1 %v919_v46 }
 0x680   : > { %7191 = vmatpush3.msra.mxu0 %v888_v22  ;;  %7192 = vmatprep.mubr.f32.mxu0 %v4497_v54 }
 0x681   : > { %7196 = vmatpush3.msra.mxu1 %v919_v46  ;;  %7193 = vmatmul.mubr.f32.vlgmr.msra.gmra.mxu0 %v6911_v30 }
 0x682   : > { %7197 = vmatprep.subr.mxu1 %v918_v39  ;;  %7227 = vmatprep.mubr.f32.mxu1 %v4507_v29 }
 0x683   : > { %7198 = vmatpush3.msra.mxu1 %v918_v39  ;;  %7230 = vmatprep.subr.mxu0 %v935_v35  ;;  %v5207_v39 = vsub.s32 2, %v8286_v19 }
 0x684   : > { %7199 = vmatprep.subr.mxu1 %v917_v10  ;;  %7231 = vmatpush3.msra.mxu0 %v935_v35  ;;  %v946_v35 = vld [vmem:[%s9885_s8 + $0x50] sm:$0xff] }
 0x685   : > { %7200 = vmatpush3.msra.mxu1 %v917_v10  ;;  %7232 = vmatprep.subr.mxu0 %v934_v43 }
 0x686   : > { %7201 = vmatprep.subr.mxu1 %v916_v17  ;;  %7233 = vmatpush3.msra.mxu0 %v934_v43  ;;  %v945_v43 = vld [vmem:[%s9885_s8 + $0x48] sm:$0xff] }
 0x687   : > { %7202 = vmatpush3.msra.mxu1 %v916_v17  ;;  %7234 = vmatprep.subr.mxu0 %v933_v52 }
 0x688   : > { %7203 = vmatprep.subr.mxu1 %v915_v20  ;;  %7235 = vmatpush3.msra.mxu0 %v933_v52  ;;  %v944_v52 = vld [vmem:[%s9885_s8 + $0x40] sm:$0xff] }
 0x689   : > { %7204 = vmatpush3.msra.mxu1 %v915_v20  ;;  %7236 = vmatprep.subr.mxu0 %v932_v16 }
 0x68a   : > { %7205 = vmatprep.subr.mxu1 %v914_v49  ;;  %7237 = vmatpush3.msra.mxu0 %v932_v16  ;;  %v943_v16 = vld [vmem:[%s9885_s8 + $0x38] sm:$0xff] }
 0x68b   : > { %7206 = vmatpush3.msra.mxu1 %v914_v49  ;;  %7238 = vmatprep.subr.mxu0 %v931_v40  ;;  %v9783_v49 = vld [vmem:[%s9886_s9] sm:$0x1f] }
 0x68c   : > { %7207 = vmatprep.subr.mxu1 %v913_v33  ;;  %7239 = vmatpush3.msra.mxu0 %v931_v40  ;;  %v942_v40 = vld [vmem:[%s9885_s8 + $0x30] sm:$0xff] }
 0x68d   : > { %7208 = vmatpush3.msra.mxu1 %v913_v33  ;;  %7240 = vmatprep.subr.mxu0 %v930_v32  ;;  %v5208_v33 = vrot.slane %v9783_v49, %v5207_v39 }
 0x68e   : > { %7209 = vmatprep.subr.mxu1 %v912_v0  ;;  %7241 = vmatpush3.msra.mxu0 %v930_v32  ;;  %v941_v32 = vld [vmem:[%s9885_s8 + $0x28] sm:$0xff] }
 0x68f   : > { %7210 = vmatpush3.msra.mxu1 %v912_v0  ;;  %7242 = vmatprep.subr.mxu0 %v929_v34 }
 0x690   : > { %7211 = vmatprep.subr.mxu1 %v911_v47  ;;  %7243 = vmatpush3.msra.mxu0 %v929_v34  ;;  %v940_v34 = vld [vmem:[%s9885_s8 + $0x20] sm:$0xff] }
 0x691   : > { %7212 = vmatpush3.msra.mxu1 %v911_v47  ;;  %7244 = vmatprep.subr.mxu0 %v928_v45 }
 0x692   : > { %7213 = vmatprep.subr.mxu1 %v910_v18  ;;  %7245 = vmatpush3.msra.mxu0 %v928_v45  ;;  %v939_v45 = vld [vmem:[%s9885_s8 + $0x18] sm:$0xff] }
 0x693   : > { %7214 = vmatpush3.msra.mxu1 %v910_v18  ;;  %7246 = vmatprep.subr.mxu0 %v927_v50 }
 0x694   : > { %7215 = vmatprep.subr.mxu1 %v909_v3  ;;  %7247 = vmatpush3.msra.mxu0 %v927_v50  ;;  %v938_v50 = vld [vmem:[%s9885_s8 + $0x10] sm:$0xff] }
 0x695   : > { %7216 = vmatpush3.msra.mxu1 %v909_v3  ;;  %7248 = vmatprep.subr.mxu0 %v926_v9 }
 0x696   : > { %7217 = vmatprep.subr.mxu1 %v908_v59  ;;  %7249 = vmatpush3.msra.mxu0 %v926_v9  ;;  %v937_v9 = vld [vmem:[%s9885_s8 + $0x8] sm:$0xff] }
 0x697   : > { %7218 = vmatpush3.msra.mxu1 %v908_v59  ;;  %7250 = vmatprep.subr.mxu0 %v925_v25 }
 0x698   : > { %7219 = vmatprep.subr.mxu1 %v907_v5  ;;  %7251 = vmatpush3.msra.mxu0 %v925_v25  ;;  %v936_v25 = vld [vmem:[%s9885_s8] sm:$0xff] }
 0x699   : > { %7220 = vmatpush3.msra.mxu1 %v907_v5  ;;  %7252 = vmatprep.subr.mxu0 %v924_v62 }
 0x69a   : > { %7221 = vmatprep.subr.mxu1 %v906_v12  ;;  %7253 = vmatpush3.msra.mxu0 %v924_v62  ;;  %v5215_v62 = vsub.s32 3, %v8286_v19  ;;  %v5304_v19 = vrot.slane %v9783_v49, 4 }
 0x69b   : > { %7222 = vmatpush3.msra.mxu1 %v906_v12  ;;  %7254 = vmatprep.subr.mxu0 %v923_v42 }
 0x69c   : > { %7223 = vmatprep.subr.mxu1 %v905_v1  ;;  %7255 = vmatpush3.msra.mxu0 %v923_v42  ;;  %v5216_v42 = vrot.slane %v9783_v49, %v5215_v62 }
 0x69d   : > { %7224 = vmatpush3.msra.mxu1 %v905_v1  ;;  %7256 = vmatprep.subr.mxu0 %v922_v60 }
 0x69e   : > { %7225 = vmatprep.subr.mxu1 %v904_v11  ;;  %7257 = vmatpush3.msra.mxu0 %v922_v60 }
 0x69f   : > { %7226 = vmatpush3.msra.mxu1 %v904_v11  ;;  %7258 = vmatprep.subr.mxu0 %v921_v56  ;;  %v947_v11 = vld [vmem:[%s9885_s8 + $0x58] sm:$0xff] }
 0x6a0   : > { %7228 = vmatmul.mubr.f32.vlgmr.msra.gmra.mxu1 %v6914_v2  ;;  %7265 = vmatprep.subr.mxu1 %v9904_v4 }
 0x6a1   : > { %7259 = vmatpush3.msra.mxu0 %v921_v56  ;;  %7266 = vmatpush3.msra.mxu1 %v951_v44 }
 0x6a2   : > { %7260 = vmatprep.subr.mxu0 %v920_v61  ;;  %7267 = vmatprep.subr.mxu1 %v9904_v4 }
 0x6a3   : > { %7261 = vmatpush3.msra.mxu0 %v920_v61  ;;  %7268 = vmatpush3.msra.mxu1 %v950_v38 }
 0x6a4   : > { %7269 = vmatprep.subr.mxu1 %v9904_v4  ;;  %7297 = vmatprep.mubr.msk.f32.mxu1 %vm7422_vm3, %v9904_v4 }
 0x6a5   : > { %7270 = vmatpush3.msra.mxu1 %v949_v58 }
 0x6a6   : > { %7271 = vmatprep.subr.mxu1 %v9904_v4 }
 0x6a7   : > { %7272 = vmatpush3.msra.mxu1 %v948_v55 }
 0x6a8   : > { %7273 = vmatprep.subr.mxu1 %v9904_v4 }
 0x6a9   : > { %7274 = vmatpush3.msra.mxu1 %v947_v11 }
 0x6aa   : > { %7275 = vmatprep.subr.mxu1 %v9904_v4 }
 0x6ab   : > { %7276 = vmatpush3.msra.mxu1 %v946_v35 }
 0x6ac   : > { %7277 = vmatprep.subr.mxu1 %v9904_v4 }
 0x6ad   : > { %7278 = vmatpush3.msra.mxu1 %v945_v43 }
 0x6ae   : > { %7279 = vmatprep.subr.mxu1 %v9904_v4 }
 0x6af   : > { %7280 = vmatpush3.msra.mxu1 %v944_v52 }
 0x6b0   : > { %7281 = vmatprep.subr.mxu1 %v9904_v4 }
 0x6b1   : > { %7282 = vmatpush3.msra.mxu1 %v943_v16 }
 0x6b2   : > { %7283 = vmatprep.subr.mxu1 %v9904_v4 }
 0x6b3   : > { %7284 = vmatpush3.msra.mxu1 %v942_v40 }
 0x6b4   : > { %7285 = vmatprep.subr.mxu1 %v9904_v4 }
 0x6b5   : > { %7286 = vmatpush3.msra.mxu1 %v941_v32 }
 0x6b6   : > { %7287 = vmatprep.subr.mxu1 %v9904_v4 }
 0x6b7   : > { %7288 = vmatpush3.msra.mxu1 %v940_v34 }
 0x6b8   : > { %7289 = vmatprep.subr.mxu1 %v9904_v4 }
 0x6b9   : > { %7290 = vmatpush3.msra.mxu1 %v939_v45 }
 0x6ba   : > { %7291 = vmatprep.subr.mxu1 %v9904_v4 }
 0x6bb   : > { %7292 = vmatpush3.msra.mxu1 %v938_v50 }
 0x6bc   : > { %7293 = vmatprep.subr.mxu1 %v9904_v4 }
 0x6bd   : > { %7294 = vmatpush3.msra.mxu1 %v937_v9 }
 0x6be   : > { %7295 = vmatprep.subr.mxu1 %v9904_v4 }
 0x6bf   : > { %7296 = vmatpush3.msra.mxu1 %v936_v25 }
 0x6db   : > { %v6949_v26 = vpop.f32.mrf.mxu1  ;;  %v6984_v24 = vpop.f32.mrf.mxu0 }
 0x6dc   : > { %v4663_v37 = vadd.f32 %v6984_v24, %v6949_v26 }
 0x6dd   : > { %v4582_v48 = vpop.f32.mrf.mxu1  ;;  %v4657_v6 = vpop.f32.mrf.mxu0 }
 0x6de   : > { %v4658_v63 = vadd.f32 %v4657_v6, %v4582_v48 }
 0x6fb   : > { %v7019_v27 = vpop.f32.mrf.mxu1 }
 0x6fc   : > { %v4742_v15 = vadd.f32 %v7019_v27, %v4663_v37 }
 0x6fd   : > { %v4732_v57 = vpop.f32.mrf.mxu1  ;;  %v7054_v41 = vpop.f32.mrf.mxu0 }
 0x6fe   : > { %v4741_v53 = vadd.f32 %v4732_v57, %v4658_v63  ;;  %v4819_v21 = vadd.f32 %v7054_v41, %v4742_v15 }
 0x6ff   : > { %v4809_v7 = vpop.f32.mrf.mxu0 }
 0x700   : > { %v4818_v28 = vadd.f32 %v4809_v7, %v4741_v53 }
 0x71c   : > { %v7089_v36 = vpop.f32.mrf.mxu1 }
 0x71d   : > { %v4896_v30 = vadd.f32 %v7089_v36, %v4819_v21 }
 0x71e   : > { %v4886_v13 = vpop.f32.mrf.mxu1 }
 0x71f   : > { %v7124_v31 = vpop.f32.mrf.mxu0  ;;  %v4895_v14 = vadd.f32 %v4886_v13, %v4818_v28 }
 0x720   : > { %v4973_v51 = vadd.f32 %v7124_v31, %v4896_v30 }
 0x721   : > { %v4963_v23 = vpop.f32.mrf.mxu0 }
 0x722   : > { %v4972_v22 = vadd.f32 %v4963_v23, %v4895_v14 }
 0x73e   : > { %v7159_v8 = vpop.f32.mrf.mxu1 }
 0x73f   : > { %v5050_v46 = vadd.f32 %v7159_v8, %v4973_v51 }
 0x740   : > { %v5040_v54 = vpop.f32.mrf.mxu1 }
 0x741   : > { %v7194_v2 = vpop.f32.mrf.mxu0  ;;  %v5049_v29 = vadd.f32 %v5040_v54, %v4972_v22 }
 0x742   : > { %v5127_v17 = vadd.f32 %v7194_v2, %v5050_v46 }
 0x743   : > { %v5117_v10 = vpop.f32.mrf.mxu0 }
 0x744   : > { %v5126_v0 = vadd.f32 %v5117_v10, %v5049_v29 }
 0x760   : > { %v7229_v20 = vpop.f32.mrf.mxu1 }
 0x761   : > { %v5204_v47 = vadd.f32 %v7229_v20, %v5127_v17 }
 0x762   : > { %v5194_v18 = vpop.f32.mrf.mxu1 }
 0x763   : > { %v5203_v3 = vadd.f32 %v5194_v18, %v5126_v0  ;;  %v5210_v59 = vadd.f32 %v5208_v33, %v5204_v47 }
 0x765   : > { %v5209_v5 = vadd.f32 %v5208_v33, %v5203_v3  ;;  %v5212_v1 = vmax.f32 %v5210_v59, 0.0 }
 0x767   : > { %v5211_v12 = vmax.f32 %v5209_v5, 0.0 }
 0x769   : > { %7262 = vmatprep.mubr.f32.mxu0 %v5211_v12 }
 0x76a   : > { %7263 = vmatmul.mubr.f32.vlgmr.msra.gmra.mxu0 %v5212_v1 }
 0x82a   : > { %v7264_v60 = vpop.f32.mrf.mxu0 }
 0x82b   : > { %v5289_v56 = vadd.f32 %v7264_v60, %v5216_v42 }
 0x82c   : > { %v5283_v61 = vpop.f32.mrf.mxu0 }
 0x82d   : > { %v5284_v44 = vadd.f32 %v5283_v61, %v5216_v42  ;;  %v5293_v38 = vmax.f32 %v5289_v56, 0.0 }
 0x82f   : > { %v5292_v58 = vmax.f32 %v5284_v44, 0.0 }
 0x831   : > { %v5294_v55 = vadd.f32 %v5293_v38, %v5292_v58 }
 0x833   : > { %v5295_v26 = vrot.slane %v5294_v55, 4 }
 0x835   : > { %v5296_v24 = vadd.f32 %v5295_v26, %v5294_v55 }
 0x837   : > { %v5297_v48 = vrot.slane %v5296_v24, 2 }
 0x839   : > { %v5298_v27 = vadd.f32 %v5297_v48, %v5296_v24 }
 0x83b   : > { %v5299_v6 = vrot.slane %v5298_v27, 1 }
 0x83d   : > { %v5300_v37 = vadd.f32 %v5299_v6, %v5298_v27 }
 0x83f   : > { %v5302_v4 = vmul.f32 0.0625, %v5300_v37 }
 0x841   : > { %7298 = vmatmul.mubr.f32.vlgmr.msra.gmra.mxu1 %v5302_v4 }
 0x901   : > { %v5372_v57 = vpop.f32.mrf.mxu1 }
 0x902   : > { %v5373_v41 = vadd.f32 %v5372_v57, %v5304_v19 }
 0x903   : > { %v7299_v63 = vpop.f32.mrf.mxu1 }
 0x904   : > { %5376 = vst [vmem:[%s351_s11] sm:$0x1] %v5373_v41 }
 0x905   : > { %7372 = shalt.err (!%p7369_p3)
}
 0x906   : > { %s7373_s30 = scalar_lea.hbm %s9842_s21, 16  ;;  %s7377_s18 = scalar_lea.hbm %s9887_s10, 32 }
 0x907   : > { %p7374_p4 = scmp.ne.s32.totalorder %s9842_s21, %s7373_s30  ;;  %p7378_p9 = scmp.lt.s32.totalorder %s9842_s21, %s9887_s10 }
 0x908   : > { %p7379_p10 = scmp.lt.s32.totalorder %s7377_s18, %s7373_s30 }
 0x909   : > { %p7375_p7 = pnand %p7374_p4, %p7517_p5 }
 0x90a   : > { %p7380_p11 = por %p7379_p10, %p7378_p9 }
 0x90b   : > { %p7376_p8 = pneg %p7375_p7 }
 0x90d   : > { %p7381_p12 = pnand %p7380_p11, %p7376_p8 }
 0x90f   : > { %7384 = shalt.err (!%p7381_p12)
}
 0x910   : > { %7316 = dma.vmem_to_hbm [thread:$0]  (%p7517_p5), %s5391_s12, 16, %s9842_s21, %s5378_s25  }
 0x911 PF: > { %p7322_p13 = scmp.ge.s32.totalorder %s7419_s16, 2  ;;  %s5402_s26 = sand.u32 1, %s7407_s13  }
 0x912   : > { %s5403_s17 = scalar_lea.sflag [#allocation3], %s5402_s26 }
 0x913   : > { %p7319_p0 = pnand %p7322_p13, %p7521_p6 }
 0x915   : > { %p7320_p1 = pneg %p7319_p0 }
 0x917   : > { %7402 = dma.done.wait (%p7320_p1), %s5403_s17, 16  }
 0x918   : > { %7404 = vsyncadd (%p7320_p1), %s5403_s17, 4294967280  ;;  %p20_p2 = scmp.ge.s32.totalorder %s7504_s19, 4   ;;  %s9905_s13 = smov %s7411_s14 }
 0x919   : > { %s9906_s14 = smov %s7415_s15  ;;  %s9907_s15 = smov %s7515_s22 }
 0x91a   : > { %s9908_s16 = smov %s7504_s19  ;;  %22 = sbr.rel (!%p20_p2) target bundleno = 3 (0x3), region = 95 }
 0x91f   :  { %5407 = vsyncpa [#allocation3], 1 }
 0x920   :  { %5409 = vsyncpa [#allocation3 + $0x1], 1 }

</bundles_post_ra>
